<compile_context>
chip_gen: v7x
topology: tpu7x:2x2x1
jax: 0.10.0
libtpu: 0.0.40
codegen_flags: <defaults>
</compile_context>

<pallas_src>
import math
import functools

import jax
import jax.numpy as jnp
from jax.experimental import pallas as pl
from jax.experimental.pallas import tpu as pltpu


# ----------------------------- in-kernel helpers -----------------------------

def _gelu(x):
    return jax.nn.gelu(x, approximate=True)


def _layernorm(x, w, b, eps=1e-5):
    # one-pass stats: two independent cross-lane reductions (sum, sum of squares)
    inv_n = 1.0 / x.shape[-1]
    mu = jnp.sum(x, axis=-1, keepdims=True) * inv_n
    ex2 = jnp.sum(x * x, axis=-1, keepdims=True) * inv_n
    var = ex2 - mu * mu
    return (x - mu) * jax.lax.rsqrt(var + eps) * w + b


def _softmax(x):
    m = jnp.max(x, axis=-1, keepdims=True)
    e = jnp.exp(x - m)
    s = jnp.sum(e, axis=-1, keepdims=True)
    return e * pl.reciprocal(s, approx=True)       # divide moved to the EUP


def _split_heads(x2, batch, rows, n_heads, d_head, col0):
    """(batch*rows, C) -> (batch*n_heads, rows, d_head), z = b*n_heads + h."""
    parts = []
    for b in range(batch):
        blk = x2[b * rows:(b + 1) * rows, :]
        for h in range(n_heads):
            c = col0 + h * d_head
            parts.append(blk[:, c:c + d_head])
    return jnp.stack(parts, axis=0)


def _merge_heads(ctx, batch, n_heads):
    """(batch*n_heads, rows, d_head) -> (batch*rows, n_heads*d_head)."""
    out_rows = []
    for b in range(batch):
        out_rows.append(jnp.concatenate(
            [ctx[b * n_heads + h] for h in range(n_heads)], axis=-1))
    return jnp.concatenate(out_rows, axis=0)


def _attention(q_h, k_h, v_h, add_mask, d_head):
    """q_h: (Z, Sq, Dh); k_h, v_h: (Z, Sk, Dh); single leading batch dim Z=B*H."""
    scale = 1.0 / math.sqrt(d_head)
    s = jnp.einsum('zqd,zkd->zqk', q_h, k_h,
                   preferred_element_type=jnp.float32) * scale
    if add_mask is not None:
        s = s + add_mask
    p = _softmax(s)
    return jnp.einsum('zqk,zkd->zqd', p, v_h, preferred_element_type=jnp.float32)


# --------------------------------- kernel ------------------------------------

def critic_kernel(tgt_ref, mem_ref, pad_ref, ctx_ref,
                  w_in_sa, b_in_sa, w_out_sa, b_out_sa,
                  w_q_ca, b_q_ca, w_kv_ca, b_kv_ca, w_out_ca, b_out_ca,
                  ln_w, ln_b, w_ff1, b_ff1, w_ff2, b_ff2,
                  fn_w, fn_b, wv1, bv1, wv2, bv2,
                  out_ref, *, n_layers, n_heads, embed_dim, batch, seq_len, mem_len):
    B, S, M, E, H = batch, seq_len, mem_len, embed_dim, n_heads
    Dh = E // H

    x2 = tgt_ref[...]       # (B*S, E)
    mem2 = mem_ref[...]     # (B*M, E)

    # additive causal + key-padding mask, built once, replicated onto Z = B*H
    row_ids = jax.lax.broadcasted_iota(jnp.int32, (S, S), 0)
    col_ids = jax.lax.broadcasted_iota(jnp.int32, (S, S), 1)
    causal = col_ids > row_ids
    pad = pad_ref[...] > 0.5                             # (B, S) bool
    masks = []
    for b in range(B):
        m_b = jnp.where(causal | pad[b:b + 1, :], -1e9, 0.0)   # (S, S)
        masks.extend([m_b] * H)
    self_mask = jnp.stack(masks, axis=0)                 # (B*H, S, S)

    for l in range(n_layers):
        lw = ln_w[l]        # (3, E)
        lb = ln_b[l]

        # --- self-attention: fused lane-dense QKV matmul, heads batched on Z ---
        qkv = jnp.dot(x2, w_in_sa[l], preferred_element_type=jnp.float32) + b_in_sa[l]
        q_h = _split_heads(qkv, B, S, H, Dh, 0)
        k_h = _split_heads(qkv, B, S, H, Dh, E)
        v_h = _split_heads(qkv, B, S, H, Dh, 2 * E)
        ctx = _attention(q_h, k_h, v_h, self_mask, Dh)                 # (B*H, S, Dh)
        sa = jnp.dot(_merge_heads(ctx, B, H), w_out_sa[l],
                     preferred_element_type=jnp.float32) + b_out_sa[l]
        x2 = _layernorm(x2 + sa, lw[0:1, :], lb[0:1, :])

        # --- cross-attention on encoder memory: fused lane-dense KV matmul ---
        q = jnp.dot(x2, w_q_ca[l], preferred_element_type=jnp.float32) + b_q_ca[l]
        kv = jnp.dot(mem2, w_kv_ca[l], preferred_element_type=jnp.float32) + b_kv_ca[l]
        q_h = _split_heads(q, B, S, H, Dh, 0)
        k_h = _split_heads(kv, B, M, H, Dh, 0)
        v_h = _split_heads(kv, B, M, H, Dh, E)
        ctx = _attention(q_h, k_h, v_h, None, Dh)                      # (B*H, S, Dh)
        ca = jnp.dot(_merge_heads(ctx, B, H), w_out_ca[l],
                     preferred_element_type=jnp.float32) + b_out_ca[l]
        x2 = _layernorm(x2 + ca, lw[1:2, :], lb[1:2, :])

        # --- feed-forward (GELU) ---
        h1 = _gelu(jnp.dot(x2, w_ff1[l], preferred_element_type=jnp.float32) + b_ff1[l])
        ff = jnp.dot(h1, w_ff2[l], preferred_element_type=jnp.float32) + b_ff2[l]
        x2 = _layernorm(x2 + ff, lw[2:3, :], lb[2:3, :])

    # last position per batch + step/remaining embeddings -> final norm -> value head
    last = jnp.concatenate(
        [x2[b * S + S - 1: b * S + S, :] for b in range(B)], axis=0)   # (B, E)
    last = last + ctx_ref[...]
    fz = _layernorm(last, fn_w[...], fn_b[...])
    hv = _gelu(jnp.dot(fz, wv1[...], preferred_element_type=jnp.float32) + bv1[...])
    out_ref[...] = jnp.dot(hv, wv2[...], preferred_element_type=jnp.float32) + bv2[...]


# ------------------------------ params / wrapper ------------------------------

def init_params(key, vocab_size, E, n_layers, max_seq_len):
    ks = iter(jax.random.split(key, 32))

    def w(shape, scale=0.05):
        return jax.random.normal(next(ks), shape, jnp.float32) * scale

    Eff = 4 * E
    E2 = E // 2
    L = n_layers
    p = {
        'token_embed': w((vocab_size, E)),
        'rtg_w': w((1, E)),              # Linear(1, E), pre-transposed
        'rtg_b': w((1, E)),
        'step_embed': w((max_seq_len, E)),
        'rem_embed': w((max_seq_len + 1, E)),
        'w_in_sa': w((L, E, 3 * E)), 'b_in_sa': w((L, 1, 3 * E)),
        'w_out_sa': w((L, E, E)),    'b_out_sa': w((L, 1, E)),
        'w_in_ca': w((L, E, 3 * E)), 'b_in_ca': w((L, 1, 3 * E)),
        'w_out_ca': w((L, E, E)),    'b_out_ca': w((L, 1, E)),
        'ln_w': jnp.ones((L, 3, E), jnp.float32),
        'ln_b': jnp.zeros((L, 3, E), jnp.float32),
        'w_ff1': w((L, E, Eff)), 'b_ff1': w((L, 1, Eff)),
        'w_ff2': w((L, Eff, E)), 'b_ff2': w((L, 1, E)),
        'fn_w': jnp.ones((1, E), jnp.float32),
        'fn_b': jnp.zeros((1, E), jnp.float32),
        'wv1': w((E, E2)), 'bv1': w((1, E2)),
        'wv2': w((E2, 1)), 'bv2': w((1, 1)),
    }
    return p


def critic_forward(params, obs, *, p_net_num_nodes, E, n_heads, n_layers, max_seq_len):
    history = obs['history_actions']          # (B, S) int32
    rtg = obs['rtg']                          # (B, S) float32
    memory = obs['encoder_outputs']           # (B, M, E) float32
    curr_v = obs['curr_v_node_id']            # (B,) int32
    rem = obs['vnfs_remaining']               # (B,) int32

    num_actions = p_net_num_nodes + 2
    pad_token = num_actions + 1
    B, S = history.shape
    M = memory.shape[1]

    # ---- JAX glue: embedding gathers, rtg linear, pad mask, weight pre-split ----
    action_emb = params['token_embed'][history]                               # (B, S, E)
    rtg_emb = rtg[..., None] * params['rtg_w'][None] + params['rtg_b'][None]  # (B, S, E)
    tgt2 = (action_emb + rtg_emb).astype(jnp.float32).reshape(B * S, E)
    mem2 = memory.astype(jnp.float32).reshape(B * M, E)
    pad_f = (history == pad_token).astype(jnp.float32)                        # (B, S)

    curr_ids = jnp.clip(curr_v, 0, max_seq_len - 1)
    rem_ids = jnp.clip(rem, 0, max_seq_len)
    ctx_add = (params['step_embed'][curr_ids] + params['rem_embed'][rem_ids])  # (B, E)
    ctx_add = ctx_add.astype(jnp.float32)

    # pre-split cross-attention in_proj so the kernel never slices weights
    w_q_ca = params['w_in_ca'][:, :, :E]
    b_q_ca = params['b_in_ca'][:, :, :E]
    w_kv_ca = params['w_in_ca'][:, :, E:]
    b_kv_ca = params['b_in_ca'][:, :, E:]

    weight_args = [
        params['w_in_sa'], params['b_in_sa'], params['w_out_sa'], params['b_out_sa'],
        w_q_ca, b_q_ca, w_kv_ca, b_kv_ca, params['w_out_ca'], params['b_out_ca'],
        params['ln_w'], params['ln_b'],
        params['w_ff1'], params['b_ff1'], params['w_ff2'], params['b_ff2'],
        params['fn_w'], params['fn_b'],
        params['wv1'], params['bv1'], params['wv2'], params['bv2'],
    ]

    kern = functools.partial(critic_kernel, n_layers=n_layers, n_heads=n_heads,
                             embed_dim=E, batch=B, seq_len=S, mem_len=M)

    vmem_spec = pl.BlockSpec(memory_space=pltpu.MemorySpace.VMEM)
    out = pl.pallas_call(
        kern,
        out_shape=jax.ShapeDtypeStruct((B, 1), jnp.float32),
        in_specs=[vmem_spec] * (4 + len(weight_args)),
        out_specs=vmem_spec,
    )(tgt2, mem2, pad_f, ctx_add, *weight_args)
    return out


# ----------------------------------- main -------------------------------------

if __name__ == "__main__":
    key = jax.random.PRNGKey(0)

    # small constructor-consistent config
    p_net_num_nodes = 8
    E = 64              # embedding_dim
    n_heads = 4
    n_layers = 2
    max_seq_len = 15
    B, S, M = 2, 8, 6   # batch, history length, encoder memory length

    num_actions = p_net_num_nodes + 2
    start_token = num_actions
    pad_token = num_actions + 1
    vocab_size = num_actions + 2

    k_params, k_obs = jax.random.split(key)
    params = init_params(k_params, vocab_size, E, n_layers, max_seq_len)

    ko = jax.random.split(k_obs, 5)
    history = jax.random.randint(ko[0], (B, S), 0, num_actions).astype(jnp.int32)
    history = history.at[:, 0].set(start_token)
    history = history.at[:, -1].set(pad_token)    # exercise tgt_key_padding_mask
    rtg = jax.random.uniform(ko[1], (B, S), jnp.float32)
    memory = jax.random.normal(ko[2], (B, M, E), jnp.float32)
    curr_v = jax.random.randint(ko[3], (B,), 0, max_seq_len).astype(jnp.int32)
    rem = jax.random.randint(ko[4], (B,), 0, max_seq_len + 1).astype(jnp.int32)

    obs = {
        'history_actions': history,
        'rtg': rtg,
        'encoder_outputs': memory,
        'curr_v_node_id': curr_v,
        'vnfs_remaining': rem,
    }

    value = critic_forward(params, obs, p_net_num_nodes=p_net_num_nodes, E=E,
                           n_heads=n_heads, n_layers=n_layers, max_seq_len=max_seq_len)
    value = jax.block_until_ready(value)
    assert value.shape == (B, 1) and jnp.all(jnp.isfinite(value))
    print("KERNEL_OK")
</pallas_src>

<mosaic_0001>
module attributes {stable_mosaic.version = 11 : i64} {
  func.func @critic_kernel(%arg0: memref<16x64xf32, #tpu.memory_space<vmem>>, %arg1: memref<12x64xf32, #tpu.memory_space<vmem>>, %arg2: memref<2x8xf32, #tpu.memory_space<vmem>>, %arg3: memref<2x64xf32, #tpu.memory_space<vmem>>, %arg4: memref<2x64x192xf32, #tpu.memory_space<vmem>>, %arg5: memref<2x1x192xf32, #tpu.memory_space<vmem>>, %arg6: memref<2x64x64xf32, #tpu.memory_space<vmem>>, %arg7: memref<2x1x64xf32, #tpu.memory_space<vmem>>, %arg8: memref<2x64x64xf32, #tpu.memory_space<vmem>>, %arg9: memref<2x1x64xf32, #tpu.memory_space<vmem>>, %arg10: memref<2x64x128xf32, #tpu.memory_space<vmem>>, %arg11: memref<2x1x128xf32, #tpu.memory_space<vmem>>, %arg12: memref<2x64x64xf32, #tpu.memory_space<vmem>>, %arg13: memref<2x1x64xf32, #tpu.memory_space<vmem>>, %arg14: memref<2x3x64xf32, #tpu.memory_space<vmem>>, %arg15: memref<2x3x64xf32, #tpu.memory_space<vmem>>, %arg16: memref<2x64x256xf32, #tpu.memory_space<vmem>>, %arg17: memref<2x1x256xf32, #tpu.memory_space<vmem>>, %arg18: memref<2x256x64xf32, #tpu.memory_space<vmem>>, %arg19: memref<2x1x64xf32, #tpu.memory_space<vmem>>, %arg20: memref<1x64xf32, #tpu.memory_space<vmem>>, %arg21: memref<1x64xf32, #tpu.memory_space<vmem>>, %arg22: memref<64x32xf32, #tpu.memory_space<vmem>>, %arg23: memref<1x32xf32, #tpu.memory_space<vmem>>, %arg24: memref<32x1xf32, #tpu.memory_space<vmem>>, %arg25: memref<1x1xf32, #tpu.memory_space<vmem>>, %arg26: memref<2x1xf32, #tpu.memory_space<vmem>>) attributes {dimension_semantics = [], scalar_prefetch = 0 : i64, scratch_operands = 0 : i64, tpu.core_type = #tpu.core_type<tc>} {
    %c0 = arith.constant 0 : index
    %c0_0 = arith.constant 0 : index
    %0 = vector.load %arg0[%c0, %c0_0] : memref<16x64xf32, #tpu.memory_space<vmem>>, vector<16x64xf32>
    %c0_1 = arith.constant 0 : index
    %c0_2 = arith.constant 0 : index
    %1 = vector.load %arg1[%c0_1, %c0_2] : memref<12x64xf32, #tpu.memory_space<vmem>>, vector<12x64xf32>
    %2 = tpu.iota {dimensions = array<i32: 0>} : vector<8x8xi32>
    %3 = tpu.iota {dimensions = array<i32: 1>} : vector<8x8xi32>
    %4 = arith.cmpi sgt, %3, %2 : vector<8x8xi32>
    %c0_3 = arith.constant 0 : index
    %c0_4 = arith.constant 0 : index
    %5 = vector.load %arg2[%c0_3, %c0_4] : memref<2x8xf32, #tpu.memory_space<vmem>>, vector<2x8xf32>
    %cst = arith.constant 5.000000e-01 : f32
    %6 = vector.broadcast %cst : f32 to vector<2x8xf32>
    %7 = arith.cmpf ogt, %5, %6 : vector<2x8xf32>
    %8 = vector.extract_strided_slice %7 {offsets = [0, 0], sizes = [1, 8], strides = [1, 1]} : vector<2x8xi1> to vector<1x8xi1>
    %9 = vector.broadcast %8 : vector<1x8xi1> to vector<8x8xi1>
    %10 = arith.ori %4, %9 : vector<8x8xi1>
    %cst_5 = arith.constant -1.000000e+09 : f32
    %cst_6 = arith.constant 0.000000e+00 : f32
    %11 = vector.broadcast %cst_5 : f32 to vector<8x8xf32>
    %12 = vector.broadcast %cst_6 : f32 to vector<8x8xf32>
    %13 = arith.select %10, %11, %12 : vector<8x8xi1>, vector<8x8xf32>
    %14 = vector.extract_strided_slice %7 {offsets = [1, 0], sizes = [1, 8], strides = [1, 1]} : vector<2x8xi1> to vector<1x8xi1>
    %15 = vector.broadcast %14 : vector<1x8xi1> to vector<8x8xi1>
    %16 = arith.ori %4, %15 : vector<8x8xi1>
    %cst_7 = arith.constant -1.000000e+09 : f32
    %cst_8 = arith.constant 0.000000e+00 : f32
    %17 = vector.broadcast %cst_7 : f32 to vector<8x8xf32>
    %18 = vector.broadcast %cst_8 : f32 to vector<8x8xf32>
    %19 = arith.select %16, %17, %18 : vector<8x8xi1>, vector<8x8xf32>
    %20 = vector.shape_cast %13 : vector<8x8xf32> to vector<1x8x8xf32>
    %21 = vector.shape_cast %13 : vector<8x8xf32> to vector<1x8x8xf32>
    %22 = vector.shape_cast %13 : vector<8x8xf32> to vector<1x8x8xf32>
    %23 = vector.shape_cast %13 : vector<8x8xf32> to vector<1x8x8xf32>
    %24 = vector.shape_cast %19 : vector<8x8xf32> to vector<1x8x8xf32>
    %25 = vector.shape_cast %19 : vector<8x8xf32> to vector<1x8x8xf32>
    %26 = vector.shape_cast %19 : vector<8x8xf32> to vector<1x8x8xf32>
    %27 = vector.shape_cast %19 : vector<8x8xf32> to vector<1x8x8xf32>
    %28 = tpu.concatenate %20, %21, %22, %23, %24, %25, %26, %27 in 0 : vector<1x8x8xf32>, vector<1x8x8xf32>, vector<1x8x8xf32>, vector<1x8x8xf32>, vector<1x8x8xf32>, vector<1x8x8xf32>, vector<1x8x8xf32>, vector<1x8x8xf32> -> vector<8x8x8xf32>
    %c0_9 = arith.constant 0 : index
    %c0_10 = arith.constant 0 : index
    %c0_11 = arith.constant 0 : index
    %29 = vector.load %arg14[%c0_9, %c0_10, %c0_11] : memref<2x3x64xf32, #tpu.memory_space<vmem>>, vector<1x3x64xf32>
    %30 = vector.shape_cast %29 : vector<1x3x64xf32> to vector<3x64xf32>
    %c0_12 = arith.constant 0 : index
    %c0_13 = arith.constant 0 : index
    %c0_14 = arith.constant 0 : index
    %31 = vector.load %arg15[%c0_12, %c0_13, %c0_14] : memref<2x3x64xf32, #tpu.memory_space<vmem>>, vector<1x3x64xf32>
    %32 = vector.shape_cast %31 : vector<1x3x64xf32> to vector<3x64xf32>
    %c0_15 = arith.constant 0 : index
    %c0_16 = arith.constant 0 : index
    %c0_17 = arith.constant 0 : index
    %33 = vector.load %arg4[%c0_15, %c0_16, %c0_17] : memref<2x64x192xf32, #tpu.memory_space<vmem>>, vector<1x64x192xf32>
    %34 = vector.shape_cast %33 : vector<1x64x192xf32> to vector<64x192xf32>
    %cst_18 = arith.constant dense<0.000000e+00> : vector<16x192xf32>
    %35 = tpu.matmul %0, %34, %cst_18 {dimension_numbers = #tpu.dot_dimension_numbers<[1], [0], [0], [1], [0, 0, 1, 1], [], []>} : vector<16x64xf32>, vector<64x192xf32>, vector<16x192xf32> -> vector<16x192xf32>
    %c0_19 = arith.constant 0 : index
    %c0_20 = arith.constant 0 : index
    %c0_21 = arith.constant 0 : index
    %36 = vector.load %arg5[%c0_19, %c0_20, %c0_21] : memref<2x1x192xf32, #tpu.memory_space<vmem>>, vector<1x1x192xf32>
    %37 = vector.shape_cast %36 : vector<1x1x192xf32> to vector<1x192xf32>
    %38 = vector.broadcast %37 : vector<1x192xf32> to vector<16x192xf32>
    %39 = arith.addf %35, %38 : vector<16x192xf32>
    %40 = vector.extract_strided_slice %39 {offsets = [0, 0], sizes = [8, 192], strides = [1, 1]} : vector<16x192xf32> to vector<8x192xf32>
    %41 = vector.extract_strided_slice %40 {offsets = [0, 0], sizes = [8, 16], strides = [1, 1]} : vector<8x192xf32> to vector<8x16xf32>
    %42 = vector.extract_strided_slice %40 {offsets = [0, 16], sizes = [8, 16], strides = [1, 1]} : vector<8x192xf32> to vector<8x16xf32>
    %43 = vector.extract_strided_slice %40 {offsets = [0, 32], sizes = [8, 16], strides = [1, 1]} : vector<8x192xf32> to vector<8x16xf32>
    %44 = vector.extract_strided_slice %40 {offsets = [0, 48], sizes = [8, 16], strides = [1, 1]} : vector<8x192xf32> to vector<8x16xf32>
    %45 = vector.extract_strided_slice %39 {offsets = [8, 0], sizes = [8, 192], strides = [1, 1]} : vector<16x192xf32> to vector<8x192xf32>
    %46 = vector.extract_strided_slice %45 {offsets = [0, 0], sizes = [8, 16], strides = [1, 1]} : vector<8x192xf32> to vector<8x16xf32>
    %47 = vector.extract_strided_slice %45 {offsets = [0, 16], sizes = [8, 16], strides = [1, 1]} : vector<8x192xf32> to vector<8x16xf32>
    %48 = vector.extract_strided_slice %45 {offsets = [0, 32], sizes = [8, 16], strides = [1, 1]} : vector<8x192xf32> to vector<8x16xf32>
    %49 = vector.extract_strided_slice %45 {offsets = [0, 48], sizes = [8, 16], strides = [1, 1]} : vector<8x192xf32> to vector<8x16xf32>
    %50 = vector.shape_cast %41 : vector<8x16xf32> to vector<1x8x16xf32>
    %51 = vector.shape_cast %42 : vector<8x16xf32> to vector<1x8x16xf32>
    %52 = vector.shape_cast %43 : vector<8x16xf32> to vector<1x8x16xf32>
    %53 = vector.shape_cast %44 : vector<8x16xf32> to vector<1x8x16xf32>
    %54 = vector.shape_cast %46 : vector<8x16xf32> to vector<1x8x16xf32>
    %55 = vector.shape_cast %47 : vector<8x16xf32> to vector<1x8x16xf32>
    %56 = vector.shape_cast %48 : vector<8x16xf32> to vector<1x8x16xf32>
    %57 = vector.shape_cast %49 : vector<8x16xf32> to vector<1x8x16xf32>
    %58 = tpu.concatenate %50, %51, %52, %53, %54, %55, %56, %57 in 0 : vector<1x8x16xf32>, vector<1x8x16xf32>, vector<1x8x16xf32>, vector<1x8x16xf32>, vector<1x8x16xf32>, vector<1x8x16xf32>, vector<1x8x16xf32>, vector<1x8x16xf32> -> vector<8x8x16xf32>
    %59 = vector.extract_strided_slice %39 {offsets = [0, 0], sizes = [8, 192], strides = [1, 1]} : vector<16x192xf32> to vector<8x192xf32>
    %60 = vector.extract_strided_slice %59 {offsets = [0, 64], sizes = [8, 16], strides = [1, 1]} : vector<8x192xf32> to vector<8x16xf32>
    %61 = vector.extract_strided_slice %59 {offsets = [0, 80], sizes = [8, 16], strides = [1, 1]} : vector<8x192xf32> to vector<8x16xf32>
    %62 = vector.extract_strided_slice %59 {offsets = [0, 96], sizes = [8, 16], strides = [1, 1]} : vector<8x192xf32> to vector<8x16xf32>
    %63 = vector.extract_strided_slice %59 {offsets = [0, 112], sizes = [8, 16], strides = [1, 1]} : vector<8x192xf32> to vector<8x16xf32>
    %64 = vector.extract_strided_slice %39 {offsets = [8, 0], sizes = [8, 192], strides = [1, 1]} : vector<16x192xf32> to vector<8x192xf32>
    %65 = vector.extract_strided_slice %64 {offsets = [0, 64], sizes = [8, 16], strides = [1, 1]} : vector<8x192xf32> to vector<8x16xf32>
    %66 = vector.extract_strided_slice %64 {offsets = [0, 80], sizes = [8, 16], strides = [1, 1]} : vector<8x192xf32> to vector<8x16xf32>
    %67 = vector.extract_strided_slice %64 {offsets = [0, 96], sizes = [8, 16], strides = [1, 1]} : vector<8x192xf32> to vector<8x16xf32>
    %68 = vector.extract_strided_slice %64 {offsets = [0, 112], sizes = [8, 16], strides = [1, 1]} : vector<8x192xf32> to vector<8x16xf32>
    %69 = vector.shape_cast %60 : vector<8x16xf32> to vector<1x8x16xf32>
    %70 = vector.shape_cast %61 : vector<8x16xf32> to vector<1x8x16xf32>
    %71 = vector.shape_cast %62 : vector<8x16xf32> to vector<1x8x16xf32>
    %72 = vector.shape_cast %63 : vector<8x16xf32> to vector<1x8x16xf32>
    %73 = vector.shape_cast %65 : vector<8x16xf32> to vector<1x8x16xf32>
    %74 = vector.shape_cast %66 : vector<8x16xf32> to vector<1x8x16xf32>
    %75 = vector.shape_cast %67 : vector<8x16xf32> to vector<1x8x16xf32>
    %76 = vector.shape_cast %68 : vector<8x16xf32> to vector<1x8x16xf32>
    %77 = tpu.concatenate %69, %70, %71, %72, %73, %74, %75, %76 in 0 : vector<1x8x16xf32>, vector<1x8x16xf32>, vector<1x8x16xf32>, vector<1x8x16xf32>, vector<1x8x16xf32>, vector<1x8x16xf32>, vector<1x8x16xf32>, vector<1x8x16xf32> -> vector<8x8x16xf32>
    %78 = vector.extract_strided_slice %39 {offsets = [0, 0], sizes = [8, 192], strides = [1, 1]} : vector<16x192xf32> to vector<8x192xf32>
    %79 = vector.extract_strided_slice %78 {offsets = [0, 128], sizes = [8, 16], strides = [1, 1]} : vector<8x192xf32> to vector<8x16xf32>
    %80 = vector.extract_strided_slice %78 {offsets = [0, 144], sizes = [8, 16], strides = [1, 1]} : vector<8x192xf32> to vector<8x16xf32>
    %81 = vector.extract_strided_slice %78 {offsets = [0, 160], sizes = [8, 16], strides = [1, 1]} : vector<8x192xf32> to vector<8x16xf32>
    %82 = vector.extract_strided_slice %78 {offsets = [0, 176], sizes = [8, 16], strides = [1, 1]} : vector<8x192xf32> to vector<8x16xf32>
    %83 = vector.extract_strided_slice %39 {offsets = [8, 0], sizes = [8, 192], strides = [1, 1]} : vector<16x192xf32> to vector<8x192xf32>
    %84 = vector.extract_strided_slice %83 {offsets = [0, 128], sizes = [8, 16], strides = [1, 1]} : vector<8x192xf32> to vector<8x16xf32>
    %85 = vector.extract_strided_slice %83 {offsets = [0, 144], sizes = [8, 16], strides = [1, 1]} : vector<8x192xf32> to vector<8x16xf32>
    %86 = vector.extract_strided_slice %83 {offsets = [0, 160], sizes = [8, 16], strides = [1, 1]} : vector<8x192xf32> to vector<8x16xf32>
    %87 = vector.extract_strided_slice %83 {offsets = [0, 176], sizes = [8, 16], strides = [1, 1]} : vector<8x192xf32> to vector<8x16xf32>
    %88 = vector.shape_cast %79 : vector<8x16xf32> to vector<1x8x16xf32>
    %89 = vector.shape_cast %80 : vector<8x16xf32> to vector<1x8x16xf32>
    %90 = vector.shape_cast %81 : vector<8x16xf32> to vector<1x8x16xf32>
    %91 = vector.shape_cast %82 : vector<8x16xf32> to vector<1x8x16xf32>
    %92 = vector.shape_cast %84 : vector<8x16xf32> to vector<1x8x16xf32>
    %93 = vector.shape_cast %85 : vector<8x16xf32> to vector<1x8x16xf32>
    %94 = vector.shape_cast %86 : vector<8x16xf32> to vector<1x8x16xf32>
    %95 = vector.shape_cast %87 : vector<8x16xf32> to vector<1x8x16xf32>
    %96 = tpu.concatenate %88, %89, %90, %91, %92, %93, %94, %95 in 0 : vector<1x8x16xf32>, vector<1x8x16xf32>, vector<1x8x16xf32>, vector<1x8x16xf32>, vector<1x8x16xf32>, vector<1x8x16xf32>, vector<1x8x16xf32>, vector<1x8x16xf32> -> vector<8x8x16xf32>
    "tpu.trace_start"() <{level = 10 : i32, message = "zqd,zkd->zqk"}> : () -> ()
    %cst_22 = arith.constant dense<0.000000e+00> : vector<8x8x8xf32>
    %97 = tpu.matmul %58, %77, %cst_22 {dimension_numbers = #tpu.dot_dimension_numbers<[2], [2], [1], [1], [0, 0, 0, 1, 1, 1], [0], [0]>} : vector<8x8x16xf32>, vector<8x8x16xf32>, vector<8x8x8xf32> -> vector<8x8x8xf32>
    "tpu.trace_stop"() : () -> ()
    %cst_23 = arith.constant 2.500000e-01 : f32
    %98 = vector.broadcast %cst_23 : f32 to vector<8x8x8xf32>
    %99 = arith.mulf %97, %98 : vector<8x8x8xf32>
    %100 = arith.addf %99, %28 : vector<8x8x8xf32>
    %cst_24 = arith.constant dense<0xFF800000> : vector<8x8xf32>
    %101 = vector.multi_reduction <maximumf>, %100, %cst_24 [2] : vector<8x8x8xf32> to vector<8x8xf32>
    %102 = vector.shape_cast %101 : vector<8x8xf32> to vector<8x8x1xf32>
    %103 = vector.broadcast %102 : vector<8x8x1xf32> to vector<8x8x8xf32>
    %104 = arith.subf %100, %103 : vector<8x8x8xf32>
    %105 = math.exp %104 : vector<8x8x8xf32>
    %cst_25 = arith.constant dense<0.000000e+00> : vector<8x8xf32>
    %106 = vector.multi_reduction <add>, %105, %cst_25 [2] : vector<8x8x8xf32> to vector<8x8xf32>
    %107 = vector.shape_cast %106 : vector<8x8xf32> to vector<8x8x1xf32>
    %108 = tpu.reciprocal %107 {approx = true} : vector<8x8x1xf32> -> vector<8x8x1xf32>
    %109 = vector.broadcast %108 : vector<8x8x1xf32> to vector<8x8x8xf32>
    %110 = arith.mulf %105, %109 : vector<8x8x8xf32>
    "tpu.trace_start"() <{level = 10 : i32, message = "zqk,zkd->zqd"}> : () -> ()
    %cst_26 = arith.constant dense<0.000000e+00> : vector<8x8x16xf32>
    %111 = tpu.matmul %110, %96, %cst_26 {dimension_numbers = #tpu.dot_dimension_numbers<[2], [1], [1], [2], [0, 0, 0, 1, 1, 2], [0], [0]>} : vector<8x8x8xf32>, vector<8x8x16xf32>, vector<8x8x16xf32> -> vector<8x8x16xf32>
    "tpu.trace_stop"() : () -> ()
    %112 = vector.extract_strided_slice %111 {offsets = [0, 0, 0], sizes = [1, 8, 16], strides = [1, 1, 1]} : vector<8x8x16xf32> to vector<1x8x16xf32>
    %113 = vector.shape_cast %112 : vector<1x8x16xf32> to vector<8x16xf32>
    %114 = vector.extract_strided_slice %111 {offsets = [1, 0, 0], sizes = [1, 8, 16], strides = [1, 1, 1]} : vector<8x8x16xf32> to vector<1x8x16xf32>
    %115 = vector.shape_cast %114 : vector<1x8x16xf32> to vector<8x16xf32>
    %116 = vector.extract_strided_slice %111 {offsets = [2, 0, 0], sizes = [1, 8, 16], strides = [1, 1, 1]} : vector<8x8x16xf32> to vector<1x8x16xf32>
    %117 = vector.shape_cast %116 : vector<1x8x16xf32> to vector<8x16xf32>
    %118 = vector.extract_strided_slice %111 {offsets = [3, 0, 0], sizes = [1, 8, 16], strides = [1, 1, 1]} : vector<8x8x16xf32> to vector<1x8x16xf32>
    %119 = vector.shape_cast %118 : vector<1x8x16xf32> to vector<8x16xf32>
    %120 = tpu.concatenate %113, %115, %117, %119 in 1 : vector<8x16xf32>, vector<8x16xf32>, vector<8x16xf32>, vector<8x16xf32> -> vector<8x64xf32>
    %121 = vector.extract_strided_slice %111 {offsets = [4, 0, 0], sizes = [1, 8, 16], strides = [1, 1, 1]} : vector<8x8x16xf32> to vector<1x8x16xf32>
    %122 = vector.shape_cast %121 : vector<1x8x16xf32> to vector<8x16xf32>
    %123 = vector.extract_strided_slice %111 {offsets = [5, 0, 0], sizes = [1, 8, 16], strides = [1, 1, 1]} : vector<8x8x16xf32> to vector<1x8x16xf32>
    %124 = vector.shape_cast %123 : vector<1x8x16xf32> to vector<8x16xf32>
    %125 = vector.extract_strided_slice %111 {offsets = [6, 0, 0], sizes = [1, 8, 16], strides = [1, 1, 1]} : vector<8x8x16xf32> to vector<1x8x16xf32>
    %126 = vector.shape_cast %125 : vector<1x8x16xf32> to vector<8x16xf32>
    %127 = vector.extract_strided_slice %111 {offsets = [7, 0, 0], sizes = [1, 8, 16], strides = [1, 1, 1]} : vector<8x8x16xf32> to vector<1x8x16xf32>
    %128 = vector.shape_cast %127 : vector<1x8x16xf32> to vector<8x16xf32>
    %129 = tpu.concatenate %122, %124, %126, %128 in 1 : vector<8x16xf32>, vector<8x16xf32>, vector<8x16xf32>, vector<8x16xf32> -> vector<8x64xf32>
    %130 = tpu.concatenate %120, %129 in 0 : vector<8x64xf32>, vector<8x64xf32> -> vector<16x64xf32>
    %c0_27 = arith.constant 0 : index
    %c0_28 = arith.constant 0 : index
    %c0_29 = arith.constant 0 : index
    %131 = vector.load %arg6[%c0_27, %c0_28, %c0_29] : memref<2x64x64xf32, #tpu.memory_space<vmem>>, vector<1x64x64xf32>
    %132 = vector.shape_cast %131 : vector<1x64x64xf32> to vector<64x64xf32>
    %cst_30 = arith.constant dense<0.000000e+00> : vector<16x64xf32>
    %133 = tpu.matmul %130, %132, %cst_30 {dimension_numbers = #tpu.dot_dimension_numbers<[1], [0], [0], [1], [0, 0, 1, 1], [], []>} : vector<16x64xf32>, vector<64x64xf32>, vector<16x64xf32> -> vector<16x64xf32>
    %c0_31 = arith.constant 0 : index
    %c0_32 = arith.constant 0 : index
    %c0_33 = arith.constant 0 : index
    %134 = vector.load %arg7[%c0_31, %c0_32, %c0_33] : memref<2x1x64xf32, #tpu.memory_space<vmem>>, vector<1x1x64xf32>
    %135 = vector.shape_cast %134 : vector<1x1x64xf32> to vector<1x64xf32>
    %136 = vector.broadcast %135 : vector<1x64xf32> to vector<16x64xf32>
    %137 = arith.addf %133, %136 : vector<16x64xf32>
    %138 = arith.addf %0, %137 : vector<16x64xf32>
    %139 = vector.extract_strided_slice %30 {offsets = [0, 0], sizes = [1, 64], strides = [1, 1]} : vector<3x64xf32> to vector<1x64xf32>
    %140 = vector.extract_strided_slice %32 {offsets = [0, 0], sizes = [1, 64], strides = [1, 1]} : vector<3x64xf32> to vector<1x64xf32>
    %cst_34 = arith.constant dense<0.000000e+00> : vector<16xf32>
    %141 = vector.multi_reduction <add>, %138, %cst_34 [1] : vector<16x64xf32> to vector<16xf32>
    %142 = vector.shape_cast %141 : vector<16xf32> to vector<16x1xf32>
    %cst_35 = arith.constant 1.562500e-02 : f32
    %143 = vector.broadcast %cst_35 : f32 to vector<16x1xf32>
    %144 = arith.mulf %142, %143 : vector<16x1xf32>
    %145 = arith.mulf %138, %138 : vector<16x64xf32>
    %cst_36 = arith.constant dense<0.000000e+00> : vector<16xf32>
    %146 = vector.multi_reduction <add>, %145, %cst_36 [1] : vector<16x64xf32> to vector<16xf32>
    %147 = vector.shape_cast %146 : vector<16xf32> to vector<16x1xf32>
    %cst_37 = arith.constant 1.562500e-02 : f32
    %148 = vector.broadcast %cst_37 : f32 to vector<16x1xf32>
    %149 = arith.mulf %147, %148 : vector<16x1xf32>
    %150 = arith.mulf %144, %144 : vector<16x1xf32>
    %151 = arith.subf %149, %150 : vector<16x1xf32>
    %152 = vector.broadcast %144 : vector<16x1xf32> to vector<16x64xf32>
    %153 = arith.subf %138, %152 : vector<16x64xf32>
    %cst_38 = arith.constant 9.99999974E-6 : f32
    %154 = vector.broadcast %cst_38 : f32 to vector<16x1xf32>
    %155 = arith.addf %151, %154 : vector<16x1xf32>
    %156 = math.rsqrt %155 : vector<16x1xf32>
    %157 = vector.broadcast %156 : vector<16x1xf32> to vector<16x64xf32>
    %158 = arith.mulf %153, %157 : vector<16x64xf32>
    %159 = vector.broadcast %139 : vector<1x64xf32> to vector<16x64xf32>
    %160 = arith.mulf %158, %159 : vector<16x64xf32>
    %161 = vector.broadcast %140 : vector<1x64xf32> to vector<16x64xf32>
    %162 = arith.addf %160, %161 : vector<16x64xf32>
    %c0_39 = arith.constant 0 : index
    %c0_40 = arith.constant 0 : index
    %c0_41 = arith.constant 0 : index
    %163 = vector.load %arg8[%c0_39, %c0_40, %c0_41] : memref<2x64x64xf32, #tpu.memory_space<vmem>>, vector<1x64x64xf32>
    %164 = vector.shape_cast %163 : vector<1x64x64xf32> to vector<64x64xf32>
    %cst_42 = arith.constant dense<0.000000e+00> : vector<16x64xf32>
    %165 = tpu.matmul %162, %164, %cst_42 {dimension_numbers = #tpu.dot_dimension_numbers<[1], [0], [0], [1], [0, 0, 1, 1], [], []>} : vector<16x64xf32>, vector<64x64xf32>, vector<16x64xf32> -> vector<16x64xf32>
    %c0_43 = arith.constant 0 : index
    %c0_44 = arith.constant 0 : index
    %c0_45 = arith.constant 0 : index
    %166 = vector.load %arg9[%c0_43, %c0_44, %c0_45] : memref<2x1x64xf32, #tpu.memory_space<vmem>>, vector<1x1x64xf32>
    %167 = vector.shape_cast %166 : vector<1x1x64xf32> to vector<1x64xf32>
    %168 = vector.broadcast %167 : vector<1x64xf32> to vector<16x64xf32>
    %169 = arith.addf %165, %168 : vector<16x64xf32>
    %c0_46 = arith.constant 0 : index
    %c0_47 = arith.constant 0 : index
    %c0_48 = arith.constant 0 : index
    %170 = vector.load %arg10[%c0_46, %c0_47, %c0_48] : memref<2x64x128xf32, #tpu.memory_space<vmem>>, vector<1x64x128xf32>
    %171 = vector.shape_cast %170 : vector<1x64x128xf32> to vector<64x128xf32>
    %cst_49 = arith.constant dense<0.000000e+00> : vector<12x128xf32>
    %172 = tpu.matmul %1, %171, %cst_49 {dimension_numbers = #tpu.dot_dimension_numbers<[1], [0], [0], [1], [0, 0, 1, 1], [], []>} : vector<12x64xf32>, vector<64x128xf32>, vector<12x128xf32> -> vector<12x128xf32>
    %c0_50 = arith.constant 0 : index
    %c0_51 = arith.constant 0 : index
    %c0_52 = arith.constant 0 : index
    %173 = vector.load %arg11[%c0_50, %c0_51, %c0_52] : memref<2x1x128xf32, #tpu.memory_space<vmem>>, vector<1x1x128xf32>
    %174 = vector.shape_cast %173 : vector<1x1x128xf32> to vector<1x128xf32>
    %175 = vector.broadcast %174 : vector<1x128xf32> to vector<12x128xf32>
    %176 = arith.addf %172, %175 : vector<12x128xf32>
    %177 = vector.extract_strided_slice %169 {offsets = [0, 0], sizes = [8, 64], strides = [1, 1]} : vector<16x64xf32> to vector<8x64xf32>
    %178 = vector.extract_strided_slice %177 {offsets = [0, 0], sizes = [8, 16], strides = [1, 1]} : vector<8x64xf32> to vector<8x16xf32>
    %179 = vector.extract_strided_slice %177 {offsets = [0, 16], sizes = [8, 16], strides = [1, 1]} : vector<8x64xf32> to vector<8x16xf32>
    %180 = vector.extract_strided_slice %177 {offsets = [0, 32], sizes = [8, 16], strides = [1, 1]} : vector<8x64xf32> to vector<8x16xf32>
    %181 = vector.extract_strided_slice %177 {offsets = [0, 48], sizes = [8, 16], strides = [1, 1]} : vector<8x64xf32> to vector<8x16xf32>
    %182 = vector.extract_strided_slice %169 {offsets = [8, 0], sizes = [8, 64], strides = [1, 1]} : vector<16x64xf32> to vector<8x64xf32>
    %183 = vector.extract_strided_slice %182 {offsets = [0, 0], sizes = [8, 16], strides = [1, 1]} : vector<8x64xf32> to vector<8x16xf32>
    %184 = vector.extract_strided_slice %182 {offsets = [0, 16], sizes = [8, 16], strides = [1, 1]} : vector<8x64xf32> to vector<8x16xf32>
    %185 = vector.extract_strided_slice %182 {offsets = [0, 32], sizes = [8, 16], strides = [1, 1]} : vector<8x64xf32> to vector<8x16xf32>
    %186 = vector.extract_strided_slice %182 {offsets = [0, 48], sizes = [8, 16], strides = [1, 1]} : vector<8x64xf32> to vector<8x16xf32>
    %187 = vector.shape_cast %178 : vector<8x16xf32> to vector<1x8x16xf32>
    %188 = vector.shape_cast %179 : vector<8x16xf32> to vector<1x8x16xf32>
    %189 = vector.shape_cast %180 : vector<8x16xf32> to vector<1x8x16xf32>
    %190 = vector.shape_cast %181 : vector<8x16xf32> to vector<1x8x16xf32>
    %191 = vector.shape_cast %183 : vector<8x16xf32> to vector<1x8x16xf32>
    %192 = vector.shape_cast %184 : vector<8x16xf32> to vector<1x8x16xf32>
    %193 = vector.shape_cast %185 : vector<8x16xf32> to vector<1x8x16xf32>
    %194 = vector.shape_cast %186 : vector<8x16xf32> to vector<1x8x16xf32>
    %195 = tpu.concatenate %187, %188, %189, %190, %191, %192, %193, %194 in 0 : vector<1x8x16xf32>, vector<1x8x16xf32>, vector<1x8x16xf32>, vector<1x8x16xf32>, vector<1x8x16xf32>, vector<1x8x16xf32>, vector<1x8x16xf32>, vector<1x8x16xf32> -> vector<8x8x16xf32>
    %196 = vector.extract_strided_slice %176 {offsets = [0, 0], sizes = [6, 128], strides = [1, 1]} : vector<12x128xf32> to vector<6x128xf32>
    %197 = vector.extract_strided_slice %196 {offsets = [0, 0], sizes = [6, 16], strides = [1, 1]} : vector<6x128xf32> to vector<6x16xf32>
    %198 = vector.extract_strided_slice %196 {offsets = [0, 16], sizes = [6, 16], strides = [1, 1]} : vector<6x128xf32> to vector<6x16xf32>
    %199 = vector.extract_strided_slice %196 {offsets = [0, 32], sizes = [6, 16], strides = [1, 1]} : vector<6x128xf32> to vector<6x16xf32>
    %200 = vector.extract_strided_slice %196 {offsets = [0, 48], sizes = [6, 16], strides = [1, 1]} : vector<6x128xf32> to vector<6x16xf32>
    %201 = vector.extract_strided_slice %176 {offsets = [6, 0], sizes = [6, 128], strides = [1, 1]} : vector<12x128xf32> to vector<6x128xf32>
    %202 = vector.extract_strided_slice %201 {offsets = [0, 0], sizes = [6, 16], strides = [1, 1]} : vector<6x128xf32> to vector<6x16xf32>
    %203 = vector.extract_strided_slice %201 {offsets = [0, 16], sizes = [6, 16], strides = [1, 1]} : vector<6x128xf32> to vector<6x16xf32>
    %204 = vector.extract_strided_slice %201 {offsets = [0, 32], sizes = [6, 16], strides = [1, 1]} : vector<6x128xf32> to vector<6x16xf32>
    %205 = vector.extract_strided_slice %201 {offsets = [0, 48], sizes = [6, 16], strides = [1, 1]} : vector<6x128xf32> to vector<6x16xf32>
    %206 = vector.shape_cast %197 : vector<6x16xf32> to vector<1x6x16xf32>
    %207 = vector.shape_cast %198 : vector<6x16xf32> to vector<1x6x16xf32>
    %208 = vector.shape_cast %199 : vector<6x16xf32> to vector<1x6x16xf32>
    %209 = vector.shape_cast %200 : vector<6x16xf32> to vector<1x6x16xf32>
    %210 = vector.shape_cast %202 : vector<6x16xf32> to vector<1x6x16xf32>
    %211 = vector.shape_cast %203 : vector<6x16xf32> to vector<1x6x16xf32>
    %212 = vector.shape_cast %204 : vector<6x16xf32> to vector<1x6x16xf32>
    %213 = vector.shape_cast %205 : vector<6x16xf32> to vector<1x6x16xf32>
    %214 = tpu.concatenate %206, %207, %208, %209, %210, %211, %212, %213 in 0 : vector<1x6x16xf32>, vector<1x6x16xf32>, vector<1x6x16xf32>, vector<1x6x16xf32>, vector<1x6x16xf32>, vector<1x6x16xf32>, vector<1x6x16xf32>, vector<1x6x16xf32> -> vector<8x6x16xf32>
    %215 = vector.extract_strided_slice %176 {offsets = [0, 0], sizes = [6, 128], strides = [1, 1]} : vector<12x128xf32> to vector<6x128xf32>
    %216 = vector.extract_strided_slice %215 {offsets = [0, 64], sizes = [6, 16], strides = [1, 1]} : vector<6x128xf32> to vector<6x16xf32>
    %217 = vector.extract_strided_slice %215 {offsets = [0, 80], sizes = [6, 16], strides = [1, 1]} : vector<6x128xf32> to vector<6x16xf32>
    %218 = vector.extract_strided_slice %215 {offsets = [0, 96], sizes = [6, 16], strides = [1, 1]} : vector<6x128xf32> to vector<6x16xf32>
    %219 = vector.extract_strided_slice %215 {offsets = [0, 112], sizes = [6, 16], strides = [1, 1]} : vector<6x128xf32> to vector<6x16xf32>
    %220 = vector.extract_strided_slice %176 {offsets = [6, 0], sizes = [6, 128], strides = [1, 1]} : vector<12x128xf32> to vector<6x128xf32>
    %221 = vector.extract_strided_slice %220 {offsets = [0, 64], sizes = [6, 16], strides = [1, 1]} : vector<6x128xf32> to vector<6x16xf32>
    %222 = vector.extract_strided_slice %220 {offsets = [0, 80], sizes = [6, 16], strides = [1, 1]} : vector<6x128xf32> to vector<6x16xf32>
    %223 = vector.extract_strided_slice %220 {offsets = [0, 96], sizes = [6, 16], strides = [1, 1]} : vector<6x128xf32> to vector<6x16xf32>
    %224 = vector.extract_strided_slice %220 {offsets = [0, 112], sizes = [6, 16], strides = [1, 1]} : vector<6x128xf32> to vector<6x16xf32>
    %225 = vector.shape_cast %216 : vector<6x16xf32> to vector<1x6x16xf32>
    %226 = vector.shape_cast %217 : vector<6x16xf32> to vector<1x6x16xf32>
    %227 = vector.shape_cast %218 : vector<6x16xf32> to vector<1x6x16xf32>
    %228 = vector.shape_cast %219 : vector<6x16xf32> to vector<1x6x16xf32>
    %229 = vector.shape_cast %221 : vector<6x16xf32> to vector<1x6x16xf32>
    %230 = vector.shape_cast %222 : vector<6x16xf32> to vector<1x6x16xf32>
    %231 = vector.shape_cast %223 : vector<6x16xf32> to vector<1x6x16xf32>
    %232 = vector.shape_cast %224 : vector<6x16xf32> to vector<1x6x16xf32>
    %233 = tpu.concatenate %225, %226, %227, %228, %229, %230, %231, %232 in 0 : vector<1x6x16xf32>, vector<1x6x16xf32>, vector<1x6x16xf32>, vector<1x6x16xf32>, vector<1x6x16xf32>, vector<1x6x16xf32>, vector<1x6x16xf32>, vector<1x6x16xf32> -> vector<8x6x16xf32>
    "tpu.trace_start"() <{level = 10 : i32, message = "zqd,zkd->zqk"}> : () -> ()
    %cst_53 = arith.constant dense<0.000000e+00> : vector<8x8x6xf32>
    %234 = tpu.matmul %195, %214, %cst_53 {dimension_numbers = #tpu.dot_dimension_numbers<[2], [2], [1], [1], [0, 0, 0, 1, 1, 1], [0], [0]>} : vector<8x8x16xf32>, vector<8x6x16xf32>, vector<8x8x6xf32> -> vector<8x8x6xf32>
    "tpu.trace_stop"() : () -> ()
    %cst_54 = arith.constant 2.500000e-01 : f32
    %235 = vector.broadcast %cst_54 : f32 to vector<8x8x6xf32>
    %236 = arith.mulf %234, %235 : vector<8x8x6xf32>
    %cst_55 = arith.constant dense<0xFF800000> : vector<8x8xf32>
    %237 = vector.multi_reduction <maximumf>, %236, %cst_55 [2] : vector<8x8x6xf32> to vector<8x8xf32>
    %238 = vector.shape_cast %237 : vector<8x8xf32> to vector<8x8x1xf32>
    %239 = vector.broadcast %238 : vector<8x8x1xf32> to vector<8x8x6xf32>
    %240 = arith.subf %236, %239 : vector<8x8x6xf32>
    %241 = math.exp %240 : vector<8x8x6xf32>
    %cst_56 = arith.constant dense<0.000000e+00> : vector<8x8xf32>
    %242 = vector.multi_reduction <add>, %241, %cst_56 [2] : vector<8x8x6xf32> to vector<8x8xf32>
    %243 = vector.shape_cast %242 : vector<8x8xf32> to vector<8x8x1xf32>
    %244 = tpu.reciprocal %243 {approx = true} : vector<8x8x1xf32> -> vector<8x8x1xf32>
    %245 = vector.broadcast %244 : vector<8x8x1xf32> to vector<8x8x6xf32>
    %246 = arith.mulf %241, %245 : vector<8x8x6xf32>
    "tpu.trace_start"() <{level = 10 : i32, message = "zqk,zkd->zqd"}> : () -> ()
    %cst_57 = arith.constant dense<0.000000e+00> : vector<8x8x16xf32>
    %247 = tpu.matmul %246, %233, %cst_57 {dimension_numbers = #tpu.dot_dimension_numbers<[2], [1], [1], [2], [0, 0, 0, 1, 1, 2], [0], [0]>} : vector<8x8x6xf32>, vector<8x6x16xf32>, vector<8x8x16xf32> -> vector<8x8x16xf32>
    "tpu.trace_stop"() : () -> ()
    %248 = vector.extract_strided_slice %247 {offsets = [0, 0, 0], sizes = [1, 8, 16], strides = [1, 1, 1]} : vector<8x8x16xf32> to vector<1x8x16xf32>
    %249 = vector.shape_cast %248 : vector<1x8x16xf32> to vector<8x16xf32>
    %250 = vector.extract_strided_slice %247 {offsets = [1, 0, 0], sizes = [1, 8, 16], strides = [1, 1, 1]} : vector<8x8x16xf32> to vector<1x8x16xf32>
    %251 = vector.shape_cast %250 : vector<1x8x16xf32> to vector<8x16xf32>
    %252 = vector.extract_strided_slice %247 {offsets = [2, 0, 0], sizes = [1, 8, 16], strides = [1, 1, 1]} : vector<8x8x16xf32> to vector<1x8x16xf32>
    %253 = vector.shape_cast %252 : vector<1x8x16xf32> to vector<8x16xf32>
    %254 = vector.extract_strided_slice %247 {offsets = [3, 0, 0], sizes = [1, 8, 16], strides = [1, 1, 1]} : vector<8x8x16xf32> to vector<1x8x16xf32>
    %255 = vector.shape_cast %254 : vector<1x8x16xf32> to vector<8x16xf32>
    %256 = tpu.concatenate %249, %251, %253, %255 in 1 : vector<8x16xf32>, vector<8x16xf32>, vector<8x16xf32>, vector<8x16xf32> -> vector<8x64xf32>
    %257 = vector.extract_strided_slice %247 {offsets = [4, 0, 0], sizes = [1, 8, 16], strides = [1, 1, 1]} : vector<8x8x16xf32> to vector<1x8x16xf32>
    %258 = vector.shape_cast %257 : vector<1x8x16xf32> to vector<8x16xf32>
    %259 = vector.extract_strided_slice %247 {offsets = [5, 0, 0], sizes = [1, 8, 16], strides = [1, 1, 1]} : vector<8x8x16xf32> to vector<1x8x16xf32>
    %260 = vector.shape_cast %259 : vector<1x8x16xf32> to vector<8x16xf32>
    %261 = vector.extract_strided_slice %247 {offsets = [6, 0, 0], sizes = [1, 8, 16], strides = [1, 1, 1]} : vector<8x8x16xf32> to vector<1x8x16xf32>
    %262 = vector.shape_cast %261 : vector<1x8x16xf32> to vector<8x16xf32>
    %263 = vector.extract_strided_slice %247 {offsets = [7, 0, 0], sizes = [1, 8, 16], strides = [1, 1, 1]} : vector<8x8x16xf32> to vector<1x8x16xf32>
    %264 = vector.shape_cast %263 : vector<1x8x16xf32> to vector<8x16xf32>
    %265 = tpu.concatenate %258, %260, %262, %264 in 1 : vector<8x16xf32>, vector<8x16xf32>, vector<8x16xf32>, vector<8x16xf32> -> vector<8x64xf32>
    %266 = tpu.concatenate %256, %265 in 0 : vector<8x64xf32>, vector<8x64xf32> -> vector<16x64xf32>
    %c0_58 = arith.constant 0 : index
    %c0_59 = arith.constant 0 : index
    %c0_60 = arith.constant 0 : index
    %267 = vector.load %arg12[%c0_58, %c0_59, %c0_60] : memref<2x64x64xf32, #tpu.memory_space<vmem>>, vector<1x64x64xf32>
    %268 = vector.shape_cast %267 : vector<1x64x64xf32> to vector<64x64xf32>
    %cst_61 = arith.constant dense<0.000000e+00> : vector<16x64xf32>
    %269 = tpu.matmul %266, %268, %cst_61 {dimension_numbers = #tpu.dot_dimension_numbers<[1], [0], [0], [1], [0, 0, 1, 1], [], []>} : vector<16x64xf32>, vector<64x64xf32>, vector<16x64xf32> -> vector<16x64xf32>
    %c0_62 = arith.constant 0 : index
    %c0_63 = arith.constant 0 : index
    %c0_64 = arith.constant 0 : index
    %270 = vector.load %arg13[%c0_62, %c0_63, %c0_64] : memref<2x1x64xf32, #tpu.memory_space<vmem>>, vector<1x1x64xf32>
    %271 = vector.shape_cast %270 : vector<1x1x64xf32> to vector<1x64xf32>
    %272 = vector.broadcast %271 : vector<1x64xf32> to vector<16x64xf32>
    %273 = arith.addf %269, %272 : vector<16x64xf32>
    %274 = arith.addf %162, %273 : vector<16x64xf32>
    %275 = vector.extract_strided_slice %30 {offsets = [1, 0], sizes = [1, 64], strides = [1, 1]} : vector<3x64xf32> to vector<1x64xf32>
    %276 = vector.extract_strided_slice %32 {offsets = [1, 0], sizes = [1, 64], strides = [1, 1]} : vector<3x64xf32> to vector<1x64xf32>
    %cst_65 = arith.constant dense<0.000000e+00> : vector<16xf32>
    %277 = vector.multi_reduction <add>, %274, %cst_65 [1] : vector<16x64xf32> to vector<16xf32>
    %278 = vector.shape_cast %277 : vector<16xf32> to vector<16x1xf32>
    %cst_66 = arith.constant 1.562500e-02 : f32
    %279 = vector.broadcast %cst_66 : f32 to vector<16x1xf32>
    %280 = arith.mulf %278, %279 : vector<16x1xf32>
    %281 = arith.mulf %274, %274 : vector<16x64xf32>
    %cst_67 = arith.constant dense<0.000000e+00> : vector<16xf32>
    %282 = vector.multi_reduction <add>, %281, %cst_67 [1] : vector<16x64xf32> to vector<16xf32>
    %283 = vector.shape_cast %282 : vector<16xf32> to vector<16x1xf32>
    %cst_68 = arith.constant 1.562500e-02 : f32
    %284 = vector.broadcast %cst_68 : f32 to vector<16x1xf32>
    %285 = arith.mulf %283, %284 : vector<16x1xf32>
    %286 = arith.mulf %280, %280 : vector<16x1xf32>
    %287 = arith.subf %285, %286 : vector<16x1xf32>
    %288 = vector.broadcast %280 : vector<16x1xf32> to vector<16x64xf32>
    %289 = arith.subf %274, %288 : vector<16x64xf32>
    %cst_69 = arith.constant 9.99999974E-6 : f32
    %290 = vector.broadcast %cst_69 : f32 to vector<16x1xf32>
    %291 = arith.addf %287, %290 : vector<16x1xf32>
    %292 = math.rsqrt %291 : vector<16x1xf32>
    %293 = vector.broadcast %292 : vector<16x1xf32> to vector<16x64xf32>
    %294 = arith.mulf %289, %293 : vector<16x64xf32>
    %295 = vector.broadcast %275 : vector<1x64xf32> to vector<16x64xf32>
    %296 = arith.mulf %294, %295 : vector<16x64xf32>
    %297 = vector.broadcast %276 : vector<1x64xf32> to vector<16x64xf32>
    %298 = arith.addf %296, %297 : vector<16x64xf32>
    %c0_70 = arith.constant 0 : index
    %c0_71 = arith.constant 0 : index
    %c0_72 = arith.constant 0 : index
    %299 = vector.load %arg16[%c0_70, %c0_71, %c0_72] : memref<2x64x256xf32, #tpu.memory_space<vmem>>, vector<1x64x256xf32>
    %300 = vector.shape_cast %299 : vector<1x64x256xf32> to vector<64x256xf32>
    %cst_73 = arith.constant dense<0.000000e+00> : vector<16x256xf32>
    %301 = tpu.matmul %298, %300, %cst_73 {dimension_numbers = #tpu.dot_dimension_numbers<[1], [0], [0], [1], [0, 0, 1, 1], [], []>} : vector<16x64xf32>, vector<64x256xf32>, vector<16x256xf32> -> vector<16x256xf32>
    %c0_74 = arith.constant 0 : index
    %c0_75 = arith.constant 0 : index
    %c0_76 = arith.constant 0 : index
    %302 = vector.load %arg17[%c0_74, %c0_75, %c0_76] : memref<2x1x256xf32, #tpu.memory_space<vmem>>, vector<1x1x256xf32>
    %303 = vector.shape_cast %302 : vector<1x1x256xf32> to vector<1x256xf32>
    %304 = vector.broadcast %303 : vector<1x256xf32> to vector<16x256xf32>
    %305 = arith.addf %301, %304 : vector<16x256xf32>
    %306 = arith.mulf %305, %305 : vector<16x256xf32>
    %307 = arith.mulf %305, %306 : vector<16x256xf32>
    %cst_77 = arith.constant 4.471500e-02 : f32
    %308 = vector.broadcast %cst_77 : f32 to vector<16x256xf32>
    %309 = arith.mulf %308, %307 : vector<16x256xf32>
    %310 = arith.addf %305, %309 : vector<16x256xf32>
    %cst_78 = arith.constant 0.797884583 : f32
    %311 = vector.broadcast %cst_78 : f32 to vector<16x256xf32>
    %312 = arith.mulf %311, %310 : vector<16x256xf32>
    %313 = math.tanh %312 : vector<16x256xf32>
    %cst_79 = arith.constant 1.000000e+00 : f32
    %314 = vector.broadcast %cst_79 : f32 to vector<16x256xf32>
    %315 = arith.addf %314, %313 : vector<16x256xf32>
    %cst_80 = arith.constant 5.000000e-01 : f32
    %316 = vector.broadcast %cst_80 : f32 to vector<16x256xf32>
    %317 = arith.mulf %316, %315 : vector<16x256xf32>
    %318 = arith.mulf %305, %317 : vector<16x256xf32>
    %c0_81 = arith.constant 0 : index
    %c0_82 = arith.constant 0 : index
    %c0_83 = arith.constant 0 : index
    %319 = vector.load %arg18[%c0_81, %c0_82, %c0_83] : memref<2x256x64xf32, #tpu.memory_space<vmem>>, vector<1x256x64xf32>
    %320 = vector.shape_cast %319 : vector<1x256x64xf32> to vector<256x64xf32>
    %cst_84 = arith.constant dense<0.000000e+00> : vector<16x64xf32>
    %321 = tpu.matmul %318, %320, %cst_84 {dimension_numbers = #tpu.dot_dimension_numbers<[1], [0], [0], [1], [0, 0, 1, 1], [], []>} : vector<16x256xf32>, vector<256x64xf32>, vector<16x64xf32> -> vector<16x64xf32>
    %c0_85 = arith.constant 0 : index
    %c0_86 = arith.constant 0 : index
    %c0_87 = arith.constant 0 : index
    %322 = vector.load %arg19[%c0_85, %c0_86, %c0_87] : memref<2x1x64xf32, #tpu.memory_space<vmem>>, vector<1x1x64xf32>
    %323 = vector.shape_cast %322 : vector<1x1x64xf32> to vector<1x64xf32>
    %324 = vector.broadcast %323 : vector<1x64xf32> to vector<16x64xf32>
    %325 = arith.addf %321, %324 : vector<16x64xf32>
    %326 = arith.addf %298, %325 : vector<16x64xf32>
    %327 = vector.extract_strided_slice %30 {offsets = [2, 0], sizes = [1, 64], strides = [1, 1]} : vector<3x64xf32> to vector<1x64xf32>
    %328 = vector.extract_strided_slice %32 {offsets = [2, 0], sizes = [1, 64], strides = [1, 1]} : vector<3x64xf32> to vector<1x64xf32>
    %cst_88 = arith.constant dense<0.000000e+00> : vector<16xf32>
    %329 = vector.multi_reduction <add>, %326, %cst_88 [1] : vector<16x64xf32> to vector<16xf32>
    %330 = vector.shape_cast %329 : vector<16xf32> to vector<16x1xf32>
    %cst_89 = arith.constant 1.562500e-02 : f32
    %331 = vector.broadcast %cst_89 : f32 to vector<16x1xf32>
    %332 = arith.mulf %330, %331 : vector<16x1xf32>
    %333 = arith.mulf %326, %326 : vector<16x64xf32>
    %cst_90 = arith.constant dense<0.000000e+00> : vector<16xf32>
    %334 = vector.multi_reduction <add>, %333, %cst_90 [1] : vector<16x64xf32> to vector<16xf32>
    %335 = vector.shape_cast %334 : vector<16xf32> to vector<16x1xf32>
    %cst_91 = arith.constant 1.562500e-02 : f32
    %336 = vector.broadcast %cst_91 : f32 to vector<16x1xf32>
    %337 = arith.mulf %335, %336 : vector<16x1xf32>
    %338 = arith.mulf %332, %332 : vector<16x1xf32>
    %339 = arith.subf %337, %338 : vector<16x1xf32>
    %340 = vector.broadcast %332 : vector<16x1xf32> to vector<16x64xf32>
    %341 = arith.subf %326, %340 : vector<16x64xf32>
    %cst_92 = arith.constant 9.99999974E-6 : f32
    %342 = vector.broadcast %cst_92 : f32 to vector<16x1xf32>
    %343 = arith.addf %339, %342 : vector<16x1xf32>
    %344 = math.rsqrt %343 : vector<16x1xf32>
    %345 = vector.broadcast %344 : vector<16x1xf32> to vector<16x64xf32>
    %346 = arith.mulf %341, %345 : vector<16x64xf32>
    %347 = vector.broadcast %327 : vector<1x64xf32> to vector<16x64xf32>
    %348 = arith.mulf %346, %347 : vector<16x64xf32>
    %349 = vector.broadcast %328 : vector<1x64xf32> to vector<16x64xf32>
    %350 = arith.addf %348, %349 : vector<16x64xf32>
    %c1 = arith.constant 1 : index
    %c0_93 = arith.constant 0 : index
    %c0_94 = arith.constant 0 : index
    %351 = vector.load %arg14[%c1, %c0_93, %c0_94] : memref<2x3x64xf32, #tpu.memory_space<vmem>>, vector<1x3x64xf32>
    %352 = vector.shape_cast %351 : vector<1x3x64xf32> to vector<3x64xf32>
    %c1_95 = arith.constant 1 : index
    %c0_96 = arith.constant 0 : index
    %c0_97 = arith.constant 0 : index
    %353 = vector.load %arg15[%c1_95, %c0_96, %c0_97] : memref<2x3x64xf32, #tpu.memory_space<vmem>>, vector<1x3x64xf32>
    %354 = vector.shape_cast %353 : vector<1x3x64xf32> to vector<3x64xf32>
    %c1_98 = arith.constant 1 : index
    %c0_99 = arith.constant 0 : index
    %c0_100 = arith.constant 0 : index
    %355 = vector.load %arg4[%c1_98, %c0_99, %c0_100] : memref<2x64x192xf32, #tpu.memory_space<vmem>>, vector<1x64x192xf32>
    %356 = vector.shape_cast %355 : vector<1x64x192xf32> to vector<64x192xf32>
    %cst_101 = arith.constant dense<0.000000e+00> : vector<16x192xf32>
    %357 = tpu.matmul %350, %356, %cst_101 {dimension_numbers = #tpu.dot_dimension_numbers<[1], [0], [0], [1], [0, 0, 1, 1], [], []>} : vector<16x64xf32>, vector<64x192xf32>, vector<16x192xf32> -> vector<16x192xf32>
    %c1_102 = arith.constant 1 : index
    %c0_103 = arith.constant 0 : index
    %c0_104 = arith.constant 0 : index
    %358 = vector.load %arg5[%c1_102, %c0_103, %c0_104] : memref<2x1x192xf32, #tpu.memory_space<vmem>>, vector<1x1x192xf32>
    %359 = vector.shape_cast %358 : vector<1x1x192xf32> to vector<1x192xf32>
    %360 = vector.broadcast %359 : vector<1x192xf32> to vector<16x192xf32>
    %361 = arith.addf %357, %360 : vector<16x192xf32>
    %362 = vector.extract_strided_slice %361 {offsets = [0, 0], sizes = [8, 192], strides = [1, 1]} : vector<16x192xf32> to vector<8x192xf32>
    %363 = vector.extract_strided_slice %362 {offsets = [0, 0], sizes = [8, 16], strides = [1, 1]} : vector<8x192xf32> to vector<8x16xf32>
    %364 = vector.extract_strided_slice %362 {offsets = [0, 16], sizes = [8, 16], strides = [1, 1]} : vector<8x192xf32> to vector<8x16xf32>
    %365 = vector.extract_strided_slice %362 {offsets = [0, 32], sizes = [8, 16], strides = [1, 1]} : vector<8x192xf32> to vector<8x16xf32>
    %366 = vector.extract_strided_slice %362 {offsets = [0, 48], sizes = [8, 16], strides = [1, 1]} : vector<8x192xf32> to vector<8x16xf32>
    %367 = vector.extract_strided_slice %361 {offsets = [8, 0], sizes = [8, 192], strides = [1, 1]} : vector<16x192xf32> to vector<8x192xf32>
    %368 = vector.extract_strided_slice %367 {offsets = [0, 0], sizes = [8, 16], strides = [1, 1]} : vector<8x192xf32> to vector<8x16xf32>
    %369 = vector.extract_strided_slice %367 {offsets = [0, 16], sizes = [8, 16], strides = [1, 1]} : vector<8x192xf32> to vector<8x16xf32>
    %370 = vector.extract_strided_slice %367 {offsets = [0, 32], sizes = [8, 16], strides = [1, 1]} : vector<8x192xf32> to vector<8x16xf32>
    %371 = vector.extract_strided_slice %367 {offsets = [0, 48], sizes = [8, 16], strides = [1, 1]} : vector<8x192xf32> to vector<8x16xf32>
    %372 = vector.shape_cast %363 : vector<8x16xf32> to vector<1x8x16xf32>
    %373 = vector.shape_cast %364 : vector<8x16xf32> to vector<1x8x16xf32>
    %374 = vector.shape_cast %365 : vector<8x16xf32> to vector<1x8x16xf32>
    %375 = vector.shape_cast %366 : vector<8x16xf32> to vector<1x8x16xf32>
    %376 = vector.shape_cast %368 : vector<8x16xf32> to vector<1x8x16xf32>
    %377 = vector.shape_cast %369 : vector<8x16xf32> to vector<1x8x16xf32>
    %378 = vector.shape_cast %370 : vector<8x16xf32> to vector<1x8x16xf32>
    %379 = vector.shape_cast %371 : vector<8x16xf32> to vector<1x8x16xf32>
    %380 = tpu.concatenate %372, %373, %374, %375, %376, %377, %378, %379 in 0 : vector<1x8x16xf32>, vector<1x8x16xf32>, vector<1x8x16xf32>, vector<1x8x16xf32>, vector<1x8x16xf32>, vector<1x8x16xf32>, vector<1x8x16xf32>, vector<1x8x16xf32> -> vector<8x8x16xf32>
    %381 = vector.extract_strided_slice %361 {offsets = [0, 0], sizes = [8, 192], strides = [1, 1]} : vector<16x192xf32> to vector<8x192xf32>
    %382 = vector.extract_strided_slice %381 {offsets = [0, 64], sizes = [8, 16], strides = [1, 1]} : vector<8x192xf32> to vector<8x16xf32>
    %383 = vector.extract_strided_slice %381 {offsets = [0, 80], sizes = [8, 16], strides = [1, 1]} : vector<8x192xf32> to vector<8x16xf32>
    %384 = vector.extract_strided_slice %381 {offsets = [0, 96], sizes = [8, 16], strides = [1, 1]} : vector<8x192xf32> to vector<8x16xf32>
    %385 = vector.extract_strided_slice %381 {offsets = [0, 112], sizes = [8, 16], strides = [1, 1]} : vector<8x192xf32> to vector<8x16xf32>
    %386 = vector.extract_strided_slice %361 {offsets = [8, 0], sizes = [8, 192], strides = [1, 1]} : vector<16x192xf32> to vector<8x192xf32>
    %387 = vector.extract_strided_slice %386 {offsets = [0, 64], sizes = [8, 16], strides = [1, 1]} : vector<8x192xf32> to vector<8x16xf32>
    %388 = vector.extract_strided_slice %386 {offsets = [0, 80], sizes = [8, 16], strides = [1, 1]} : vector<8x192xf32> to vector<8x16xf32>
    %389 = vector.extract_strided_slice %386 {offsets = [0, 96], sizes = [8, 16], strides = [1, 1]} : vector<8x192xf32> to vector<8x16xf32>
    %390 = vector.extract_strided_slice %386 {offsets = [0, 112], sizes = [8, 16], strides = [1, 1]} : vector<8x192xf32> to vector<8x16xf32>
    %391 = vector.shape_cast %382 : vector<8x16xf32> to vector<1x8x16xf32>
    %392 = vector.shape_cast %383 : vector<8x16xf32> to vector<1x8x16xf32>
    %393 = vector.shape_cast %384 : vector<8x16xf32> to vector<1x8x16xf32>
    %394 = vector.shape_cast %385 : vector<8x16xf32> to vector<1x8x16xf32>
    %395 = vector.shape_cast %387 : vector<8x16xf32> to vector<1x8x16xf32>
    %396 = vector.shape_cast %388 : vector<8x16xf32> to vector<1x8x16xf32>
    %397 = vector.shape_cast %389 : vector<8x16xf32> to vector<1x8x16xf32>
    %398 = vector.shape_cast %390 : vector<8x16xf32> to vector<1x8x16xf32>
    %399 = tpu.concatenate %391, %392, %393, %394, %395, %396, %397, %398 in 0 : vector<1x8x16xf32>, vector<1x8x16xf32>, vector<1x8x16xf32>, vector<1x8x16xf32>, vector<1x8x16xf32>, vector<1x8x16xf32>, vector<1x8x16xf32>, vector<1x8x16xf32> -> vector<8x8x16xf32>
    %400 = vector.extract_strided_slice %361 {offsets = [0, 0], sizes = [8, 192], strides = [1, 1]} : vector<16x192xf32> to vector<8x192xf32>
    %401 = vector.extract_strided_slice %400 {offsets = [0, 128], sizes = [8, 16], strides = [1, 1]} : vector<8x192xf32> to vector<8x16xf32>
    %402 = vector.extract_strided_slice %400 {offsets = [0, 144], sizes = [8, 16], strides = [1, 1]} : vector<8x192xf32> to vector<8x16xf32>
    %403 = vector.extract_strided_slice %400 {offsets = [0, 160], sizes = [8, 16], strides = [1, 1]} : vector<8x192xf32> to vector<8x16xf32>
    %404 = vector.extract_strided_slice %400 {offsets = [0, 176], sizes = [8, 16], strides = [1, 1]} : vector<8x192xf32> to vector<8x16xf32>
    %405 = vector.extract_strided_slice %361 {offsets = [8, 0], sizes = [8, 192], strides = [1, 1]} : vector<16x192xf32> to vector<8x192xf32>
    %406 = vector.extract_strided_slice %405 {offsets = [0, 128], sizes = [8, 16], strides = [1, 1]} : vector<8x192xf32> to vector<8x16xf32>
    %407 = vector.extract_strided_slice %405 {offsets = [0, 144], sizes = [8, 16], strides = [1, 1]} : vector<8x192xf32> to vector<8x16xf32>
    %408 = vector.extract_strided_slice %405 {offsets = [0, 160], sizes = [8, 16], strides = [1, 1]} : vector<8x192xf32> to vector<8x16xf32>
    %409 = vector.extract_strided_slice %405 {offsets = [0, 176], sizes = [8, 16], strides = [1, 1]} : vector<8x192xf32> to vector<8x16xf32>
    %410 = vector.shape_cast %401 : vector<8x16xf32> to vector<1x8x16xf32>
    %411 = vector.shape_cast %402 : vector<8x16xf32> to vector<1x8x16xf32>
    %412 = vector.shape_cast %403 : vector<8x16xf32> to vector<1x8x16xf32>
    %413 = vector.shape_cast %404 : vector<8x16xf32> to vector<1x8x16xf32>
    %414 = vector.shape_cast %406 : vector<8x16xf32> to vector<1x8x16xf32>
    %415 = vector.shape_cast %407 : vector<8x16xf32> to vector<1x8x16xf32>
    %416 = vector.shape_cast %408 : vector<8x16xf32> to vector<1x8x16xf32>
    %417 = vector.shape_cast %409 : vector<8x16xf32> to vector<1x8x16xf32>
    %418 = tpu.concatenate %410, %411, %412, %413, %414, %415, %416, %417 in 0 : vector<1x8x16xf32>, vector<1x8x16xf32>, vector<1x8x16xf32>, vector<1x8x16xf32>, vector<1x8x16xf32>, vector<1x8x16xf32>, vector<1x8x16xf32>, vector<1x8x16xf32> -> vector<8x8x16xf32>
    "tpu.trace_start"() <{level = 10 : i32, message = "zqd,zkd->zqk"}> : () -> ()
    %cst_105 = arith.constant dense<0.000000e+00> : vector<8x8x8xf32>
    %419 = tpu.matmul %380, %399, %cst_105 {dimension_numbers = #tpu.dot_dimension_numbers<[2], [2], [1], [1], [0, 0, 0, 1, 1, 1], [0], [0]>} : vector<8x8x16xf32>, vector<8x8x16xf32>, vector<8x8x8xf32> -> vector<8x8x8xf32>
    "tpu.trace_stop"() : () -> ()
    %cst_106 = arith.constant 2.500000e-01 : f32
    %420 = vector.broadcast %cst_106 : f32 to vector<8x8x8xf32>
    %421 = arith.mulf %419, %420 : vector<8x8x8xf32>
    %422 = arith.addf %421, %28 : vector<8x8x8xf32>
    %cst_107 = arith.constant dense<0xFF800000> : vector<8x8xf32>
    %423 = vector.multi_reduction <maximumf>, %422, %cst_107 [2] : vector<8x8x8xf32> to vector<8x8xf32>
    %424 = vector.shape_cast %423 : vector<8x8xf32> to vector<8x8x1xf32>
    %425 = vector.broadcast %424 : vector<8x8x1xf32> to vector<8x8x8xf32>
    %426 = arith.subf %422, %425 : vector<8x8x8xf32>
    %427 = math.exp %426 : vector<8x8x8xf32>
    %cst_108 = arith.constant dense<0.000000e+00> : vector<8x8xf32>
    %428 = vector.multi_reduction <add>, %427, %cst_108 [2] : vector<8x8x8xf32> to vector<8x8xf32>
    %429 = vector.shape_cast %428 : vector<8x8xf32> to vector<8x8x1xf32>
    %430 = tpu.reciprocal %429 {approx = true} : vector<8x8x1xf32> -> vector<8x8x1xf32>
    %431 = vector.broadcast %430 : vector<8x8x1xf32> to vector<8x8x8xf32>
    %432 = arith.mulf %427, %431 : vector<8x8x8xf32>
    "tpu.trace_start"() <{level = 10 : i32, message = "zqk,zkd->zqd"}> : () -> ()
    %cst_109 = arith.constant dense<0.000000e+00> : vector<8x8x16xf32>
    %433 = tpu.matmul %432, %418, %cst_109 {dimension_numbers = #tpu.dot_dimension_numbers<[2], [1], [1], [2], [0, 0, 0, 1, 1, 2], [0], [0]>} : vector<8x8x8xf32>, vector<8x8x16xf32>, vector<8x8x16xf32> -> vector<8x8x16xf32>
    "tpu.trace_stop"() : () -> ()
    %434 = vector.extract_strided_slice %433 {offsets = [0, 0, 0], sizes = [1, 8, 16], strides = [1, 1, 1]} : vector<8x8x16xf32> to vector<1x8x16xf32>
    %435 = vector.shape_cast %434 : vector<1x8x16xf32> to vector<8x16xf32>
    %436 = vector.extract_strided_slice %433 {offsets = [1, 0, 0], sizes = [1, 8, 16], strides = [1, 1, 1]} : vector<8x8x16xf32> to vector<1x8x16xf32>
    %437 = vector.shape_cast %436 : vector<1x8x16xf32> to vector<8x16xf32>
    %438 = vector.extract_strided_slice %433 {offsets = [2, 0, 0], sizes = [1, 8, 16], strides = [1, 1, 1]} : vector<8x8x16xf32> to vector<1x8x16xf32>
    %439 = vector.shape_cast %438 : vector<1x8x16xf32> to vector<8x16xf32>
    %440 = vector.extract_strided_slice %433 {offsets = [3, 0, 0], sizes = [1, 8, 16], strides = [1, 1, 1]} : vector<8x8x16xf32> to vector<1x8x16xf32>
    %441 = vector.shape_cast %440 : vector<1x8x16xf32> to vector<8x16xf32>
    %442 = tpu.concatenate %435, %437, %439, %441 in 1 : vector<8x16xf32>, vector<8x16xf32>, vector<8x16xf32>, vector<8x16xf32> -> vector<8x64xf32>
    %443 = vector.extract_strided_slice %433 {offsets = [4, 0, 0], sizes = [1, 8, 16], strides = [1, 1, 1]} : vector<8x8x16xf32> to vector<1x8x16xf32>
    %444 = vector.shape_cast %443 : vector<1x8x16xf32> to vector<8x16xf32>
    %445 = vector.extract_strided_slice %433 {offsets = [5, 0, 0], sizes = [1, 8, 16], strides = [1, 1, 1]} : vector<8x8x16xf32> to vector<1x8x16xf32>
    %446 = vector.shape_cast %445 : vector<1x8x16xf32> to vector<8x16xf32>
    %447 = vector.extract_strided_slice %433 {offsets = [6, 0, 0], sizes = [1, 8, 16], strides = [1, 1, 1]} : vector<8x8x16xf32> to vector<1x8x16xf32>
    %448 = vector.shape_cast %447 : vector<1x8x16xf32> to vector<8x16xf32>
    %449 = vector.extract_strided_slice %433 {offsets = [7, 0, 0], sizes = [1, 8, 16], strides = [1, 1, 1]} : vector<8x8x16xf32> to vector<1x8x16xf32>
    %450 = vector.shape_cast %449 : vector<1x8x16xf32> to vector<8x16xf32>
    %451 = tpu.concatenate %444, %446, %448, %450 in 1 : vector<8x16xf32>, vector<8x16xf32>, vector<8x16xf32>, vector<8x16xf32> -> vector<8x64xf32>
    %452 = tpu.concatenate %442, %451 in 0 : vector<8x64xf32>, vector<8x64xf32> -> vector<16x64xf32>
    %c1_110 = arith.constant 1 : index
    %c0_111 = arith.constant 0 : index
    %c0_112 = arith.constant 0 : index
    %453 = vector.load %arg6[%c1_110, %c0_111, %c0_112] : memref<2x64x64xf32, #tpu.memory_space<vmem>>, vector<1x64x64xf32>
    %454 = vector.shape_cast %453 : vector<1x64x64xf32> to vector<64x64xf32>
    %cst_113 = arith.constant dense<0.000000e+00> : vector<16x64xf32>
    %455 = tpu.matmul %452, %454, %cst_113 {dimension_numbers = #tpu.dot_dimension_numbers<[1], [0], [0], [1], [0, 0, 1, 1], [], []>} : vector<16x64xf32>, vector<64x64xf32>, vector<16x64xf32> -> vector<16x64xf32>
    %c1_114 = arith.constant 1 : index
    %c0_115 = arith.constant 0 : index
    %c0_116 = arith.constant 0 : index
    %456 = vector.load %arg7[%c1_114, %c0_115, %c0_116] : memref<2x1x64xf32, #tpu.memory_space<vmem>>, vector<1x1x64xf32>
    %457 = vector.shape_cast %456 : vector<1x1x64xf32> to vector<1x64xf32>
    %458 = vector.broadcast %457 : vector<1x64xf32> to vector<16x64xf32>
    %459 = arith.addf %455, %458 : vector<16x64xf32>
    %460 = arith.addf %350, %459 : vector<16x64xf32>
    %461 = vector.extract_strided_slice %352 {offsets = [0, 0], sizes = [1, 64], strides = [1, 1]} : vector<3x64xf32> to vector<1x64xf32>
    %462 = vector.extract_strided_slice %354 {offsets = [0, 0], sizes = [1, 64], strides = [1, 1]} : vector<3x64xf32> to vector<1x64xf32>
    %cst_117 = arith.constant dense<0.000000e+00> : vector<16xf32>
    %463 = vector.multi_reduction <add>, %460, %cst_117 [1] : vector<16x64xf32> to vector<16xf32>
    %464 = vector.shape_cast %463 : vector<16xf32> to vector<16x1xf32>
    %cst_118 = arith.constant 1.562500e-02 : f32
    %465 = vector.broadcast %cst_118 : f32 to vector<16x1xf32>
    %466 = arith.mulf %464, %465 : vector<16x1xf32>
    %467 = arith.mulf %460, %460 : vector<16x64xf32>
    %cst_119 = arith.constant dense<0.000000e+00> : vector<16xf32>
    %468 = vector.multi_reduction <add>, %467, %cst_119 [1] : vector<16x64xf32> to vector<16xf32>
    %469 = vector.shape_cast %468 : vector<16xf32> to vector<16x1xf32>
    %cst_120 = arith.constant 1.562500e-02 : f32
    %470 = vector.broadcast %cst_120 : f32 to vector<16x1xf32>
    %471 = arith.mulf %469, %470 : vector<16x1xf32>
    %472 = arith.mulf %466, %466 : vector<16x1xf32>
    %473 = arith.subf %471, %472 : vector<16x1xf32>
    %474 = vector.broadcast %466 : vector<16x1xf32> to vector<16x64xf32>
    %475 = arith.subf %460, %474 : vector<16x64xf32>
    %cst_121 = arith.constant 9.99999974E-6 : f32
    %476 = vector.broadcast %cst_121 : f32 to vector<16x1xf32>
    %477 = arith.addf %473, %476 : vector<16x1xf32>
    %478 = math.rsqrt %477 : vector<16x1xf32>
    %479 = vector.broadcast %478 : vector<16x1xf32> to vector<16x64xf32>
    %480 = arith.mulf %475, %479 : vector<16x64xf32>
    %481 = vector.broadcast %461 : vector<1x64xf32> to vector<16x64xf32>
    %482 = arith.mulf %480, %481 : vector<16x64xf32>
    %483 = vector.broadcast %462 : vector<1x64xf32> to vector<16x64xf32>
    %484 = arith.addf %482, %483 : vector<16x64xf32>
    %c1_122 = arith.constant 1 : index
    %c0_123 = arith.constant 0 : index
    %c0_124 = arith.constant 0 : index
    %485 = vector.load %arg8[%c1_122, %c0_123, %c0_124] : memref<2x64x64xf32, #tpu.memory_space<vmem>>, vector<1x64x64xf32>
    %486 = vector.shape_cast %485 : vector<1x64x64xf32> to vector<64x64xf32>
    %cst_125 = arith.constant dense<0.000000e+00> : vector<16x64xf32>
    %487 = tpu.matmul %484, %486, %cst_125 {dimension_numbers = #tpu.dot_dimension_numbers<[1], [0], [0], [1], [0, 0, 1, 1], [], []>} : vector<16x64xf32>, vector<64x64xf32>, vector<16x64xf32> -> vector<16x64xf32>
    %c1_126 = arith.constant 1 : index
    %c0_127 = arith.constant 0 : index
    %c0_128 = arith.constant 0 : index
    %488 = vector.load %arg9[%c1_126, %c0_127, %c0_128] : memref<2x1x64xf32, #tpu.memory_space<vmem>>, vector<1x1x64xf32>
    %489 = vector.shape_cast %488 : vector<1x1x64xf32> to vector<1x64xf32>
    %490 = vector.broadcast %489 : vector<1x64xf32> to vector<16x64xf32>
    %491 = arith.addf %487, %490 : vector<16x64xf32>
    %c1_129 = arith.constant 1 : index
    %c0_130 = arith.constant 0 : index
    %c0_131 = arith.constant 0 : index
    %492 = vector.load %arg10[%c1_129, %c0_130, %c0_131] : memref<2x64x128xf32, #tpu.memory_space<vmem>>, vector<1x64x128xf32>
    %493 = vector.shape_cast %492 : vector<1x64x128xf32> to vector<64x128xf32>
    %cst_132 = arith.constant dense<0.000000e+00> : vector<12x128xf32>
    %494 = tpu.matmul %1, %493, %cst_132 {dimension_numbers = #tpu.dot_dimension_numbers<[1], [0], [0], [1], [0, 0, 1, 1], [], []>} : vector<12x64xf32>, vector<64x128xf32>, vector<12x128xf32> -> vector<12x128xf32>
    %c1_133 = arith.constant 1 : index
    %c0_134 = arith.constant 0 : index
    %c0_135 = arith.constant 0 : index
    %495 = vector.load %arg11[%c1_133, %c0_134, %c0_135] : memref<2x1x128xf32, #tpu.memory_space<vmem>>, vector<1x1x128xf32>
    %496 = vector.shape_cast %495 : vector<1x1x128xf32> to vector<1x128xf32>
    %497 = vector.broadcast %496 : vector<1x128xf32> to vector<12x128xf32>
    %498 = arith.addf %494, %497 : vector<12x128xf32>
    %499 = vector.extract_strided_slice %491 {offsets = [0, 0], sizes = [8, 64], strides = [1, 1]} : vector<16x64xf32> to vector<8x64xf32>
    %500 = vector.extract_strided_slice %499 {offsets = [0, 0], sizes = [8, 16], strides = [1, 1]} : vector<8x64xf32> to vector<8x16xf32>
    %501 = vector.extract_strided_slice %499 {offsets = [0, 16], sizes = [8, 16], strides = [1, 1]} : vector<8x64xf32> to vector<8x16xf32>
    %502 = vector.extract_strided_slice %499 {offsets = [0, 32], sizes = [8, 16], strides = [1, 1]} : vector<8x64xf32> to vector<8x16xf32>
    %503 = vector.extract_strided_slice %499 {offsets = [0, 48], sizes = [8, 16], strides = [1, 1]} : vector<8x64xf32> to vector<8x16xf32>
    %504 = vector.extract_strided_slice %491 {offsets = [8, 0], sizes = [8, 64], strides = [1, 1]} : vector<16x64xf32> to vector<8x64xf32>
    %505 = vector.extract_strided_slice %504 {offsets = [0, 0], sizes = [8, 16], strides = [1, 1]} : vector<8x64xf32> to vector<8x16xf32>
    %506 = vector.extract_strided_slice %504 {offsets = [0, 16], sizes = [8, 16], strides = [1, 1]} : vector<8x64xf32> to vector<8x16xf32>
    %507 = vector.extract_strided_slice %504 {offsets = [0, 32], sizes = [8, 16], strides = [1, 1]} : vector<8x64xf32> to vector<8x16xf32>
    %508 = vector.extract_strided_slice %504 {offsets = [0, 48], sizes = [8, 16], strides = [1, 1]} : vector<8x64xf32> to vector<8x16xf32>
    %509 = vector.shape_cast %500 : vector<8x16xf32> to vector<1x8x16xf32>
    %510 = vector.shape_cast %501 : vector<8x16xf32> to vector<1x8x16xf32>
    %511 = vector.shape_cast %502 : vector<8x16xf32> to vector<1x8x16xf32>
    %512 = vector.shape_cast %503 : vector<8x16xf32> to vector<1x8x16xf32>
    %513 = vector.shape_cast %505 : vector<8x16xf32> to vector<1x8x16xf32>
    %514 = vector.shape_cast %506 : vector<8x16xf32> to vector<1x8x16xf32>
    %515 = vector.shape_cast %507 : vector<8x16xf32> to vector<1x8x16xf32>
    %516 = vector.shape_cast %508 : vector<8x16xf32> to vector<1x8x16xf32>
    %517 = tpu.concatenate %509, %510, %511, %512, %513, %514, %515, %516 in 0 : vector<1x8x16xf32>, vector<1x8x16xf32>, vector<1x8x16xf32>, vector<1x8x16xf32>, vector<1x8x16xf32>, vector<1x8x16xf32>, vector<1x8x16xf32>, vector<1x8x16xf32> -> vector<8x8x16xf32>
    %518 = vector.extract_strided_slice %498 {offsets = [0, 0], sizes = [6, 128], strides = [1, 1]} : vector<12x128xf32> to vector<6x128xf32>
    %519 = vector.extract_strided_slice %518 {offsets = [0, 0], sizes = [6, 16], strides = [1, 1]} : vector<6x128xf32> to vector<6x16xf32>
    %520 = vector.extract_strided_slice %518 {offsets = [0, 16], sizes = [6, 16], strides = [1, 1]} : vector<6x128xf32> to vector<6x16xf32>
    %521 = vector.extract_strided_slice %518 {offsets = [0, 32], sizes = [6, 16], strides = [1, 1]} : vector<6x128xf32> to vector<6x16xf32>
    %522 = vector.extract_strided_slice %518 {offsets = [0, 48], sizes = [6, 16], strides = [1, 1]} : vector<6x128xf32> to vector<6x16xf32>
    %523 = vector.extract_strided_slice %498 {offsets = [6, 0], sizes = [6, 128], strides = [1, 1]} : vector<12x128xf32> to vector<6x128xf32>
    %524 = vector.extract_strided_slice %523 {offsets = [0, 0], sizes = [6, 16], strides = [1, 1]} : vector<6x128xf32> to vector<6x16xf32>
    %525 = vector.extract_strided_slice %523 {offsets = [0, 16], sizes = [6, 16], strides = [1, 1]} : vector<6x128xf32> to vector<6x16xf32>
    %526 = vector.extract_strided_slice %523 {offsets = [0, 32], sizes = [6, 16], strides = [1, 1]} : vector<6x128xf32> to vector<6x16xf32>
    %527 = vector.extract_strided_slice %523 {offsets = [0, 48], sizes = [6, 16], strides = [1, 1]} : vector<6x128xf32> to vector<6x16xf32>
    %528 = vector.shape_cast %519 : vector<6x16xf32> to vector<1x6x16xf32>
    %529 = vector.shape_cast %520 : vector<6x16xf32> to vector<1x6x16xf32>
    %530 = vector.shape_cast %521 : vector<6x16xf32> to vector<1x6x16xf32>
    %531 = vector.shape_cast %522 : vector<6x16xf32> to vector<1x6x16xf32>
    %532 = vector.shape_cast %524 : vector<6x16xf32> to vector<1x6x16xf32>
    %533 = vector.shape_cast %525 : vector<6x16xf32> to vector<1x6x16xf32>
    %534 = vector.shape_cast %526 : vector<6x16xf32> to vector<1x6x16xf32>
    %535 = vector.shape_cast %527 : vector<6x16xf32> to vector<1x6x16xf32>
    %536 = tpu.concatenate %528, %529, %530, %531, %532, %533, %534, %535 in 0 : vector<1x6x16xf32>, vector<1x6x16xf32>, vector<1x6x16xf32>, vector<1x6x16xf32>, vector<1x6x16xf32>, vector<1x6x16xf32>, vector<1x6x16xf32>, vector<1x6x16xf32> -> vector<8x6x16xf32>
    %537 = vector.extract_strided_slice %498 {offsets = [0, 0], sizes = [6, 128], strides = [1, 1]} : vector<12x128xf32> to vector<6x128xf32>
    %538 = vector.extract_strided_slice %537 {offsets = [0, 64], sizes = [6, 16], strides = [1, 1]} : vector<6x128xf32> to vector<6x16xf32>
    %539 = vector.extract_strided_slice %537 {offsets = [0, 80], sizes = [6, 16], strides = [1, 1]} : vector<6x128xf32> to vector<6x16xf32>
    %540 = vector.extract_strided_slice %537 {offsets = [0, 96], sizes = [6, 16], strides = [1, 1]} : vector<6x128xf32> to vector<6x16xf32>
    %541 = vector.extract_strided_slice %537 {offsets = [0, 112], sizes = [6, 16], strides = [1, 1]} : vector<6x128xf32> to vector<6x16xf32>
    %542 = vector.extract_strided_slice %498 {offsets = [6, 0], sizes = [6, 128], strides = [1, 1]} : vector<12x128xf32> to vector<6x128xf32>
    %543 = vector.extract_strided_slice %542 {offsets = [0, 64], sizes = [6, 16], strides = [1, 1]} : vector<6x128xf32> to vector<6x16xf32>
    %544 = vector.extract_strided_slice %542 {offsets = [0, 80], sizes = [6, 16], strides = [1, 1]} : vector<6x128xf32> to vector<6x16xf32>
    %545 = vector.extract_strided_slice %542 {offsets = [0, 96], sizes = [6, 16], strides = [1, 1]} : vector<6x128xf32> to vector<6x16xf32>
    %546 = vector.extract_strided_slice %542 {offsets = [0, 112], sizes = [6, 16], strides = [1, 1]} : vector<6x128xf32> to vector<6x16xf32>
    %547 = vector.shape_cast %538 : vector<6x16xf32> to vector<1x6x16xf32>
    %548 = vector.shape_cast %539 : vector<6x16xf32> to vector<1x6x16xf32>
    %549 = vector.shape_cast %540 : vector<6x16xf32> to vector<1x6x16xf32>
    %550 = vector.shape_cast %541 : vector<6x16xf32> to vector<1x6x16xf32>
    %551 = vector.shape_cast %543 : vector<6x16xf32> to vector<1x6x16xf32>
    %552 = vector.shape_cast %544 : vector<6x16xf32> to vector<1x6x16xf32>
    %553 = vector.shape_cast %545 : vector<6x16xf32> to vector<1x6x16xf32>
    %554 = vector.shape_cast %546 : vector<6x16xf32> to vector<1x6x16xf32>
    %555 = tpu.concatenate %547, %548, %549, %550, %551, %552, %553, %554 in 0 : vector<1x6x16xf32>, vector<1x6x16xf32>, vector<1x6x16xf32>, vector<1x6x16xf32>, vector<1x6x16xf32>, vector<1x6x16xf32>, vector<1x6x16xf32>, vector<1x6x16xf32> -> vector<8x6x16xf32>
    "tpu.trace_start"() <{level = 10 : i32, message = "zqd,zkd->zqk"}> : () -> ()
    %cst_136 = arith.constant dense<0.000000e+00> : vector<8x8x6xf32>
    %556 = tpu.matmul %517, %536, %cst_136 {dimension_numbers = #tpu.dot_dimension_numbers<[2], [2], [1], [1], [0, 0, 0, 1, 1, 1], [0], [0]>} : vector<8x8x16xf32>, vector<8x6x16xf32>, vector<8x8x6xf32> -> vector<8x8x6xf32>
    "tpu.trace_stop"() : () -> ()
    %cst_137 = arith.constant 2.500000e-01 : f32
    %557 = vector.broadcast %cst_137 : f32 to vector<8x8x6xf32>
    %558 = arith.mulf %556, %557 : vector<8x8x6xf32>
    %cst_138 = arith.constant dense<0xFF800000> : vector<8x8xf32>
    %559 = vector.multi_reduction <maximumf>, %558, %cst_138 [2] : vector<8x8x6xf32> to vector<8x8xf32>
    %560 = vector.shape_cast %559 : vector<8x8xf32> to vector<8x8x1xf32>
    %561 = vector.broadcast %560 : vector<8x8x1xf32> to vector<8x8x6xf32>
    %562 = arith.subf %558, %561 : vector<8x8x6xf32>
    %563 = math.exp %562 : vector<8x8x6xf32>
    %cst_139 = arith.constant dense<0.000000e+00> : vector<8x8xf32>
    %564 = vector.multi_reduction <add>, %563, %cst_139 [2] : vector<8x8x6xf32> to vector<8x8xf32>
    %565 = vector.shape_cast %564 : vector<8x8xf32> to vector<8x8x1xf32>
    %566 = tpu.reciprocal %565 {approx = true} : vector<8x8x1xf32> -> vector<8x8x1xf32>
    %567 = vector.broadcast %566 : vector<8x8x1xf32> to vector<8x8x6xf32>
    %568 = arith.mulf %563, %567 : vector<8x8x6xf32>
    "tpu.trace_start"() <{level = 10 : i32, message = "zqk,zkd->zqd"}> : () -> ()
    %cst_140 = arith.constant dense<0.000000e+00> : vector<8x8x16xf32>
    %569 = tpu.matmul %568, %555, %cst_140 {dimension_numbers = #tpu.dot_dimension_numbers<[2], [1], [1], [2], [0, 0, 0, 1, 1, 2], [0], [0]>} : vector<8x8x6xf32>, vector<8x6x16xf32>, vector<8x8x16xf32> -> vector<8x8x16xf32>
    "tpu.trace_stop"() : () -> ()
    %570 = vector.extract_strided_slice %569 {offsets = [0, 0, 0], sizes = [1, 8, 16], strides = [1, 1, 1]} : vector<8x8x16xf32> to vector<1x8x16xf32>
    %571 = vector.shape_cast %570 : vector<1x8x16xf32> to vector<8x16xf32>
    %572 = vector.extract_strided_slice %569 {offsets = [1, 0, 0], sizes = [1, 8, 16], strides = [1, 1, 1]} : vector<8x8x16xf32> to vector<1x8x16xf32>
    %573 = vector.shape_cast %572 : vector<1x8x16xf32> to vector<8x16xf32>
    %574 = vector.extract_strided_slice %569 {offsets = [2, 0, 0], sizes = [1, 8, 16], strides = [1, 1, 1]} : vector<8x8x16xf32> to vector<1x8x16xf32>
    %575 = vector.shape_cast %574 : vector<1x8x16xf32> to vector<8x16xf32>
    %576 = vector.extract_strided_slice %569 {offsets = [3, 0, 0], sizes = [1, 8, 16], strides = [1, 1, 1]} : vector<8x8x16xf32> to vector<1x8x16xf32>
    %577 = vector.shape_cast %576 : vector<1x8x16xf32> to vector<8x16xf32>
    %578 = tpu.concatenate %571, %573, %575, %577 in 1 : vector<8x16xf32>, vector<8x16xf32>, vector<8x16xf32>, vector<8x16xf32> -> vector<8x64xf32>
    %579 = vector.extract_strided_slice %569 {offsets = [4, 0, 0], sizes = [1, 8, 16], strides = [1, 1, 1]} : vector<8x8x16xf32> to vector<1x8x16xf32>
    %580 = vector.shape_cast %579 : vector<1x8x16xf32> to vector<8x16xf32>
    %581 = vector.extract_strided_slice %569 {offsets = [5, 0, 0], sizes = [1, 8, 16], strides = [1, 1, 1]} : vector<8x8x16xf32> to vector<1x8x16xf32>
    %582 = vector.shape_cast %581 : vector<1x8x16xf32> to vector<8x16xf32>
    %583 = vector.extract_strided_slice %569 {offsets = [6, 0, 0], sizes = [1, 8, 16], strides = [1, 1, 1]} : vector<8x8x16xf32> to vector<1x8x16xf32>
    %584 = vector.shape_cast %583 : vector<1x8x16xf32> to vector<8x16xf32>
    %585 = vector.extract_strided_slice %569 {offsets = [7, 0, 0], sizes = [1, 8, 16], strides = [1, 1, 1]} : vector<8x8x16xf32> to vector<1x8x16xf32>
    %586 = vector.shape_cast %585 : vector<1x8x16xf32> to vector<8x16xf32>
    %587 = tpu.concatenate %580, %582, %584, %586 in 1 : vector<8x16xf32>, vector<8x16xf32>, vector<8x16xf32>, vector<8x16xf32> -> vector<8x64xf32>
    %588 = tpu.concatenate %578, %587 in 0 : vector<8x64xf32>, vector<8x64xf32> -> vector<16x64xf32>
    %c1_141 = arith.constant 1 : index
    %c0_142 = arith.constant 0 : index
    %c0_143 = arith.constant 0 : index
    %589 = vector.load %arg12[%c1_141, %c0_142, %c0_143] : memref<2x64x64xf32, #tpu.memory_space<vmem>>, vector<1x64x64xf32>
    %590 = vector.shape_cast %589 : vector<1x64x64xf32> to vector<64x64xf32>
    %cst_144 = arith.constant dense<0.000000e+00> : vector<16x64xf32>
    %591 = tpu.matmul %588, %590, %cst_144 {dimension_numbers = #tpu.dot_dimension_numbers<[1], [0], [0], [1], [0, 0, 1, 1], [], []>} : vector<16x64xf32>, vector<64x64xf32>, vector<16x64xf32> -> vector<16x64xf32>
    %c1_145 = arith.constant 1 : index
    %c0_146 = arith.constant 0 : index
    %c0_147 = arith.constant 0 : index
    %592 = vector.load %arg13[%c1_145, %c0_146, %c0_147] : memref<2x1x64xf32, #tpu.memory_space<vmem>>, vector<1x1x64xf32>
    %593 = vector.shape_cast %592 : vector<1x1x64xf32> to vector<1x64xf32>
    %594 = vector.broadcast %593 : vector<1x64xf32> to vector<16x64xf32>
    %595 = arith.addf %591, %594 : vector<16x64xf32>
    %596 = arith.addf %484, %595 : vector<16x64xf32>
    %597 = vector.extract_strided_slice %352 {offsets = [1, 0], sizes = [1, 64], strides = [1, 1]} : vector<3x64xf32> to vector<1x64xf32>
    %598 = vector.extract_strided_slice %354 {offsets = [1, 0], sizes = [1, 64], strides = [1, 1]} : vector<3x64xf32> to vector<1x64xf32>
    %cst_148 = arith.constant dense<0.000000e+00> : vector<16xf32>
    %599 = vector.multi_reduction <add>, %596, %cst_148 [1] : vector<16x64xf32> to vector<16xf32>
    %600 = vector.shape_cast %599 : vector<16xf32> to vector<16x1xf32>
    %cst_149 = arith.constant 1.562500e-02 : f32
    %601 = vector.broadcast %cst_149 : f32 to vector<16x1xf32>
    %602 = arith.mulf %600, %601 : vector<16x1xf32>
    %603 = arith.mulf %596, %596 : vector<16x64xf32>
    %cst_150 = arith.constant dense<0.000000e+00> : vector<16xf32>
    %604 = vector.multi_reduction <add>, %603, %cst_150 [1] : vector<16x64xf32> to vector<16xf32>
    %605 = vector.shape_cast %604 : vector<16xf32> to vector<16x1xf32>
    %cst_151 = arith.constant 1.562500e-02 : f32
    %606 = vector.broadcast %cst_151 : f32 to vector<16x1xf32>
    %607 = arith.mulf %605, %606 : vector<16x1xf32>
    %608 = arith.mulf %602, %602 : vector<16x1xf32>
    %609 = arith.subf %607, %608 : vector<16x1xf32>
    %610 = vector.broadcast %602 : vector<16x1xf32> to vector<16x64xf32>
    %611 = arith.subf %596, %610 : vector<16x64xf32>
    %cst_152 = arith.constant 9.99999974E-6 : f32
    %612 = vector.broadcast %cst_152 : f32 to vector<16x1xf32>
    %613 = arith.addf %609, %612 : vector<16x1xf32>
    %614 = math.rsqrt %613 : vector<16x1xf32>
    %615 = vector.broadcast %614 : vector<16x1xf32> to vector<16x64xf32>
    %616 = arith.mulf %611, %615 : vector<16x64xf32>
    %617 = vector.broadcast %597 : vector<1x64xf32> to vector<16x64xf32>
    %618 = arith.mulf %616, %617 : vector<16x64xf32>
    %619 = vector.broadcast %598 : vector<1x64xf32> to vector<16x64xf32>
    %620 = arith.addf %618, %619 : vector<16x64xf32>
    %c1_153 = arith.constant 1 : index
    %c0_154 = arith.constant 0 : index
    %c0_155 = arith.constant 0 : index
    %621 = vector.load %arg16[%c1_153, %c0_154, %c0_155] : memref<2x64x256xf32, #tpu.memory_space<vmem>>, vector<1x64x256xf32>
    %622 = vector.shape_cast %621 : vector<1x64x256xf32> to vector<64x256xf32>
    %cst_156 = arith.constant dense<0.000000e+00> : vector<16x256xf32>
    %623 = tpu.matmul %620, %622, %cst_156 {dimension_numbers = #tpu.dot_dimension_numbers<[1], [0], [0], [1], [0, 0, 1, 1], [], []>} : vector<16x64xf32>, vector<64x256xf32>, vector<16x256xf32> -> vector<16x256xf32>
    %c1_157 = arith.constant 1 : index
    %c0_158 = arith.constant 0 : index
    %c0_159 = arith.constant 0 : index
    %624 = vector.load %arg17[%c1_157, %c0_158, %c0_159] : memref<2x1x256xf32, #tpu.memory_space<vmem>>, vector<1x1x256xf32>
    %625 = vector.shape_cast %624 : vector<1x1x256xf32> to vector<1x256xf32>
    %626 = vector.broadcast %625 : vector<1x256xf32> to vector<16x256xf32>
    %627 = arith.addf %623, %626 : vector<16x256xf32>
    %628 = arith.mulf %627, %627 : vector<16x256xf32>
    %629 = arith.mulf %627, %628 : vector<16x256xf32>
    %cst_160 = arith.constant 4.471500e-02 : f32
    %630 = vector.broadcast %cst_160 : f32 to vector<16x256xf32>
    %631 = arith.mulf %630, %629 : vector<16x256xf32>
    %632 = arith.addf %627, %631 : vector<16x256xf32>
    %cst_161 = arith.constant 0.797884583 : f32
    %633 = vector.broadcast %cst_161 : f32 to vector<16x256xf32>
    %634 = arith.mulf %633, %632 : vector<16x256xf32>
    %635 = math.tanh %634 : vector<16x256xf32>
    %cst_162 = arith.constant 1.000000e+00 : f32
    %636 = vector.broadcast %cst_162 : f32 to vector<16x256xf32>
    %637 = arith.addf %636, %635 : vector<16x256xf32>
    %cst_163 = arith.constant 5.000000e-01 : f32
    %638 = vector.broadcast %cst_163 : f32 to vector<16x256xf32>
    %639 = arith.mulf %638, %637 : vector<16x256xf32>
    %640 = arith.mulf %627, %639 : vector<16x256xf32>
    %c1_164 = arith.constant 1 : index
    %c0_165 = arith.constant 0 : index
    %c0_166 = arith.constant 0 : index
    %641 = vector.load %arg18[%c1_164, %c0_165, %c0_166] : memref<2x256x64xf32, #tpu.memory_space<vmem>>, vector<1x256x64xf32>
    %642 = vector.shape_cast %641 : vector<1x256x64xf32> to vector<256x64xf32>
    %cst_167 = arith.constant dense<0.000000e+00> : vector<16x64xf32>
    %643 = tpu.matmul %640, %642, %cst_167 {dimension_numbers = #tpu.dot_dimension_numbers<[1], [0], [0], [1], [0, 0, 1, 1], [], []>} : vector<16x256xf32>, vector<256x64xf32>, vector<16x64xf32> -> vector<16x64xf32>
    %c1_168 = arith.constant 1 : index
    %c0_169 = arith.constant 0 : index
    %c0_170 = arith.constant 0 : index
    %644 = vector.load %arg19[%c1_168, %c0_169, %c0_170] : memref<2x1x64xf32, #tpu.memory_space<vmem>>, vector<1x1x64xf32>
    %645 = vector.shape_cast %644 : vector<1x1x64xf32> to vector<1x64xf32>
    %646 = vector.broadcast %645 : vector<1x64xf32> to vector<16x64xf32>
    %647 = arith.addf %643, %646 : vector<16x64xf32>
    %648 = arith.addf %620, %647 : vector<16x64xf32>
    %649 = vector.extract_strided_slice %352 {offsets = [2, 0], sizes = [1, 64], strides = [1, 1]} : vector<3x64xf32> to vector<1x64xf32>
    %650 = vector.extract_strided_slice %354 {offsets = [2, 0], sizes = [1, 64], strides = [1, 1]} : vector<3x64xf32> to vector<1x64xf32>
    %cst_171 = arith.constant dense<0.000000e+00> : vector<16xf32>
    %651 = vector.multi_reduction <add>, %648, %cst_171 [1] : vector<16x64xf32> to vector<16xf32>
    %652 = vector.shape_cast %651 : vector<16xf32> to vector<16x1xf32>
    %cst_172 = arith.constant 1.562500e-02 : f32
    %653 = vector.broadcast %cst_172 : f32 to vector<16x1xf32>
    %654 = arith.mulf %652, %653 : vector<16x1xf32>
    %655 = arith.mulf %648, %648 : vector<16x64xf32>
    %cst_173 = arith.constant dense<0.000000e+00> : vector<16xf32>
    %656 = vector.multi_reduction <add>, %655, %cst_173 [1] : vector<16x64xf32> to vector<16xf32>
    %657 = vector.shape_cast %656 : vector<16xf32> to vector<16x1xf32>
    %cst_174 = arith.constant 1.562500e-02 : f32
    %658 = vector.broadcast %cst_174 : f32 to vector<16x1xf32>
    %659 = arith.mulf %657, %658 : vector<16x1xf32>
    %660 = arith.mulf %654, %654 : vector<16x1xf32>
    %661 = arith.subf %659, %660 : vector<16x1xf32>
    %662 = vector.broadcast %654 : vector<16x1xf32> to vector<16x64xf32>
    %663 = arith.subf %648, %662 : vector<16x64xf32>
    %cst_175 = arith.constant 9.99999974E-6 : f32
    %664 = vector.broadcast %cst_175 : f32 to vector<16x1xf32>
    %665 = arith.addf %661, %664 : vector<16x1xf32>
    %666 = math.rsqrt %665 : vector<16x1xf32>
    %667 = vector.broadcast %666 : vector<16x1xf32> to vector<16x64xf32>
    %668 = arith.mulf %663, %667 : vector<16x64xf32>
    %669 = vector.broadcast %649 : vector<1x64xf32> to vector<16x64xf32>
    %670 = arith.mulf %668, %669 : vector<16x64xf32>
    %671 = vector.broadcast %650 : vector<1x64xf32> to vector<16x64xf32>
    %672 = arith.addf %670, %671 : vector<16x64xf32>
    %673 = vector.extract_strided_slice %672 {offsets = [7, 0], sizes = [1, 64], strides = [1, 1]} : vector<16x64xf32> to vector<1x64xf32>
    %674 = vector.extract_strided_slice %672 {offsets = [15, 0], sizes = [1, 64], strides = [1, 1]} : vector<16x64xf32> to vector<1x64xf32>
    %675 = tpu.concatenate %673, %674 in 0 : vector<1x64xf32>, vector<1x64xf32> -> vector<2x64xf32>
    %c0_176 = arith.constant 0 : index
    %c0_177 = arith.constant 0 : index
    %676 = vector.load %arg3[%c0_176, %c0_177] : memref<2x64xf32, #tpu.memory_space<vmem>>, vector<2x64xf32>
    %677 = arith.addf %675, %676 : vector<2x64xf32>
    %c0_178 = arith.constant 0 : index
    %c0_179 = arith.constant 0 : index
    %678 = vector.load %arg20[%c0_178, %c0_179] : memref<1x64xf32, #tpu.memory_space<vmem>>, vector<1x64xf32>
    %c0_180 = arith.constant 0 : index
    %c0_181 = arith.constant 0 : index
    %679 = vector.load %arg21[%c0_180, %c0_181] : memref<1x64xf32, #tpu.memory_space<vmem>>, vector<1x64xf32>
    %cst_182 = arith.constant dense<0.000000e+00> : vector<2xf32>
    %680 = vector.multi_reduction <add>, %677, %cst_182 [1] : vector<2x64xf32> to vector<2xf32>
    %681 = vector.shape_cast %680 : vector<2xf32> to vector<2x1xf32>
    %cst_183 = arith.constant 1.562500e-02 : f32
    %682 = vector.broadcast %cst_183 : f32 to vector<2x1xf32>
    %683 = arith.mulf %681, %682 : vector<2x1xf32>
    %684 = arith.mulf %677, %677 : vector<2x64xf32>
    %cst_184 = arith.constant dense<0.000000e+00> : vector<2xf32>
    %685 = vector.multi_reduction <add>, %684, %cst_184 [1] : vector<2x64xf32> to vector<2xf32>
    %686 = vector.shape_cast %685 : vector<2xf32> to vector<2x1xf32>
    %cst_185 = arith.constant 1.562500e-02 : f32
    %687 = vector.broadcast %cst_185 : f32 to vector<2x1xf32>
    %688 = arith.mulf %686, %687 : vector<2x1xf32>
    %689 = arith.mulf %683, %683 : vector<2x1xf32>
    %690 = arith.subf %688, %689 : vector<2x1xf32>
    %691 = vector.broadcast %683 : vector<2x1xf32> to vector<2x64xf32>
    %692 = arith.subf %677, %691 : vector<2x64xf32>
    %cst_186 = arith.constant 9.99999974E-6 : f32
    %693 = vector.broadcast %cst_186 : f32 to vector<2x1xf32>
    %694 = arith.addf %690, %693 : vector<2x1xf32>
    %695 = math.rsqrt %694 : vector<2x1xf32>
    %696 = vector.broadcast %695 : vector<2x1xf32> to vector<2x64xf32>
    %697 = arith.mulf %692, %696 : vector<2x64xf32>
    %698 = vector.broadcast %678 : vector<1x64xf32> to vector<2x64xf32>
    %699 = arith.mulf %697, %698 : vector<2x64xf32>
    %700 = vector.broadcast %679 : vector<1x64xf32> to vector<2x64xf32>
    %701 = arith.addf %699, %700 : vector<2x64xf32>
    %c0_187 = arith.constant 0 : index
    %c0_188 = arith.constant 0 : index
    %702 = vector.load %arg22[%c0_187, %c0_188] : memref<64x32xf32, #tpu.memory_space<vmem>>, vector<64x32xf32>
    %cst_189 = arith.constant dense<0.000000e+00> : vector<2x32xf32>
    %703 = tpu.matmul %701, %702, %cst_189 {dimension_numbers = #tpu.dot_dimension_numbers<[1], [0], [0], [1], [0, 0, 1, 1], [], []>} : vector<2x64xf32>, vector<64x32xf32>, vector<2x32xf32> -> vector<2x32xf32>
    %c0_190 = arith.constant 0 : index
    %c0_191 = arith.constant 0 : index
    %704 = vector.load %arg23[%c0_190, %c0_191] : memref<1x32xf32, #tpu.memory_space<vmem>>, vector<1x32xf32>
    %705 = vector.broadcast %704 : vector<1x32xf32> to vector<2x32xf32>
    %706 = arith.addf %703, %705 : vector<2x32xf32>
    %707 = arith.mulf %706, %706 : vector<2x32xf32>
    %708 = arith.mulf %706, %707 : vector<2x32xf32>
    %cst_192 = arith.constant 4.471500e-02 : f32
    %709 = vector.broadcast %cst_192 : f32 to vector<2x32xf32>
    %710 = arith.mulf %709, %708 : vector<2x32xf32>
    %711 = arith.addf %706, %710 : vector<2x32xf32>
    %cst_193 = arith.constant 0.797884583 : f32
    %712 = vector.broadcast %cst_193 : f32 to vector<2x32xf32>
    %713 = arith.mulf %712, %711 : vector<2x32xf32>
    %714 = math.tanh %713 : vector<2x32xf32>
    %cst_194 = arith.constant 1.000000e+00 : f32
    %715 = vector.broadcast %cst_194 : f32 to vector<2x32xf32>
    %716 = arith.addf %715, %714 : vector<2x32xf32>
    %cst_195 = arith.constant 5.000000e-01 : f32
    %717 = vector.broadcast %cst_195 : f32 to vector<2x32xf32>
    %718 = arith.mulf %717, %716 : vector<2x32xf32>
    %719 = arith.mulf %706, %718 : vector<2x32xf32>
    %c0_196 = arith.constant 0 : index
    %c0_197 = arith.constant 0 : index
    %720 = vector.load %arg24[%c0_196, %c0_197] : memref<32x1xf32, #tpu.memory_space<vmem>>, vector<32x1xf32>
    %cst_198 = arith.constant dense<0.000000e+00> : vector<2x1xf32>
    %721 = tpu.matmul %719, %720, %cst_198 {dimension_numbers = #tpu.dot_dimension_numbers<[1], [0], [0], [1], [0, 0, 1, 1], [], []>} : vector<2x32xf32>, vector<32x1xf32>, vector<2x1xf32> -> vector<2x1xf32>
    %c0_199 = arith.constant 0 : index
    %c0_200 = arith.constant 0 : index
    %722 = vector.load %arg25[%c0_199, %c0_200] : memref<1x1xf32, #tpu.memory_space<vmem>>, vector<1x1xf32>
    %723 = vector.broadcast %722 : vector<1x1xf32> to vector<2x1xf32>
    %724 = arith.addf %721, %723 : vector<2x1xf32>
    %c0_201 = arith.constant 0 : index
    %c0_202 = arith.constant 0 : index
    %725 = vector.load %arg26[%c0_201, %c0_202] : memref<2x1xf32, #tpu.memory_space<vmem>>, vector<2x1xf32>
    tpu.vector_store %arg26[%c0_201, %c0_202], %724 {strides = array<i32>} : memref<2x1xf32, #tpu.memory_space<vmem>>, vector<2x1xf32>,
    return
  }
}

</mosaic_0001>

<bundles_post_ra>
// kernel: tpu_custom_call.1
= control target key start
LH: loop header
LB: loop body
LE: loop exit
PB: predicated region body
PF: predicated region fallthrough
CT: control target
= control target key end

     0   :  { %s11103_s0 = inlined_call_operand.hbm [shape: f32[16,64], index: 0, kind: input, shape index: {}]   ;;  %s11104_s1 = inlined_call_operand.hbm [shape: f32[12,64], index: 1, kind: input, shape index: {}]   ;;  %s11105_s2 = inlined_call_operand.hbm [shape: f32[2,8], index: 2, kind: input, shape index: {}]   ;;  %s11106_s3 = inlined_call_operand.hbm [shape: f32[2,64], index: 3, kind: input, shape index: {}]   ;;  %s11107_s4 = inlined_call_operand.vmem [shape: f32[2,64,192], index: 4, kind: input, shape index: {}]   ;;  %s11108_s5 = inlined_call_operand.vmem [shape: f32[2,1,192], index: 5, kind: input, shape index: {}]   ;;  %s11109_s6 = inlined_call_operand.vmem [shape: f32[2,64,64], index: 6, kind: input, shape index: {}]   ;;  %s11110_s7 = inlined_call_operand.vmem [shape: f32[2,1,64], index: 7, kind: input, shape index: {}]   ;;  %s11111_s8 = inlined_call_operand.vmem [shape: f32[2,64,64], index: 8, kind: input, shape index: {}]   ;;  %s11112_s9 = inlined_call_operand.vmem [shape: f32[2,1,64], index: 9, kind: input, shape index: {}]   ;;  %s11113_s10 = inlined_call_operand.vmem [shape: f32[2,64,128], index: 10, kind: input, shape index: {}]   ;;  %s11114_s11 = inlined_call_operand.vmem [shape: f32[2,1,128], index: 11, kind: input, shape index: {}]   ;;  %s11115_s12 = inlined_call_operand.hbm [shape: f32[2,64,64], index: 12, kind: input, shape index: {}]   ;;  %s11116_s13 = inlined_call_operand.vmem [shape: f32[2,1,64], index: 13, kind: input, shape index: {}]   ;;  %s11117_s14 = inlined_call_operand.vmem [shape: f32[2,3,64], index: 14, kind: input, shape index: {}]   ;;  %s11118_s15 = inlined_call_operand.vmem [shape: f32[2,3,64], index: 15, kind: input, shape index: {}]   ;;  %s11119_s16 = inlined_call_operand.vmem [shape: f32[2,64,256], index: 16, kind: input, shape index: {}]   ;;  %s11120_s17 = inlined_call_operand.vmem [shape: f32[2,1,256], index: 17, kind: input, shape index: {}]   ;;  %s11121_s18 = inlined_call_operand.vmem [shape: f32[2,256,64], index: 18, kind: input, shape index: {}]   ;;  %s11122_s19 = inlined_call_operand.vmem [shape: f32[2,1,64], index: 19, kind: input, shape index: {}]   ;;  %s11123_s20 = inlined_call_operand.vmem [shape: f32[1,64], index: 20, kind: input, shape index: {}]   ;;  %s11124_s21 = inlined_call_operand.vmem [shape: f32[1,64], index: 21, kind: input, shape index: {}]   ;;  %s11125_s22 = inlined_call_operand.vmem [shape: f32[64,32], index: 22, kind: input, shape index: {}]   ;;  %s11126_s23 = inlined_call_operand.vmem [shape: f32[1,32], index: 23, kind: input, shape index: {}]   ;;  %s11127_s24 = inlined_call_operand.vmem [shape: f32[32,1], index: 24, kind: input, shape index: {}]   ;;  %s11128_s25 = inlined_call_operand.<no memory space> [shape: f32[1,1], index: 25, kind: input, shape index: {}]   ;;  %s11129_s26 = inlined_call_operand.vmem [shape: f32[2,1], index: 26, kind: output, shape index: {}]  }
   0x1   :  { %11161 = sst [smem:[#allocation14_spill]] %s11103_s0  ;;  %v31_v0 = vstv %s11128_s25 }
   0x2   :  { %11162 = sst [smem:[#allocation15_spill]] %s11104_s1  ;;  %32 = vst [vmem:[#allocation2] sm:$0x1] %v31_v0 }
   0x3   :  { %11163 = sst [smem:[#allocation16_spill]] %s11105_s2 }
   0x4   :  { %11164 = sst [smem:[#allocation17_spill]] %s11106_s3 }
   0x5   :  { %11165 = sst [smem:[#allocation18_spill]] %s11107_s4 }
   0x6   :  { %11166 = sst [smem:[#allocation19_spill]] %s11108_s5 }
   0x7   :  { %11167 = sst [smem:[#allocation20_spill]] %s11109_s6 }
   0x8   :  { %11168 = sst [smem:[#allocation21_spill]] %s11110_s7 }
   0x9   :  { %11169 = sst [smem:[#allocation22_spill]] %s11111_s8 }
   0xa   :  { %11170 = sst [smem:[#allocation23_spill]] %s11112_s9 }
   0xb   :  { %11171 = sst [smem:[#allocation24_spill]] %s11113_s10 }
   0xc   :  { %11172 = sst [smem:[#allocation25_spill]] %s11123_s20 }
   0xd   :  { %11173 = sst [smem:[#allocation26_spill]] %s11124_s21 }
   0xe   :  { %11174 = sst [smem:[#allocation27_spill]] %s11125_s22 }
   0xf   :  { %11175 = sst [smem:[#allocation28_spill]] %s11126_s23 }
  0x10   :  { %11176 = sst [smem:[#allocation29_spill]] %s11127_s24 }
  0x11   :  { %11177 = sst [smem:[#allocation30_spill]] %s11129_s26 }
  0x12   :  { %33 = vsyncpa [#allocation4], 0 }
  0x13   :  { %34 = vsyncpa [#allocation6], 0 }
  0x14   :  { %35 = vsyncpa [#allocation9], 0  ;;  %s9312_s7 = smov [#allocation5]   ;;  %s9313_s8 = smov [#allocation8]  }
  0x15   :  { %s53_s28 = sshll.u32 %s9312_s7, 4  ;;  %s76_s4 = sshll.u32 %s9313_s8, 4  ;;  %s54_s28 = int_to_ptr.vmem [resolvable:$true] %s53_s28  ;;  %s77_s4 = int_to_ptr.vmem [resolvable:$true] %s76_s4 }
  0x16   :  { %s11178_s9 = sld [smem:[#allocation15_spill]] }
  0x1c   :  { %s9196_s30 = scalar_lea.hbm %s11178_s9, 256 }
  0x1d   :  { %p9197_p0 = scmp.ne.s32.totalorder %s11178_s9, %s9196_s30  ;;  %p9200_p1 = scmp.lt.u32.totalorder %s9196_s30, %s11178_s9 }
  0x1f   :  { %p9202_p2 = pnand %p9200_p1, %p9197_p0 }
  0x21   :  { %9205 = shalt.err (!%p9202_p2)
}
  0x22   :  { %s9206_s6 = scalar_lea.vmem %s54_s28, 256  ;;  %p9211_p4 = scmp.lt.s32.totalorder %s54_s28, %s54_s28 }
  0x23   :  { %p9207_p3 = scmp.ne.s32.totalorder %s54_s28, %s9206_s6  ;;  %p9212_p5 = scmp.lt.s32.totalorder %s9206_s6, %s9206_s6 }
  0x25   :  { %p9213_p6 = por %p9212_p5, %p9211_p4 }
  0x27   :  { %p9214_p7 = pnand %p9213_p6, %p9207_p3 }
  0x29   :  { %9217 = shalt.err (!%p9214_p7)
}
  0x2a   :  { %s11141_s1 = smov 128   ;;  %s11143_s27 = smov 8  }
  0x2b   :  { %59 = dma.hbm_to_vmem [thread:$0]  %s11178_s9, 256, %s54_s28, [#allocation6], %s11141_s1, %s11141_s1, %s11143_s27  }
  0x2c   :  { %s11179_s0 = sld [smem:[#allocation17_spill]] }
  0x32   :  { %s9218_s30 = scalar_lea.hbm %s11179_s0, 32 }
  0x33   :  { %p9219_p8 = scmp.ne.s32.totalorder %s11179_s0, %s9218_s30  ;;  %p9222_p9 = scmp.lt.u32.totalorder %s9218_s30, %s11179_s0 }
  0x35   :  { %p9224_p10 = pnand %p9222_p9, %p9219_p8 }
  0x37   :  { %9227 = shalt.err (!%p9224_p10)
}
  0x38   :  { %s9228_s6 = scalar_lea.vmem %s77_s4, 32  ;;  %p9233_p12 = scmp.lt.s32.totalorder %s77_s4, %s77_s4 }
  0x39   :  { %p9229_p11 = scmp.ne.s32.totalorder %s77_s4, %s9228_s6  ;;  %p9234_p13 = scmp.lt.s32.totalorder %s9228_s6, %s9228_s6 }
  0x3b   :  { %p9235_p0 = por %p9234_p13, %p9233_p12 }
  0x3d   :  { %p9236_p1 = pnand %p9235_p0, %p9229_p11 }
  0x3f   :  { %9239 = shalt.err (!%p9236_p1)
}
  0x40   :  { %79 = dma.hbm_to_vmem [thread:$0]  %s11179_s0, 32, %s77_s4, [#allocation9]  }
  0x41   :  { %s9316_s3 = smov [#allocation3]   ;;  %s9317_s8 = smov [#allocation7]  }
  0x42   :  { %s41_s7 = sshll.u32 %s9316_s3, 4  ;;  %s66_s29 = sshll.u32 %s9317_s8, 4  ;;  %s42_s7 = int_to_ptr.vmem [resolvable:$true] %s41_s7  ;;  %s67_s29 = int_to_ptr.vmem [resolvable:$true] %s66_s29 }
  0x43   :  { %s11180_s5 = sld [smem:[#allocation14_spill]] }
  0x49   :  { %s9240_s10 = scalar_lea.hbm %s11180_s5, 256 }
  0x4a   :  { %p9241_p2 = scmp.ne.s32.totalorder %s11180_s5, %s9240_s10  ;;  %p9244_p3 = scmp.lt.u32.totalorder %s9240_s10, %s11180_s5 }
  0x4c   :  { %p9246_p4 = pnand %p9244_p3, %p9241_p2 }
  0x4e   :  { %9249 = shalt.err (!%p9246_p4)
}
  0x4f   :  { %s9250_s4 = scalar_lea.vmem %s42_s7, 256  ;;  %p9255_p6 = scmp.lt.s32.totalorder %s42_s7, %s42_s7 }
  0x50   :  { %p9251_p5 = scmp.ne.s32.totalorder %s42_s7, %s9250_s4  ;;  %p9256_p7 = scmp.lt.s32.totalorder %s9250_s4, %s9250_s4 }
  0x52   :  { %p9257_p8 = por %p9256_p7, %p9255_p6 }
  0x54   :  { %p9258_p9 = pnand %p9257_p8, %p9251_p5 }
  0x56   :  { %9261 = shalt.err (!%p9258_p9)
}
  0x57   :  { %s11181_s0 = smov 8   ;;  %s11182_s28 = smov 128  }
  0x58   :  { %47 = dma.hbm_to_vmem [thread:$0]  %s11180_s5, 256, %s42_s7, [#allocation4], %s11182_s28, %s11182_s28, %s11181_s0  }
  0x59   :  { %s11183_s27 = sld [smem:[#allocation16_spill]] }
  0x5f   :  { %s9262_s30 = scalar_lea.hbm %s11183_s27, 32 }
  0x60   :  { %p9263_p10 = scmp.ne.s32.totalorder %s11183_s27, %s9262_s30  ;;  %p9266_p11 = scmp.lt.u32.totalorder %s9262_s30, %s11183_s27 }
  0x62   :  { %p9268_p12 = pnand %p9266_p11, %p9263_p10 }
  0x64   :  { %9271 = shalt.err (!%p9268_p12)
}
  0x65   :  { %s9272_s4 = scalar_lea.vmem %s67_s29, 32  ;;  %p9277_p0 = scmp.lt.s32.totalorder %s67_s29, %s67_s29 }
  0x66   :  { %p9273_p13 = scmp.ne.s32.totalorder %s67_s29, %s9272_s4  ;;  %p9278_p1 = scmp.lt.s32.totalorder %s9272_s4, %s9272_s4 }
  0x68   :  { %p9279_p2 = por %p9278_p1, %p9277_p0 }
  0x6a   :  { %p9280_p3 = pnand %p9279_p2, %p9273_p13 }
  0x6c   :  { %9283 = shalt.err (!%p9280_p3)
}
  0x6d   :  { %69 = dma.hbm_to_vmem [thread:$0]  %s11183_s27, 32, %s67_s29, [#allocation6]  }
  0x6e   :  { %s9318_s9 = smov [#allocation10]   ;;  %s9284_s30 = scalar_lea.hbm %s11115_s12, 2048 }
  0x6f   :  { %s101_s3 = sshll.u32 %s9318_s9, 4  ;;  %p9285_p4 = scmp.ne.s32.totalorder %s11115_s12, %s9284_s30  ;;  %s102_s3 = int_to_ptr.vmem [resolvable:$true] %s101_s3 }
  0x70   :  { %p9288_p5 = scmp.lt.u32.totalorder %s9284_s30, %s11115_s12 }
  0x72   :  { %p9290_p6 = pnand %p9288_p5, %p9285_p4 }
  0x74   :  { %9293 = shalt.err (!%p9290_p6)
}
  0x75   :  { %s9294_s4 = scalar_lea.vmem %s102_s3, 2048  ;;  %p9299_p8 = scmp.lt.s32.totalorder %s102_s3, %s102_s3 }
  0x76   :  { %p9295_p7 = scmp.ne.s32.totalorder %s102_s3, %s9294_s4  ;;  %p9300_p9 = scmp.lt.s32.totalorder %s9294_s4, %s9294_s4 }
  0x78   :  { %p9301_p10 = por %p9300_p9, %p9299_p8 }
  0x7a   :  { %p9302_p11 = pnand %p9301_p10, %p9295_p7 }
  0x7c   :  { %9305 = shalt.err (!%p9302_p11)
}
  0x7d   :  { %107 = dma.hbm_to_vmem [thread:$0]  %s11115_s12, 2048, %s102_s3, [#allocation9], %s11182_s28, %s11182_s28, %s11181_s0  }
  0x7e   :  { %9306 = dma.done.wait [#allocation4], 256  }
  0x7f   :  { %9307 = vsyncadd [#allocation4], 4294967040 }
  0x80   :  { %9308 = dma.done.wait [#allocation6], 288  }
  0x81   :  { %9309 = vsyncadd [#allocation6], 4294967008 }
  0x82   :  { %9310 = dma.done.wait [#allocation9], 2080  }
  0x83   :  { %9311 = vsyncadd [#allocation9], 4294965216  ;;  %v9319_v1 = vmov 0.0   ;;  %s11184_s9 = sld [smem:[#allocation18_spill]]  ;;  %v9587_v26 = vld [vmem:[#allocation3] sm:$0xff]  ;;  %vm227_vm0 = vcmask 523264   ;;  %v153_v28 = vlaneseq }
  0x84   :  { %298 = vmatprep.mubr.f32.mxu0 %v9319_v1  ;;  %8229 = vmatprep.subr.mxu1 %v9319_v1  ;;  %v9593_v27 = vld [vmem:[#allocation3 + $0x8] sm:$0xff]  ;;  %s11185_s1 = sld [smem:[#allocation19_spill]]  ;;  %s11153_s8 = smov 80   ;;  %vm9322_vm1 = vmmov 0   ;;  %vm347_vm2 = vcmask 130048   ;;  %v9325_v50 = vmov 0  }
  0x85   :  { %v9598_v29 = vshrl.u32 %v153_v28, 7  ;;  %s11157_s12 = smov 112   ;;  %8231 = vmatprep.mubr.msk.f32.mxu1 %vm9322_vm1, %v9319_v1  ;;  %s11155_s0 = smov 96   ;;  %v158_v49 = vld [vmem:[#allocation7] sm:$0x3]  ;;  %vm164_vm4 = vcmask 1041409  }
  0x86   :  { %s11151_s28 = smov 64   ;;  %vm159_vm3 = vcmp.gt.f32.partialorder %v158_v49, 0.5  ;;  %vm167_vm5 = vcmask 1042434   ;;  %vm170_vm6 = vcmask 1043459   ;;  %vm173_vm7 = vcmask 1044484   ;;  %s11186_s2 = sld [smem:[#allocation20_spill]] }
  0x87   :  { %v9601_v30 = vsub.s32 0, %v9598_v29  ;;  %v9608_v34 = vsub.s32 1, %v9598_v29  ;;  %v9647_v51 = vsel %vm159_vm3, 1, %v9325_v50  ;;  %vm176_vm8 = vcmask 1045509   ;;  %s11149_s7 = smov 16   ;;  %s11147_s5 = smov 32  }
  0x88   :  { %v181_v52 = vrot.slane %v9647_v51, 1  ;;  %v163_v62 = vrot.slane %v9647_v51, 7  ;;  %v166_v63 = vrot.slane %v9647_v51, 6  ;;  %vm179_vm9 = vcmask 1046534   ;;  %s11145_s3 = smov 48   ;;  %s11187_s25 = sld [smem:[#allocation21_spill]] }
  0x89   :  { %v200_v2 = vld [vmem:[%s11184_s9 + $0x8] sm:$0xff]  ;;  %v202_v3 = vld [vmem:[%s11184_s9 + $0x18] sm:$0xff]  ;;  %v199_v4 = vld [vmem:[%s11184_s9] sm:$0xff]  ;;  %vm182_vm10 = vcmask 1047559   ;;  %vm970_vm14 = vcmask 64512   ;;  %s11188_s29 = sld [smem:[#allocation24_spill]] }
  0x8a   :  { %v8726_v5 = vpack.c.bf16 %v202_v3, %v200_v2  ;;  %v201_v6 = vld [vmem:[%s11184_s9 + $0x10] sm:$0xff]  ;;  %v204_v7 = vld [vmem:[%s11184_s9 + $0x28] sm:$0xff]  ;;  %v206_v8 = vld [vmem:[%s11184_s9 + $0x38] sm:$0xff]  ;;  %v9652_v53 = vsel %vm164_vm4, %v9647_v51, %v181_v52  ;;  %v165_v0 = vsel %vm164_vm4, %v163_v62, %v9647_v51  ;;  %v169_v2 = vrot.slane %v9647_v51, 5  ;;  %s11190_s6 = smov 96   ;;  %s11191_s30 = sld [smem:[#allocation23_spill]] }
  0x8b   :  { %v8728_v9 = vpack.c.bf16 %v201_v6, %v199_v4  ;;  %v8730_v10 = vpack.c.bf16 %v206_v8, %v204_v7  ;;  %v203_v11 = vld [vmem:[%s11184_s9 + $0x20] sm:$0xff]  ;;  %v205_v12 = vld [vmem:[%s11184_s9 + $0x30] sm:$0xff]  ;;  %v208_v13 = vld [vmem:[%s11184_s9 + $0x48] sm:$0xff]  ;;  %v168_v3 = vsel %vm167_vm5, %v166_v63, %v165_v0  ;;  %v172_v4 = vrot.slane %v9647_v51, 4  ;;  %s11195_s10 = smov 32   ;;  %s11197_s24 = smov 112  }
  0x8c   :  { %8727 = vmatprep.subr.bf16.mxu0 %v8726_v5  ;;  %v210_v14 = vld [vmem:[%s11184_s9 + $0x58] sm:$0xff]  ;;  %v8732_v15 = vpack.c.bf16 %v205_v12, %v203_v11  ;;  %v207_v17 = vld [vmem:[%s11184_s9 + $0x40] sm:$0xff]  ;;  %v209_v18 = vld [vmem:[%s11184_s9 + $0x50] sm:$0xff]  ;;  %v171_v5 = vsel %vm170_vm6, %v169_v2, %v168_v3  ;;  %v175_v6 = vrot.slane %v9647_v51, 3  ;;  %v178_v8 = vrot.slane %v9647_v51, 2  ;;  %s11199_s26 = sld [smem:[#allocation25_spill]] }
  0x8d   :  { %8729 = vmatpush1.bf16.msra.mxu0 %v8728_v9  ;;  %v8734_v16 = vpack.c.bf16 %v210_v14, %v208_v13  ;;  %v212_v19 = vld [vmem:[%s11184_s9 + $0x68] sm:$0xff]  ;;  %v214_v20 = vld [vmem:[%s11184_s9 + $0x78] sm:$0xff]  ;;  %v8736_v21 = vpack.c.bf16 %v209_v18, %v207_v17  ;;  %v211_v23 = vld [vmem:[%s11184_s9 + $0x60] sm:$0xff]  ;;  %v174_v7 = vsel %vm173_vm7, %v172_v4, %v171_v5  ;;  %v156_v11 = vand.u32 127, %v153_v28 }
  0x8e   :  { %8731 = vmatprep.subr.bf16.mxu0 %v8730_v10  ;;  %v8738_v22 = vpack.c.bf16 %v214_v20, %v212_v19  ;;  %v213_v24 = vld [vmem:[%s11184_s9 + $0x70] sm:$0xff]  ;;  %v215_v31 = vld [vmem:[%s11185_s1] sm:$0x3]  ;;  %v177_v9 = vsel %vm176_vm8, %v175_v6, %v174_v7  ;;  %v188_v19 = vsel %vm167_vm5, %v163_v62, %v9652_v53  ;;  %vm1656_vm4 = vcmask 261120  }
  0x8f   :  { %v8740_v25 = vpack.c.bf16 %v213_v24, %v211_v23  ;;  %v220_v32 = vrot.slane %v215_v31, %v9601_v30  ;;  %v9615_v37 = vrot.slane %v215_v31, %v9608_v34  ;;  %v180_v10 = vsel %vm179_vm9, %v178_v8, %v177_v9 }
  0x90   :  { %v183_v12 = vsel %vm182_vm10, %v181_v52, %v180_v10  ;;  %vm157_vm11 = vcmp.gt.s32.totalorder %v156_v11, %v9598_v29  ;;  %v189_v20 = vsel %vm170_vm6, %v166_v63, %v188_v19  ;;  %vm1658_vm5 = vcmask 392192  }
  0x91   :  { %8733 = vmatpush1.bf16.msra.mxu0 %v8732_v15  ;;  %vm184_vm12 = vcmp.ne.s32.totalorder %v183_v12, 0  ;;  %vm2029_vm6 = vcmask 1041408  }
  0x92   :  { %8735 = vmatprep.subr.bf16.mxu0 %v8734_v16  ;;  %vm185_vm13 = vmor %vm157_vm11, %vm184_vm12 }
  0x93   :  { %v9715_v14 = vsel %vm185_vm13, -1e+09, %v9319_v1 }
  0x95   :  { %8737 = vmatpush1.bf16.msra.mxu0 %v8736_v21  ;;  %v190_v21 = vsel %vm173_vm7, %v169_v2, %v189_v20  ;;  %vm2639_vm7 = vcmask 48128  }
  0x96   :  { %8739 = vmatprep.subr.bf16.mxu0 %v8738_v22  ;;  %v191_v22 = vsel %vm176_vm8, %v172_v4, %v190_v21  ;;  %vm2733_vm8 = vcmask 1045504  }
  0x97   :  { %v192_v23 = vsel %vm179_vm9, %v175_v6, %v191_v22  ;;  %vm7457_vm9 = vcmask 517120  }
  0x98   :  { %v193_v31 = vsel %vm182_vm10, %v178_v8, %v192_v23 }
  0x99   :  { %8741 = vmatpush1.bf16.msra.mxu0 %v8740_v25  ;;  %vm194_vm15 = vcmp.ne.s32.totalorder %v193_v31, 0 }
  0x9a   :  { %8224 = vmatprep.subr.mxu0 %v9319_v1  ;;  %vm195_vm3 = vmor %vm157_vm11, %vm194_vm15 }
  0x9b   :  { %v9733_v49 = vsel %vm195_vm3, -1e+09, %v9319_v1 }
  0x9c   :  { %7677 = vmatmul.mubr.msk.f32.vlgmr.msra.gmra.mrb[0].mxu0 %vm227_vm0, %v9587_v26 }
  0x9d   :  { %304 = vmatprep.mubr.f32.mxu0 %v9319_v1 }
  0xa0   :  { %7678 = vmatmul.mubr.msk.f32.gmra.mrb[2].mxu0 %vm227_vm0, %v9593_v27 }
  0xa1   :  { %8226 = vmatprep.mubr.msk.f32.mxu0 %vm9322_vm1, %v9319_v1 }
 0x16f   :  { %v300_v33 = vpop.f32.mrb[0].mxu0 }
 0x170   :  { %v301_v35 = vadd.f32 %v300_v33, %v220_v32  ;;  %v9610_v36 = vpop.f32.mrb[1].mxu0 }
 0x171   :  { %v9689_v61 = vadd.f32 %v9610_v36, %v9615_v37 }
 0x172   :  { %316 = vrot.lane.b32.xlu1 %v301_v35, %s11153_s8  ;;  %312 = vrot.lane.b32.xlu0 %v301_v35, %s11157_s12 }
 0x173   :  { %v306_v38 = vpop.f32.mrb[2].mxu0 }
 0x174   :  { %v9621_v39 = vadd.f32 %v306_v38, %v220_v32  ;;  %v308_v40 = vpop.f32.mrb[3].mxu0 }
 0x175   :  { %v9624_v41 = vadd.f32 %v308_v40, %v9615_v37 }
 0x176   :  { %319 = vrot.lane.b32.xlu1 %v9621_v39, %s11157_s12  ;;  %314 = vrot.lane.b32.xlu0 %v301_v35, %s11155_s0 }
 0x17a   :  { %323 = vrot.lane.b32.xlu1 %v9621_v39, %s11153_s8  ;;  %321 = vrot.lane.b32.xlu0 %v9621_v39, %s11155_s0 }
 0x17e   :  { %345 = vrot.lane.b32.xlu1 %v301_v35, %s11151_s28 }
 0x1e4   :  { %v317_v42 = vpop.permute.xlu1 %316  ;;  %v313_v43 = vpop.permute.xlu0 %312 }
 0x1e5   :  { %574 = vrot.lane.b32.xlu1 %v317_v42, %s11151_s28  ;;  %422 = vrot.lane.b32.xlu0 %v313_v43, %s11151_s28 }
 0x1e8   :  { %v320_v44 = vpop.permute.xlu1 %319  ;;  %v315_v45 = vpop.permute.xlu0 %314 }
 0x1e9   :  { %726 = vrot.lane.b32.xlu1 %v320_v44, %s11151_s28  ;;  %498 = vrot.lane.b32.xlu0 %v315_v45, %s11151_s28 }
 0x1ec   :  { %v324_v46 = vpop.permute.xlu1 %323  ;;  %v322_v47 = vpop.permute.xlu0 %321 }
 0x1ed   :  { %878 = vrot.lane.b32.xlu1 %v324_v46, %s11151_s28  ;;  %650 = vrot.lane.b32.xlu0 %v9621_v39, %s11151_s28 }
 0x1f0   :  { %v346_v48 = vpop.permute.xlu1 %345 }
 0x1f1   :  { %8225 = vmatpush3.xpose.msk.msra.mxu0 %vm347_vm2, %v346_v48  ;;  %802 = vrot.lane.b32.xlu0 %v322_v47, %s11151_s28  ;;  %s11193_s28 = smov 64  }
 0x1f2   :  { %8249 = vmatprep.subr.mxu0 %v9319_v1 }
 0x1f4   :  { %8227 = vmatmul.mubr.msk.f32.vlgmr.msra.gmra.mrb[4].mxu0 %vm347_vm2, %v301_v35 }
 0x1f5   :  { %8251 = vmatprep.mubr.msk.f32.mxu0 %vm9322_vm1, %v9319_v1 }
 0x257   :  { %v575_v54 = vpop.permute.xlu1 %574  ;;  %v423_v55 = vpop.permute.xlu0 %422 }
 0x258   :  { %8230 = vmatpush3.xpose.msk.msra.mxu1 %vm347_vm2, %v423_v55 }
 0x259   :  { %8234 = vmatprep.subr.mxu1 %v9319_v1 }
 0x25b   :  { %v727_v56 = vpop.permute.xlu1 %726  ;;  %8232 = vmatmul.mubr.msk.f32.vlgmr.msra.gmra.mrb[0].mxu1 %vm347_vm2, %v313_v43  ;;  %v499_v57 = vpop.permute.xlu0 %498 }
 0x25c   :  { %8235 = vmatpush3.xpose.msk.msra.mxu1 %vm347_vm2, %v499_v57  ;;  %8250 = vmatpush3.xpose.msk.msra.mxu0 %vm347_vm2, %v727_v56 }
 0x25d   :  { %8236 = vmatprep.mubr.msk.f32.mxu1 %vm9322_vm1, %v9319_v1  ;;  %8259 = vmatprep.subr.mxu0 %v9319_v1 }
 0x25e   :  { %8239 = vmatprep.subr.mxu1 %v9319_v1 }
 0x25f   :  { %8252 = vmatmul.mubr.msk.f32.vlgmr.msra.gmra.mrb[6].mxu0 %vm347_vm2, %v320_v44  ;;  %v879_v58 = vpop.permute.xlu1 %878  ;;  %8237 = vmatmul.mubr.msk.f32.vlgmr.msra.gmra.mrb[2].mxu1 %vm347_vm2, %v315_v45  ;;  %v651_v59 = vpop.permute.xlu0 %650 }
 0x260   :  { %8240 = vmatpush3.xpose.msk.msra.mxu1 %vm347_vm2, %v575_v54  ;;  %8260 = vmatpush3.xpose.msk.msra.mxu0 %vm347_vm2, %v879_v58 }
 0x261   :  { %8241 = vmatprep.mubr.msk.f32.mxu1 %vm9322_vm1, %v9319_v1  ;;  %8261 = vmatprep.mubr.msk.f32.mxu0 %vm9322_vm1, %v9319_v1 }
 0x262   :  { %8244 = vmatprep.subr.mxu1 %v9319_v1  ;;  %8269 = vmatprep.subr.mxu0 %v9319_v1 }
 0x263   :  { %8242 = vmatmul.mubr.msk.f32.vlgmr.msra.gmra.mrb[4].mxu1 %vm347_vm2, %v317_v42  ;;  %8262 = vmatmul.mubr.msk.f32.vlgmr.msra.gmra.mrb[8].mxu0 %vm347_vm2, %v324_v46  ;;  %v803_v60 = vpop.permute.xlu0 %802 }
 0x264   :  { %8245 = vmatpush3.xpose.msk.msra.mxu1 %vm347_vm2, %v651_v59  ;;  %8246 = vmatprep.mubr.msk.f32.mxu1 %vm9322_vm1, %v9319_v1 }
 0x265   :  { %8254 = vmatprep.subr.mxu1 %v9319_v1  ;;  %8271 = vmatprep.mubr.msk.f32.mxu0 %vm9322_vm1, %v9319_v1 }
 0x267   :  { %8247 = vmatmul.mubr.msk.f32.vlgmr.msra.gmra.mrb[6].mxu1 %vm347_vm2, %v9621_v39 }
 0x268   :  { %8255 = vmatpush3.xpose.msk.msra.mxu1 %vm347_vm2, %v803_v60  ;;  %8256 = vmatprep.mubr.msk.f32.mxu1 %vm9322_vm1, %v9319_v1 }
 0x269   :  { %8264 = vmatprep.subr.mxu1 %v9319_v1 }
 0x26b   :  { %8257 = vmatmul.mubr.msk.f32.vlgmr.msra.gmra.mrb[8].mxu1 %vm347_vm2, %v322_v47 }
 0x26c   :  { %8265 = vmatpush3.msra.mxu1 %v9689_v61  ;;  %8266 = vmatprep.mubr.msk.f32.mxu1 %vm9322_vm1, %v9319_v1 }
 0x26d   :  { %8274 = vmatprep.subr.mxu1 %v9319_v1 }
 0x2c7   :  { %v418_v13 = vpop.f32.mrb[4].mxu0 }
 0x2c8   :  { %v954_v15 = vmul.f32 0.25, %v418_v13  ;;  %v8228_v16 = vpop.f32.mrb[5].mxu0 }
 0x2ca   :  { %v962_v17 = vadd.f32 %v954_v15, %v9715_v14 }
 0x2cc   :  { %v971_v18 = vsel %vm970_vm14, %v962_v17, -inf }
 0x2cd   :  { %972 = vmax.xlane.f32.xlu0 %v971_v18 }
 0x32e   :  { %v494_v24 = vpop.f32.mrb[0].mxu1 }
 0x32f   :  { %v955_v25 = vmul.f32 0.25, %v494_v24  ;;  %v8233_v28 = vpop.f32.mrb[1].mxu1 }
 0x331   :  { %v963_v32 = vadd.f32 %v955_v25, %v9715_v14 }
 0x332   :  { %v570_v33 = vpop.f32.mrb[2].mxu1  ;;  %v798_v35 = vpop.f32.mrb[6].mxu0 }
 0x333   :  { %v956_v36 = vmul.f32 0.25, %v570_v33  ;;  %v8238_v37 = vpop.f32.mrb[3].mxu1  ;;  %v8253_v38 = vpop.f32.mrb[7].mxu0  ;;  %v974_v39 = vsel %vm970_vm14, %v963_v32, -inf  ;;  %v959_v44 = vmul.f32 0.25, %v798_v35 }
 0x334   :  { %975 = vmax.xlane.f32.xlu1 %v974_v39 }
 0x335   :  { %v964_v40 = vadd.f32 %v956_v36, %v9715_v14  ;;  %v967_v56 = vadd.f32 %v959_v44, %v9733_v49 }
 0x336   :  { %v646_v42 = vpop.f32.mrb[4].mxu1  ;;  %v950_v43 = vpop.f32.mrb[8].mxu0 }
 0x337   :  { %v957_v45 = vmul.f32 0.25, %v646_v42  ;;  %v8243_v46 = vpop.f32.mrb[5].mxu1  ;;  %v8263_v47 = vpop.f32.mrb[9].mxu0  ;;  %v977_v48 = vsel %vm970_vm14, %v964_v40, -inf  ;;  %v961_v52 = vmul.f32 0.25, %v950_v43  ;;  %v986_v62 = vsel %vm970_vm14, %v967_v56, -inf }
 0x338   :  { %978 = vmax.xlane.f32.xlu0 %v977_v48 }
 0x339   :  { %v965_v50 = vadd.f32 %v957_v45, %v9715_v14  ;;  %v969_v0 = vadd.f32 %v961_v52, %v9733_v49 }
 0x33a   :  { %v722_v51 = vpop.f32.mrb[6].mxu1 }
 0x33b   :  { %v958_v53 = vmul.f32 0.25, %v722_v51  ;;  %v8248_v54 = vpop.f32.mrb[7].mxu1  ;;  %v980_v55 = vsel %vm970_vm14, %v965_v50, -inf  ;;  %v992_v3 = vsel %vm970_vm14, %v969_v0, -inf }
 0x33c   :  { %981 = vmax.xlane.f32.xlu0 %v980_v55 }
 0x33d   :  { %v966_v57 = vadd.f32 %v958_v53, %v9733_v49 }
 0x33e   :  { %v874_v58 = vpop.f32.mrb[8].mxu1 }
 0x33f   :  { %v960_v59 = vmul.f32 0.25, %v874_v58  ;;  %v8258_v60 = vpop.f32.mrb[9].mxu1  ;;  %v983_v63 = vsel %vm970_vm14, %v966_v57, -inf }
 0x340   :  { %987 = vmax.xlane.f32.xlu0 %v986_v62  ;;  %984 = vmax.xlane.f32.xlu1 %v983_v63 }
 0x341   :  { %v968_v2 = vadd.f32 %v960_v59, %v9733_v49 }
 0x343   :  { %v989_v4 = vsel %vm970_vm14, %v968_v2, -inf }
 0x344   :  { %993 = vmax.xlane.f32.xlu0 %v992_v3  ;;  %990 = vmax.xlane.f32.xlu1 %v989_v4 }
 0x355   :  { %326 = vrot.lane.b32.xlu1 %v9689_v61, %s11157_s12 }
 0x359   :  { %332 = vrot.lane.b32.xlu1 %v9689_v61, %s11153_s8 }
 0x35a   :  { %329 = vrot.lane.b32.xlu0 %v9689_v61, %s11155_s0  ;;  %v973_v5 = vpop.xlane.xlu0 %972 }
 0x35b   :  { %v995_v6 = vsub.f32 %v962_v17, %v973_v5 }
 0x35d   :  { %336 = vrot.lane.b32.xlu1 %v9624_v41, %s11157_s12  ;;  %v1003_v7 = vmul.f32 1.442695, %v995_v6 }
 0x35f   :  { %9018 = vpow2.f32 %v1003_v7 }
 0x369   :  { %v9019_v8 = vpop.eup %9018 }
 0x36a   :  { %v1019_v9 = vsel %vm970_vm14, %v9019_v8, 0.0 }
 0x381   :  { %1020 = vadd.xlane.f32.xlu1 %v1019_v9 }
 0x3c1   :  { %v976_v10 = vpop.xlane.xlu1 %975 }
 0x3c2   :  { %v996_v11 = vsub.f32 %v963_v32, %v976_v10 }
 0x3c4   :  { %v1005_v12 = vmul.f32 1.442695, %v996_v11 }
 0x3c5   :  { %v979_v13 = vpop.xlane.xlu0 %978 }
 0x3c6   :  { %9020 = vpow2.f32 %v1005_v12  ;;  %v997_v15 = vsub.f32 %v964_v40, %v979_v13 }
 0x3c8   :  { %v1007_v16 = vmul.f32 1.442695, %v997_v15 }
 0x3c9   :  { %v982_v18 = vpop.xlane.xlu0 %981 }
 0x3ca   :  { %9022 = vpow2.f32 %v1007_v16  ;;  %v998_v61 = vsub.f32 %v965_v50, %v982_v18 }
 0x3cc   :  { %v1009_v25 = vmul.f32 1.442695, %v998_v61 }
 0x3cd   :  { %v985_v19 = vpop.xlane.xlu1 %984  ;;  %v988_v20 = vpop.xlane.xlu0 %987 }
 0x3ce   :  { %v999_v21 = vsub.f32 %v966_v57, %v985_v19  ;;  %v1000_v17 = vsub.f32 %v967_v56, %v988_v20 }
 0x3d0   :  { %v9021_v22 = vpop.eup %9020  ;;  %v1011_v23 = vmul.f32 1.442695, %v999_v21  ;;  %v1013_v24 = vmul.f32 1.442695, %v1000_v17  ;;  %v1675_v17 = vld [vmem:[%s11186_s2] sm:$0xff] }
 0x3d1   :  { %v991_v28 = vpop.xlane.xlu1 %990  ;;  %v994_v31 = vpop.xlane.xlu0 %993  ;;  %v1022_v32 = vsel %vm970_vm14, %v9021_v22, 0.0 }
 0x3d2   :  { %9024 = vpow2.f32 %v1011_v23  ;;  %v1001_v33 = vsub.f32 %v968_v2, %v991_v28  ;;  %v1002_v35 = vsub.f32 %v969_v0, %v994_v31  ;;  %1023 = vadd.xlane.f32.xlu0 %v1022_v32  ;;  %v1677_v23 = vld [vmem:[%s11186_s2 + $0x10] sm:$0xff] }
 0x3d3   :  { %9026 = vpow2.f32 %v1013_v24 }
 0x3d4   :  { %v9023_v36 = vpop.eup %9022  ;;  %v1015_v37 = vmul.f32 1.442695, %v1001_v33  ;;  %9028 = vpow2.f32 %v1009_v25  ;;  %v1017_v38 = vmul.f32 1.442695, %v1002_v35  ;;  %v1678_v25 = vld [vmem:[%s11186_s2 + $0x18] sm:$0xff] }
 0x3d5   :  { %v327_v39 = vpop.permute.xlu1 %326  ;;  %v1025_v40 = vsel %vm970_vm14, %v9023_v36, 0.0  ;;  %v330_v58 = vpop.permute.xlu0 %329  ;;  %v8746_v28 = vpack.c.bf16 %v1678_v25, %v1677_v23 }
 0x3d6   :  { %9030 = vpow2.f32 %v1015_v37  ;;  %8270 = vmatpush3.msra.mxu0 %v327_v39  ;;  %1026 = vadd.xlane.f32.xlu1 %v1025_v40  ;;  %v1680_v37 = vld [vmem:[%s11186_s2 + $0x28] sm:$0xff]  ;;  %v1681_v39 = vld [vmem:[%s11186_s2 + $0x30] sm:$0xff]  ;;  %v1682_v40 = vld [vmem:[%s11186_s2 + $0x38] sm:$0xff] }
 0x3d7   :  { %8279 = vmatprep.subr.mxu0 %v9319_v1  ;;  %9032 = vpow2.f32 %v1017_v38 }
 0x3d9   :  { %v333_v53 = vpop.permute.xlu1 %332 }
 0x3dc   :  { %v9025_v42 = vpop.eup %9024 }
 0x3dd   :  { %v9757_v43 = vpop.eup %9026  ;;  %v1031_v44 = vsel %vm970_vm14, %v9025_v42, 0.0  ;;  %v337_v54 = vpop.permute.xlu1 %336 }
 0x3de   :  { %1032 = vadd.xlane.f32.xlu1 %v1031_v44  ;;  %v1034_v45 = vsel %vm970_vm14, %v9757_v43, 0.0  ;;  %v9029_v46 = vpop.eup %9028 }
 0x3df   :  { %1035 = vadd.xlane.f32.xlu0 %v1034_v45  ;;  %v1028_v50 = vsel %vm970_vm14, %v9029_v46, 0.0 }
 0x3e0   :  { %v9031_v47 = vpop.eup %9030 }
 0x3e1   :  { %v1037_v48 = vsel %vm970_vm14, %v9031_v47, 0.0  ;;  %v9764_v51 = vpop.eup %9032 }
 0x3e2   :  { %1038 = vadd.xlane.f32.xlu1 %v1037_v48  ;;  %v1040_v52 = vsel %vm970_vm14, %v9764_v51, 0.0 }
 0x3e3   :  { %1029 = vadd.xlane.f32.xlu0 %v1028_v50 }
 0x3e7   :  { %1041 = vadd.xlane.f32.xlu0 %v1040_v52 }
 0x3f3   :  { %342 = vrot.lane.b32.xlu1 %v9624_v41, %s11153_s8  ;;  %s11192_s8 = smov 80  }
 0x3fd   :  { %339 = vrot.lane.b32.xlu0 %v9624_v41, %s11155_s0  ;;  %s11194_s0 = smov 16  }
 0x40e   :  { %v1021_v55 = vpop.xlane.xlu1 %1020 }
 0x40f   :  { %9034 = vrcp.f32 %v1021_v55 }
 0x419   :  { %v9035_v56 = vpop.eup %9034 }
 0x41a   :  { %v1051_v57 = vmul.f32 %v9035_v56, %v9019_v8 }
 0x41c   :  { %8267 = vmatmul.mubr.msk.f32.vlgmr.msra.gmra.mrb[10].mxu1 %vm970_vm14, %v1051_v57 }
 0x41d   :  { %8275 = vmatpush3.msra.mxu1 %v330_v58  ;;  %8276 = vmatprep.mubr.msk.f32.mxu1 %vm9322_vm1, %v9319_v1 }
 0x41e   :  { %8284 = vmatprep.subr.mxu1 %v9319_v1 }
 0x45f   :  { %v1024_v59 = vpop.xlane.xlu0 %1023 }
 0x460   :  { %9036 = vrcp.f32 %v1024_v59 }
 0x463   :  { %v1027_v60 = vpop.xlane.xlu1 %1026 }
 0x464   :  { %9038 = vrcp.f32 %v1027_v60 }
 0x46a   :  { %v9037_v62 = vpop.eup %9036 }
 0x46b   :  { %v1033_v63 = vpop.xlane.xlu1 %1032  ;;  %v1052_v0 = vmul.f32 %v9037_v62, %v9021_v22  ;;  %v1676_v22 = vld [vmem:[%s11186_s2 + $0x8] sm:$0xff] }
 0x46c   :  { %9040 = vrcp.f32 %v1033_v63  ;;  %v1036_v2 = vpop.xlane.xlu0 %1035  ;;  %v8742_v24 = vpack.c.bf16 %v1676_v22, %v1675_v17  ;;  %v1916_v17 = vld [vmem:[%s11188_s29 + $0x28] sm:$0xff] }
 0x46d   :  { %8272 = vmatmul.mubr.msk.f32.vlgmr.msra.gmra.mrb[10].mxu0 %vm970_vm14, %v1052_v0 }
 0x46e   :  { %v9039_v3 = vpop.eup %9038  ;;  %8280 = vmatpush3.msra.mxu0 %v333_v53  ;;  %8281 = vmatprep.mubr.msk.f32.mxu0 %vm9322_vm1, %v9319_v1 }
 0x46f   :  { %v1039_v4 = vpop.xlane.xlu1 %1038  ;;  %v1053_v5 = vmul.f32 %v9039_v3, %v9023_v36  ;;  %8289 = vmatprep.subr.mxu0 %v9319_v1  ;;  %v1679_v36 = vld [vmem:[%s11186_s2 + $0x20] sm:$0xff] }
 0x470   :  { %9042 = vrcp.f32 %v1039_v4  ;;  %v1030_v6 = vpop.xlane.xlu0 %1029  ;;  %v8750_v38 = vpack.c.bf16 %v1680_v37, %v1679_v36  ;;  %v7703_v4 = vld [vmem:[%s11187_s25] ss:$0 sm:$0xff]  ;;  %v151_v36 = vld [vmem:[#allocation5] sm:$0xff] }
 0x471   :  { %9044 = vrcp.f32 %v1030_v6  ;;  %8277 = vmatmul.mubr.msk.f32.vlgmr.msra.gmra.mrb[12].mxu1 %vm970_vm14, %v1053_v5 }
 0x472   :  { %8285 = vmatpush3.msra.mxu1 %v9624_v41  ;;  %8286 = vmatprep.mubr.msk.f32.mxu1 %vm9322_vm1, %v9319_v1  ;;  %9046 = vrcp.f32 %v1036_v2 }
 0x473   :  { %8294 = vmatprep.subr.mxu1 %v9319_v1  ;;  %v343_v61 = vpop.permute.xlu1 %342 }
 0x474   :  { %v1042_v7 = vpop.xlane.xlu0 %1041 }
 0x475   :  { %9048 = vrcp.f32 %v1042_v7 }
 0x476   :  { %v9041_v8 = vpop.eup %9040 }
 0x477   :  { %v1055_v9 = vmul.f32 %v9041_v8, %v9025_v42  ;;  %v8754_v42 = vpack.c.bf16 %v1682_v40, %v1681_v39 }
 0x478   :  { %v340_v10 = vpop.permute.xlu0 %339 }
 0x479   :  { %8287 = vmatmul.mubr.msk.f32.vlgmr.msra.gmra.mrb[14].mxu1 %vm970_vm14, %v1055_v9 }
 0x47a   :  { %v9043_v11 = vpop.eup %9042  ;;  %8295 = vmatpush3.msra.mxu1 %v340_v10  ;;  %8296 = vmatprep.mubr.msk.f32.mxu1 %vm9322_vm1, %v9319_v1 }
 0x47b   :  { %v9045_v12 = vpop.eup %9044  ;;  %v1057_v41 = vmul.f32 %v9043_v11, %v9031_v47  ;;  %8743 = vmatprep.subr.bf16.mxu1 %v8742_v24 }
 0x47c   :  { %v1054_v13 = vmul.f32 %v9045_v12, %v9029_v46  ;;  %v9047_v15 = vpop.eup %9046 }
 0x47d   :  { %8297 = vmatmul.mubr.msk.f32.vlgmr.msra.gmra.mrb[16].mxu1 %vm970_vm14, %v1057_v41  ;;  %v1056_v16 = vmul.f32 %v9047_v15, %v9757_v43  ;;  %v1911_v15 = vld [vmem:[%s11188_s29] sm:$0xff] }
 0x47e   :  { %8282 = vmatmul.mubr.msk.f32.vlgmr.msra.gmra.mrb[12].mxu0 %vm970_vm14, %v1054_v13  ;;  %8745 = vmatpush3.bf16.msra.mxu1 %v8742_v24 }
 0x47f   :  { %8290 = vmatpush3.msra.mxu0 %v337_v54  ;;  %8291 = vmatprep.mubr.msk.f32.mxu0 %vm9322_vm1, %v9319_v1  ;;  %v9049_v18 = vpop.eup %9048 }
 0x480   :  { %8299 = vmatprep.subr.mxu0 %v9319_v1  ;;  %v1058_v19 = vmul.f32 %v9049_v18, %v9764_v51  ;;  %8747 = vmatprep.subr.bf16.mxu1 %v8746_v28 }
 0x482   :  { %8292 = vmatmul.mubr.msk.f32.vlgmr.msra.gmra.mrb[14].mxu0 %vm970_vm14, %v1056_v16  ;;  %8749 = vmatpush3.bf16.msra.mxu1 %v8746_v28  ;;  %v1912_v16 = vld [vmem:[%s11188_s29 + $0x8] sm:$0xff]  ;;  %v1917_v28 = vld [vmem:[%s11188_s29 + $0x30] sm:$0xff] }
 0x483   :  { %8300 = vmatpush3.msra.mxu0 %v343_v61  ;;  %8301 = vmatprep.mubr.msk.f32.mxu0 %vm9322_vm1, %v9319_v1  ;;  %v8774_v18 = vpack.c.bf16 %v1912_v16, %v1911_v15  ;;  %v1913_v61 = vld [vmem:[%s11188_s29 + $0x10] sm:$0xff] }
 0x484   :  { %8751 = vmatprep.subr.bf16.mxu1 %v8750_v38 }
 0x486   :  { %8302 = vmatmul.mubr.msk.f32.vlgmr.msra.gmra.mrb[16].mxu0 %vm970_vm14, %v1058_v19  ;;  %8753 = vmatpush3.bf16.msra.mxu1 %v8750_v38  ;;  %v1914_v19 = vld [vmem:[%s11188_s29 + $0x18] sm:$0xff] }
 0x487   :  { %8755 = vmatprep.subr.bf16.mxu1 %v8754_v42 }
 0x48a   :  { %8757 = vmatpush3.bf16.msra.mxu1 %v8754_v42 }
 0x48b   :  { %8775 = vmatprep.subr.bf16.mxu1 %v8774_v18 }
 0x4ef   :  { %v1128_v20 = vpop.f32.mrb[10].mxu1 }
 0x4f0   :  { %v8268_v21 = vpop.f32.mrb[11].mxu1 }
 0x4f1   :  { %v1915_v21 = vld [vmem:[%s11188_s29 + $0x20] sm:$0xff] }
 0x4f2   :  { %v8782_v22 = vpack.c.bf16 %v1916_v17, %v1915_v21 }
 0x540   :  { %v1201_v31 = vpop.f32.mrb[10].mxu0 }
 0x541   :  { %1644 = vrot.lane.b32.xlu0 %v1201_v31, %s11149_s7  ;;  %v8273_v32 = vpop.f32.mrb[11].mxu0  ;;  %v1918_v31 = vld [vmem:[%s11188_s29 + $0x38] sm:$0xff] }
 0x544   :  { %v1274_v33 = vpop.f32.mrb[12].mxu1 }
 0x545   :  { %1648 = vrot.lane.b32.xlu1 %v1274_v33, %s11147_s5  ;;  %v8278_v35 = vpop.f32.mrb[13].mxu1  ;;  %v8786_v33 = vpack.c.bf16 %v1918_v31, %v1917_v28 }
 0x54c   :  { %v1420_v43 = vpop.f32.mrb[14].mxu1 }
 0x54d   :  { %v8288_v44 = vpop.f32.mrb[15].mxu1 }
 0x54e   :  { %v152_v44 = vld [vmem:[#allocation5 + $0x8] sm:$0xf] }
 0x550   :  { %v1566_v45 = vpop.f32.mrb[16].mxu1 }
 0x551   :  { %v1347_v46 = vpop.f32.mrb[12].mxu0  ;;  %v8298_v47 = vpop.f32.mrb[17].mxu1 }
 0x552   :  { %1652 = vrot.lane.b32.xlu1 %v1347_v46, %s11145_s3  ;;  %v8283_v48 = vpop.f32.mrb[13].mxu0 }
 0x555   :  { %v1493_v50 = vpop.f32.mrb[14].mxu0 }
 0x556   :  { %1661 = vrot.lane.b32.xlu0 %v1493_v50, %s11149_s7  ;;  %v8293_v51 = vpop.f32.mrb[15].mxu0  ;;  %s11196_s7 = smov 48  }
 0x559   :  { %v1639_v52 = vpop.f32.mrb[16].mxu0 }
 0x55a   :  { %1669 = vrot.lane.b32.xlu1 %v1639_v52, %s11145_s3  ;;  %v8303_v53 = vpop.f32.mrb[17].mxu0  ;;  %1665 = vrot.lane.b32.xlu0 %v1566_v45, %s11147_s5  ;;  %s11189_s3 = sld [smem:[#allocation22_spill]] }
 0x560   :  { %v1815_v23 = vld [vmem:[%s11189_s3] sm:$0xff]  ;;  %v1816_v24 = vld [vmem:[%s11189_s3 + $0x8] sm:$0xff]  ;;  %v1817_v32 = vld [vmem:[%s11189_s3 + $0x10] sm:$0xff] }
 0x561   :  { %v8758_v25 = vpack.c.bf16 %v1816_v24, %v1815_v23  ;;  %v1818_v35 = vld [vmem:[%s11189_s3 + $0x18] sm:$0xff]  ;;  %v1819_v38 = vld [vmem:[%s11189_s3 + $0x20] sm:$0xff]  ;;  %v1820_v39 = vld [vmem:[%s11189_s3 + $0x28] sm:$0xff] }
 0x562   :  { %v8762_v37 = vpack.c.bf16 %v1818_v35, %v1817_v32  ;;  %v8766_v40 = vpack.c.bf16 %v1820_v39, %v1819_v38  ;;  %v1821_v42 = vld [vmem:[%s11189_s3 + $0x30] sm:$0xff] }
 0x563   :  { %8759 = vmatprep.subr.bf16.mxu0 %v8758_v25 }
 0x564   :  { %8761 = vmatpush3.bf16.msra.mxu0 %v8758_v25 }
 0x565   :  { %8763 = vmatprep.subr.bf16.mxu0 %v8762_v37 }
 0x568   :  { %8765 = vmatpush3.bf16.msra.mxu0 %v8762_v37 }
 0x569   :  { %8767 = vmatprep.subr.bf16.mxu0 %v8766_v40 }
 0x56c   :  { %8769 = vmatpush3.bf16.msra.mxu0 %v8766_v40 }
 0x5b3   :  { %v1645_v54 = vpop.permute.xlu0 %1644 }
 0x5b4   :  { %v1655_v56 = vsel %vm347_vm2, %v1128_v20, %v1645_v54  ;;  %v8778_v20 = vpack.c.bf16 %v1914_v19, %v1913_v61  ;;  %v7706_v19 = vld [vmem:[%s11191_s30] ss:$0 sm:$0xff] }
 0x5b7   :  { %v1649_v55 = vpop.permute.xlu1 %1648 }
 0x5b8   :  { %v1657_v57 = vsel %vm1656_vm4, %v1655_v56, %v1649_v55 }
 0x5c4   :  { %v1653_v58 = vpop.permute.xlu1 %1652 }
 0x5c5   :  { %v1659_v59 = vsel %vm1658_vm5, %v1657_v57, %v1653_v58 }
 0x5c6   :  { %8320 = vmatprep.mubr.msk.f32.mxu1 %vm227_vm0, %v1659_v59 }
 0x5c8   :  { %v1662_v60 = vpop.permute.xlu0 %1661 }
 0x5c9   :  { %v1672_v62 = vsel %vm347_vm2, %v1420_v43, %v1662_v60  ;;  %v1822_v43 = vld [vmem:[%s11189_s3 + $0x38] sm:$0xff] }
 0x5ca   :  { %v8770_v45 = vpack.c.bf16 %v1822_v43, %v1821_v42 }
 0x5cc   :  { %v1670_v63 = vpop.permute.xlu1 %1669  ;;  %v1666_v0 = vpop.permute.xlu0 %1665  ;;  %8771 = vmatprep.subr.bf16.mxu0 %v8770_v45 }
 0x5cd   :  { %v1673_v2 = vsel %vm1656_vm4, %v1672_v62, %v1666_v0  ;;  %8773 = vmatpush3.bf16.msra.mxu0 %v8770_v45  ;;  %v9913_v62 = vld [vmem:[%s11117_s14] sm:$0x7] }
 0x5ce   :  { %v1674_v3 = vsel %vm1658_vm5, %v1673_v2, %v1670_v63  ;;  %8361 = vmatprep.subr.mxu0 %v9319_v1  ;;  %v9918_v63 = vld [vmem:[%s11118_s15] sm:$0x7]  ;;  %v1806_v2 = vrot.slane %v9913_v62, %v9601_v30 }
 0x5cf   :  { %8321 = vmatmul.mubr.msk.f32.vlgmr.msra.gmra.mrb[18].mxu1 %vm227_vm0, %v1674_v3 }
 0x5d0   :  { %8777 = vmatpush3.bf16.msra.mxu1 %v8774_v18  ;;  %8358 = vmatprep.mubr.msk.f32.mxu1 %vm227_vm0, %v151_v36 }
 0x5d1   :  { %8779 = vmatprep.subr.bf16.mxu1 %v8778_v20 }
 0x5d4   :  { %8781 = vmatpush3.bf16.msra.mxu1 %v8778_v20 }
 0x5d5   :  { %8783 = vmatprep.subr.bf16.mxu1 %v8782_v22 }
 0x5d8   :  { %8785 = vmatpush3.bf16.msra.mxu1 %v8782_v22 }
 0x5d9   :  { %8787 = vmatprep.subr.bf16.mxu1 %v8786_v33 }
 0x5dc   :  { %8789 = vmatpush3.bf16.msra.mxu1 %v8786_v33 }
 0x5dd   :  { %8381 = vmatprep.subr.mxu1 %v9319_v1 }
 0x5df   :  { %8359 = vmatmul.mubr.msk.f32.vlgmr.msra.gmra.mrb[20].mxu1 %vm227_vm0, %v152_v44 }
 0x5e0   :  { %8383 = vmatprep.mubr.msk.f32.mxu1 %vm9322_vm1, %v9319_v1 }
 0x6a2   :  { %v8322_v5 = vpop.f32.mrb[18].mxu1 }
 0x6a3   :  { %v1768_v6 = vadd.f32 %v8322_v5, %v7703_v4  ;;  %v1762_v7 = vpop.f32.mrb[19].mxu1  ;;  %v1812_v5 = vrot.slane %v9918_v63, %v9601_v30 }
 0x6a4   :  { %v1763_v8 = vadd.f32 %v7703_v4, %v1762_v7 }
 0x6a5   :  { %v9841_v9 = vadd.f32 %v1768_v6, %v9593_v27 }
 0x6a6   :  { %v9844_v10 = vadd.f32 %v1763_v8, %v9587_v26 }
 0x6a7   :  { %v1776_v11 = vsel %vm227_vm0, %v9841_v9, 0.0  ;;  %v1782_v27 = vmul.f32 %v9841_v9, %v9841_v9 }
 0x6a8   :  { %1777 = vadd.xlane.f32.xlu1 %v1776_v11  ;;  %v1773_v12 = vsel %vm227_vm0, %v9844_v10, 0.0  ;;  %v1781_v41 = vmul.f32 %v9844_v10, %v9844_v10 }
 0x6a9   :  { %1774 = vadd.xlane.f32.xlu0 %v1773_v12  ;;  %v1786_v26 = vsel %vm227_vm0, %v1782_v27, 0.0 }
 0x6aa   :  { %v1783_v13 = vsel %vm227_vm0, %v1781_v41, 0.0 }
 0x6ad   :  { %1784 = vadd.xlane.f32.xlu0 %v1783_v13 }
 0x6b1   :  { %1787 = vadd.xlane.f32.xlu0 %v1786_v26 }
 0x6b2   :  { %v8360_v13 = vpop.f32.mrb[20].mxu1 }
 0x6b3   :  { %v1998_v26 = vpop.f32.mrb[21].mxu1 }
 0x735   :  { %v1778_v48 = vpop.xlane.xlu1 %1777 }
 0x736   :  { %v1775_v46 = vpop.xlane.xlu0 %1774  ;;  %v1780_v51 = vmul.f32 0.015625, %v1778_v48 }
 0x737   :  { %v1779_v47 = vmul.f32 0.015625, %v1775_v46 }
 0x738   :  { %v1792_v56 = vmul.f32 %v1780_v51, %v1780_v51  ;;  %v1796_v6 = vsub.f32 %v9841_v9, %v1780_v51  ;;  %v7709_v9 = vld [vmem:[%s11114_s11] ss:$0 sm:$0xff] }
 0x739   :  { %v1791_v52 = vmul.f32 %v1779_v47, %v1779_v47  ;;  %v1795_v0 = vsub.f32 %v9844_v10, %v1779_v47  ;;  %v2004_v27 = vadd.f32 %v8360_v13, %v7709_v9  ;;  %v9939_v15 = vadd.f32 %v7709_v9, %v1998_v26 }
 0x73a   :  { %v1785_v50 = vpop.xlane.xlu0 %1784 }
 0x73b   :  { %v1789_v53 = vmul.f32 0.015625, %v1785_v50  ;;  %v2031_v16 = vrot.slane %v2004_v27, 6  ;;  %2022 = vrot.lane.b32.xlu1 %v9939_v15, %s11157_s12  ;;  %v2030_v18 = vrot.slane %v9939_v15, 6 }
 0x73d   :  { %v1793_v54 = vsub.f32 %v1789_v53, %v1791_v52  ;;  %v9950_v61 = vsel %vm2029_vm6, %v2030_v18, %v2031_v16 }
 0x73e   :  { %v1788_v55 = vpop.xlane.xlu0 %1787  ;;  %8382 = vmatpush3.xpose.msk.msra.mxu1 %vm347_vm2, %v9950_v61 }
 0x73f   :  { %v1797_v57 = vadd.f32 1e-05, %v1793_v54  ;;  %v1790_v58 = vmul.f32 0.015625, %v1788_v55  ;;  %2024 = vrot.lane.b32.xlu1 %v9939_v15, %s11190_s6  ;;  %8391 = vmatprep.subr.mxu1 %v9319_v1 }
 0x741   :  { %9050 = vrsqrt.f32 %v1797_v57  ;;  %v1794_v59 = vsub.f32 %v1790_v58, %v1792_v56 }
 0x743   :  { %v1798_v60 = vadd.f32 1e-05, %v1794_v59 }
 0x745   :  { %9052 = vrsqrt.f32 %v1798_v60 }
 0x74b   :  { %v9051_v3 = vpop.eup %9050 }
 0x74c   :  { %v1801_v4 = vmul.f32 %v9051_v3, %v1795_v0 }
 0x74e   :  { %v1807_v7 = vmul.f32 %v1806_v2, %v1801_v4 }
 0x74f   :  { %v9053_v8 = vpop.eup %9052 }
 0x750   :  { %v1802_v11 = vmul.f32 %v9053_v8, %v1796_v6  ;;  %v9926_v12 = vadd.f32 %v1812_v5, %v1807_v7 }
 0x752   :  { %v1808_v41 = vmul.f32 %v1806_v2, %v1802_v11  ;;  %8339 = vmatprep.mubr.msk.f32.mxu0 %vm227_vm0, %v9926_v12 }
 0x754   :  { %v9930_v10 = vadd.f32 %v1812_v5, %v1808_v41 }
 0x756   :  { %8340 = vmatmul.mubr.msk.f32.vlgmr.msra.gmra.mrb[18].mxu0 %vm227_vm0, %v9930_v10 }
 0x757   :  { %8363 = vmatprep.mubr.msk.f32.mxu0 %vm9322_vm1, %v9319_v1  ;;  %8362 = vmatpush3.xpose.msk.msra.mxu0 %vm347_vm2, %v9939_v15 }
 0x758   :  { %8366 = vmatprep.subr.mxu0 %v9319_v1 }
 0x7ad   :  { %v9962_v23 = vpop.permute.xlu1 %2022 }
 0x7b1   :  { %v9983_v24 = vpop.permute.xlu1 %2024 }
 0x829   :  { %v8341_v20 = vpop.f32.mrb[18].mxu0 }
 0x82a   :  { %v1908_v21 = vadd.f32 %v8341_v20, %v7706_v19  ;;  %v1902_v17 = vpop.f32.mrb[19].mxu0 }
 0x82b   :  { %v1903_v22 = vadd.f32 %v7706_v19, %v1902_v17 }
 0x82c   :  { %2015 = vrot.lane.b32.xlu1 %v1908_v21, %s11157_s12  ;;  %8384 = vmatmul.mubr.msk.f32.vlgmr.msra.gmra.mrb[22].mxu1 %vm347_vm2, %v1908_v21 }
 0x82d   :  { %2008 = vrot.lane.b32.xlu0 %v1903_v22, %s11157_s12  ;;  %8364 = vmatmul.mubr.msk.f32.vlgmr.msra.gmra.mrb[20].mxu0 %vm347_vm2, %v1903_v22 }
 0x82e   :  { %8367 = vmatpush3.xpose.msk.msra.mxu0 %vm347_vm2, %v9962_v23  ;;  %8368 = vmatprep.mubr.msk.f32.mxu0 %vm9322_vm1, %v9319_v1 }
 0x82f   :  { %8371 = vmatprep.subr.mxu0 %v9319_v1  ;;  %8393 = vmatprep.mubr.msk.f32.mxu1 %vm9322_vm1, %v9319_v1 }
 0x830   :  { %2010 = vrot.lane.b32.xlu1 %v1903_v22, %s11190_s6 }
 0x831   :  { %2026 = vrot.lane.b32.xlu0 %v9939_v15, %s11192_s8 }
 0x834   :  { %2012 = vrot.lane.b32.xlu1 %v1903_v22, %s11192_s8 }
 0x835   :  { %2033 = vrot.lane.b32.xlu0 %v9950_v61, %s11157_s12 }
 0x838   :  { %2037 = vrot.lane.b32.xlu1 %v9950_v61, %s11192_s8 }
 0x839   :  { %2035 = vrot.lane.b32.xlu0 %v9950_v61, %s11190_s6 }
 0x83c   :  { %2019 = vrot.lane.b32.xlu1 %v1908_v21, %s11192_s8 }
 0x83d   :  { %2017 = vrot.lane.b32.xlu0 %v1908_v21, %s11190_s6 }
 0x89e   :  { %v2016_v25 = vpop.permute.xlu1 %2015 }
 0x89f   :  { %v2009_v28 = vpop.permute.xlu0 %2008 }
 0x8a0   :  { %8369 = vmatmul.mubr.msk.f32.vlgmr.msra.gmra.mrb[22].mxu0 %vm347_vm2, %v2009_v28 }
 0x8a1   :  { %8372 = vmatpush3.xpose.msk.msra.mxu0 %vm347_vm2, %v9983_v24  ;;  %8373 = vmatprep.mubr.msk.f32.mxu0 %vm9322_vm1, %v9319_v1 }
 0x8a2   :  { %v2011_v31 = vpop.permute.xlu1 %2010  ;;  %8376 = vmatprep.subr.mxu0 %v9319_v1 }
 0x8a3   :  { %v9991_v32 = vpop.permute.xlu0 %2026 }
 0x8a4   :  { %8374 = vmatmul.mubr.msk.f32.vlgmr.msra.gmra.mrb[24].mxu0 %vm347_vm2, %v2011_v31 }
 0x8a5   :  { %8377 = vmatpush3.xpose.msk.msra.mxu0 %vm347_vm2, %v9991_v32  ;;  %8378 = vmatprep.mubr.msk.f32.mxu0 %vm9322_vm1, %v9319_v1 }
 0x8a6   :  { %v2013_v33 = vpop.permute.xlu1 %2012  ;;  %8386 = vmatprep.subr.mxu0 %v9319_v1 }
 0x8a7   :  { %v9999_v35 = vpop.permute.xlu0 %2033 }
 0x8a8   :  { %8379 = vmatmul.mubr.msk.f32.vlgmr.msra.gmra.mrb[26].mxu0 %vm347_vm2, %v2013_v33 }
 0x8a9   :  { %8387 = vmatpush3.xpose.msk.msra.mxu0 %vm347_vm2, %v9999_v35  ;;  %8388 = vmatprep.mubr.msk.f32.mxu0 %vm9322_vm1, %v9319_v1 }
 0x8aa   :  { %v10006_v36 = vpop.permute.xlu1 %2037  ;;  %8396 = vmatprep.subr.mxu0 %v9319_v1 }
 0x8ab   :  { %v10009_v37 = vpop.permute.xlu0 %2035 }
 0x8ac   :  { %8389 = vmatmul.mubr.msk.f32.vlgmr.msra.gmra.mrb[28].mxu0 %vm347_vm2, %v2016_v25  ;;  %8392 = vmatpush3.xpose.msk.msra.mxu1 %vm347_vm2, %v10009_v37 }
 0x8ad   :  { %8397 = vmatpush3.xpose.msk.msra.mxu0 %vm347_vm2, %v10006_v36  ;;  %8398 = vmatprep.mubr.msk.f32.mxu0 %vm9322_vm1, %v9319_v1 }
 0x8ae   :  { %v2020_v38 = vpop.permute.xlu1 %2019  ;;  %8401 = vmatprep.subr.mxu1 %v9319_v1  ;;  %8406 = vmatprep.subr.mxu0 %v9319_v1 }
 0x8af   :  { %v2018_v39 = vpop.permute.xlu0 %2017 }
 0x8b0   :  { %8394 = vmatmul.mubr.msk.f32.vlgmr.msra.gmra.mrb[24].mxu1 %vm347_vm2, %v2018_v39  ;;  %8399 = vmatmul.mubr.msk.f32.vlgmr.msra.gmra.mrb[30].mxu0 %vm347_vm2, %v2020_v38 }
 0x8b1   :  { %8408 = vmatprep.mubr.msk.f32.mxu0 %vm9322_vm1, %v9319_v1  ;;  %8403 = vmatprep.mubr.msk.f32.mxu1 %vm9322_vm1, %v9319_v1 }
 0x8ff   :  { %v2405_v40 = vpop.f32.mrb[22].mxu1 }
 0x900   :  { %v2109_v42 = vpop.f32.mrb[20].mxu0  ;;  %v8385_v43 = vpop.f32.mrb[23].mxu1  ;;  %v2635_v51 = vmul.f32 0.25, %v2405_v40 }
 0x901   :  { %v2631_v44 = vmul.f32 0.25, %v2109_v42  ;;  %v8365_v45 = vpop.f32.mrb[21].mxu0 }
 0x902   :  { %v2652_v56 = vsel %vm2639_vm7, %v2635_v51, -inf }
 0x903   :  { %v2640_v46 = vsel %vm2639_vm7, %v2631_v44, -inf }
 0x904   :  { %2641 = vmax.xlane.f32.xlu0 %v2640_v46 }
 0x973   :  { %v2183_v47 = vpop.f32.mrb[22].mxu0 }
 0x974   :  { %v2632_v48 = vmul.f32 0.25, %v2183_v47  ;;  %v8370_v50 = vpop.f32.mrb[23].mxu0 }
 0x976   :  { %v2643_v52 = vsel %vm2639_vm7, %v2632_v48, -inf }
 0x977   :  { %2644 = vmax.xlane.f32.xlu1 %v2643_v52  ;;  %v2257_v53 = vpop.f32.mrb[24].mxu0 }
 0x978   :  { %v10028_v54 = vmul.f32 0.25, %v2257_v53  ;;  %v8375_v55 = vpop.f32.mrb[25].mxu0 }
 0x97a   :  { %v2646_v57 = vsel %vm2639_vm7, %v10028_v54, -inf }
 0x97b   :  { %2653 = vmax.xlane.f32.xlu1 %v2652_v56  ;;  %2647 = vmax.xlane.f32.xlu0 %v2646_v57  ;;  %v2331_v58 = vpop.f32.mrb[26].mxu0 }
 0x97c   :  { %v2634_v59 = vmul.f32 0.25, %v2331_v58  ;;  %v8380_v60 = vpop.f32.mrb[27].mxu0 }
 0x97e   :  { %v2649_v0 = vsel %vm2639_vm7, %v2634_v59, -inf }
 0x97f   :  { %2650 = vmax.xlane.f32.xlu0 %v2649_v0  ;;  %v2479_v2 = vpop.f32.mrb[28].mxu0 }
 0x980   :  { %v2636_v3 = vmul.f32 0.25, %v2479_v2  ;;  %v8390_v4 = vpop.f32.mrb[29].mxu0 }
 0x982   :  { %v2655_v5 = vsel %vm2639_vm7, %v2636_v3, -inf }
 0x983   :  { %v2553_v6 = vpop.f32.mrb[24].mxu1  ;;  %2656 = vmax.xlane.f32.xlu0 %v2655_v5  ;;  %v2627_v7 = vpop.f32.mrb[30].mxu0 }
 0x984   :  { %v2637_v8 = vmul.f32 0.25, %v2553_v6  ;;  %v2638_v11 = vmul.f32 0.25, %v2627_v7  ;;  %v8395_v41 = vpop.f32.mrb[25].mxu1  ;;  %v8400_v9 = vpop.f32.mrb[31].mxu0 }
 0x986   :  { %v2658_v13 = vsel %vm2639_vm7, %v2637_v8, -inf  ;;  %v2661_v27 = vsel %vm2639_vm7, %v2638_v11, -inf }
 0x987   :  { %2659 = vmax.xlane.f32.xlu1 %v2658_v13  ;;  %2662 = vmax.xlane.f32.xlu0 %v2661_v27 }
 0x991   :  { %v2642_v26 = vpop.xlane.xlu0 %2641 }
 0x992   :  { %v2664_v19 = vsub.f32 %v2631_v44, %v2642_v26 }
 0x994   :  { %v2672_v22 = vmul.f32 1.442695, %v2664_v19 }
 0x998   :  { %2728 = vrot.lane.b32.xlu1 %v9939_v15, %s11193_s28 }
 0x99c   :  { %2883 = vrot.lane.b32.xlu1 %v9983_v24, %s11193_s28 }
 0x99d   :  { %2806 = vrot.lane.b32.xlu0 %v9962_v23, %s11193_s28 }
 0x9a0   :  { %2960 = vrot.lane.b32.xlu1 %v9991_v32, %s11193_s28 }
 0x9a1   :  { %3037 = vrot.lane.b32.xlu0 %v9950_v61, %s11193_s28 }
 0x9a4   :  { %3114 = vrot.lane.b32.xlu1 %v9999_v35, %s11193_s28 }
 0xa04   :  { %v2645_v16 = vpop.xlane.xlu1 %2644 }
 0xa05   :  { %v2665_v18 = vsub.f32 %v2632_v48, %v2645_v16 }
 0xa07   :  { %v2674_v15 = vmul.f32 1.442695, %v2665_v18 }
 0xa08   :  { %v2654_v20 = vpop.xlane.xlu1 %2653  ;;  %v2648_v21 = vpop.xlane.xlu0 %2647 }
 0xa09   :  { %9054 = vpow2.f32 %v2674_v15  ;;  %v2668_v17 = vsub.f32 %v2635_v51, %v2654_v20  ;;  %v2666_v33 = vsub.f32 %v10028_v54, %v2648_v21 }
 0xa0b   :  { %v2680_v23 = vmul.f32 1.442695, %v2668_v17  ;;  %v2676_v45 = vmul.f32 1.442695, %v2666_v33 }
 0xa0c   :  { %v2651_v24 = vpop.xlane.xlu0 %2650 }
 0xa0d   :  { %9056 = vpow2.f32 %v2680_v23  ;;  %v2667_v25 = vsub.f32 %v2634_v59, %v2651_v24 }
 0xa0e   :  { %9058 = vpow2.f32 %v2672_v22 }
 0xa0f   :  { %v2678_v28 = vmul.f32 1.442695, %v2667_v25 }
 0xa10   :  { %v2657_v61 = vpop.xlane.xlu0 %2656 }
 0xa11   :  { %9060 = vpow2.f32 %v2678_v28  ;;  %v2669_v31 = vsub.f32 %v2636_v3, %v2657_v61 }
 0xa13   :  { %v9055_v32 = vpop.eup %9054  ;;  %v2682_v35 = vmul.f32 1.442695, %v2669_v31 }
 0xa14   :  { %v2660_v38 = vpop.xlane.xlu1 %2659  ;;  %v2663_v39 = vpop.xlane.xlu0 %2662  ;;  %v2691_v40 = vsel %vm2639_vm7, %v9055_v32, 0.0 }
 0xa15   :  { %9062 = vpow2.f32 %v2682_v35  ;;  %v2670_v42 = vsub.f32 %v2637_v8, %v2660_v38  ;;  %v2671_v43 = vsub.f32 %v2638_v11, %v2663_v39  ;;  %2692 = vadd.xlane.f32.xlu0 %v2691_v40  ;;  %v3375_v40 = vld [vmem:[#allocation10] sm:$0xff] }
 0xa17   :  { %v10051_v44 = vpop.eup %9056  ;;  %v2684_v46 = vmul.f32 1.442695, %v2670_v42  ;;  %v2686_v47 = vmul.f32 1.442695, %v2671_v43  ;;  %v3376_v42 = vld [vmem:[#allocation10 + $0x8] sm:$0xff]  ;;  %v3377_v43 = vld [vmem:[#allocation10 + $0x10] sm:$0xff] }
 0xa18   :  { %v2729_v48 = vpop.permute.xlu1 %2728  ;;  %v2807_v50 = vpop.permute.xlu0 %2806  ;;  %v2700_v51 = vsel %vm2639_vm7, %v10051_v44, 0.0 }
 0xa19   :  { %v9059_v52 = vpop.eup %9058  ;;  %9064 = vpow2.f32 %v2684_v46  ;;  %2701 = vadd.xlane.f32.xlu1 %v2700_v51  ;;  %8402 = vmatpush3.msk.msra.mxu1 %vm2733_vm8, %v2729_v48  ;;  %v3379_v48 = vld [vmem:[#allocation10 + $0x20] sm:$0xff] }
 0xa1a   :  { %9066 = vpow2.f32 %v2686_v47  ;;  %8407 = vmatpush3.msk.msra.mxu0 %vm2733_vm8, %v2807_v50  ;;  %8411 = vmatprep.subr.mxu1 %v9319_v1  ;;  %v2688_v54 = vsel %vm2639_vm7, %v9059_v52, 0.0  ;;  %v3380_v50 = vld [vmem:[#allocation10 + $0x28] sm:$0xff] }
 0xa1b   :  { %v9061_v53 = vpop.eup %9060  ;;  %9068 = vpow2.f32 %v2676_v45  ;;  %8416 = vmatprep.subr.mxu0 %v9319_v1  ;;  %v3378_v45 = vld [vmem:[#allocation10 + $0x18] sm:$0xff] }
 0xa1c   :  { %v2697_v55 = vsel %vm2639_vm7, %v9061_v53, 0.0  ;;  %v2884_v4 = vpop.permute.xlu1 %2883  ;;  %v3038_v6 = vpop.permute.xlu0 %3037  ;;  %v8794_v46 = vpack.c.bf16 %v3378_v45, %v3377_v43  ;;  %v3522_v43 = vld [vmem:[%s11119_s16 + $0x38] sm:$0xff]  ;;  %v3519_v45 = vld [vmem:[%s11119_s16 + $0x20] sm:$0xff] }
 0xa1d   :  { %2689 = vadd.xlane.f32.xlu1 %v2688_v54  ;;  %2698 = vadd.xlane.f32.xlu0 %v2697_v55 }
 0xa1f   :  { %v9063_v56 = vpop.eup %9062 }
 0xa20   :  { %v2703_v57 = vsel %vm2639_vm7, %v9063_v56, 0.0  ;;  %v2961_v5 = vpop.permute.xlu1 %2960 }
 0xa21   :  { %2704 = vadd.xlane.f32.xlu0 %v2703_v57  ;;  %v3382_v57 = vld [vmem:[#allocation10 + $0x38] sm:$0xff] }
 0xa23   :  { %v10062_v58 = vpop.eup %9064 }
 0xa24   :  { %v9067_v59 = vpop.eup %9066  ;;  %v2706_v60 = vsel %vm2639_vm7, %v10062_v58, 0.0  ;;  %v3115_v7 = vpop.permute.xlu1 %3114 }
 0xa25   :  { %v9069_v0 = vpop.eup %9068  ;;  %2707 = vadd.xlane.f32.xlu1 %v2706_v60  ;;  %v2709_v2 = vsel %vm2639_vm7, %v9067_v59, 0.0 }
 0xa26   :  { %2710 = vadd.xlane.f32.xlu0 %v2709_v2  ;;  %v2694_v3 = vsel %vm2639_vm7, %v9069_v0, 0.0 }
 0xa29   :  { %2695 = vadd.xlane.f32.xlu1 %v2694_v3 }
 0xa3a   :  { %3268 = vrot.lane.b32.xlu1 %v10006_v36, %s11193_s28 }
 0xa3c   :  { %3191 = vrot.lane.b32.xlu0 %v10009_v37, %s11193_s28 }
 0xaa2   :  { %v2693_v8 = vpop.xlane.xlu0 %2692 }
 0xaa3   :  { %9070 = vrcp.f32 %v2693_v8 }
 0xaa6   :  { %v2702_v11 = vpop.xlane.xlu1 %2701 }
 0xaaa   :  { %v2690_v41 = vpop.xlane.xlu1 %2689  ;;  %v2699_v9 = vpop.xlane.xlu0 %2698 }
 0xaab   :  { %9072 = vrcp.f32 %v2690_v41 }
 0xaac   :  { %9074 = vrcp.f32 %v2699_v9 }
 0xaad   :  { %v9071_v13 = vpop.eup %9070 }
 0xaae   :  { %v2705_v27 = vpop.xlane.xlu0 %2704  ;;  %v2721_v26 = vmul.f32 %v9071_v13, %v9055_v32 }
 0xaaf   :  { %9076 = vrcp.f32 %v2705_v27 }
 0xab0   :  { %8409 = vmatmul.mubr.msk.f32.vlgmr.msra.gmra.mrb[32].mxu0 %vm2639_vm7, %v2721_v26 }
 0xab1   :  { %8417 = vmatpush3.msk.msra.mxu0 %vm2733_vm8, %v2961_v5  ;;  %8418 = vmatprep.mubr.msk.f32.mxu0 %vm9322_vm1, %v9319_v1 }
 0xab2   :  { %v2708_v36 = vpop.xlane.xlu1 %2707  ;;  %8426 = vmatprep.subr.mxu0 %v9319_v1 }
 0xab3   :  { %v2711_v37 = vpop.xlane.xlu0 %2710 }
 0xab4   :  { %9078 = vrcp.f32 %v2711_v37 }
 0xab5   :  { %v9073_v16 = vpop.eup %9072 }
 0xab6   :  { %v9075_v18 = vpop.eup %9074  ;;  %v2696_v19 = vpop.xlane.xlu1 %2695  ;;  %v2720_v15 = vmul.f32 %v9073_v16, %v9059_v52 }
 0xab7   :  { %9080 = vrcp.f32 %v2696_v19  ;;  %v2723_v20 = vmul.f32 %v9075_v18, %v9061_v53  ;;  %v3192_v33 = vpop.permute.xlu0 %3191  ;;  %v8798_v53 = vpack.c.bf16 %v3380_v50, %v3379_v48  ;;  %v3524_v48 = vld [vmem:[%s11119_s16 + $0x48] sm:$0xff]  ;;  %v3526_v50 = vld [vmem:[%s11119_s16 + $0x58] sm:$0xff] }
 0xab8   :  { %8404 = vmatmul.mubr.msk.f32.vlgmr.msra.gmra.mrb[26].mxu1 %vm2639_vm7, %v2720_v15  ;;  %9082 = vrcp.f32 %v2702_v11  ;;  %v7744_v15 = vld [vmem:[%s11116_s13] ss:$0 sm:$0xff] }
 0xab9   :  { %v9077_v21 = vpop.eup %9076  ;;  %8412 = vmatpush3.msk.msra.mxu1 %vm2733_vm8, %v2884_v4  ;;  %8419 = vmatmul.mubr.msk.f32.vlgmr.msra.gmra.mrb[34].mxu0 %vm2639_vm7, %v2723_v20  ;;  %9084 = vrcp.f32 %v2708_v36 }
 0xaba   :  { %8427 = vmatpush3.msk.msra.mxu0 %vm2733_vm8, %v3115_v7  ;;  %8428 = vmatprep.mubr.msk.f32.mxu0 %vm9322_vm1, %v9319_v1  ;;  %v2725_v17 = vmul.f32 %v9077_v21, %v9063_v56  ;;  %v3269_v22 = vpop.permute.xlu1 %3268  ;;  %v3381_v56 = vld [vmem:[#allocation10 + $0x30] sm:$0xff] }
 0xabb   :  { %8436 = vmatprep.subr.mxu0 %v9319_v1  ;;  %8413 = vmatprep.mubr.msk.f32.mxu1 %vm9322_vm1, %v9319_v1 }
 0xabc   :  { %8421 = vmatprep.subr.mxu1 %v9319_v1 }
 0xabd   :  { %8429 = vmatmul.mubr.msk.f32.vlgmr.msra.gmra.mrb[36].mxu0 %vm2639_vm7, %v2725_v17 }
 0xabe   :  { %v9079_v23 = vpop.eup %9078  ;;  %8437 = vmatpush3.msk.msra.mxu0 %vm2733_vm8, %v3269_v22  ;;  %8438 = vmatprep.mubr.msk.f32.mxu0 %vm9322_vm1, %v9319_v1 }
 0xabf   :  { %v2727_v24 = vmul.f32 %v9079_v23, %v9067_v59  ;;  %v8802_v59 = vpack.c.bf16 %v3382_v57, %v3381_v56  ;;  %v3530_v56 = vld [vmem:[%s11119_s16 + $0x78] sm:$0xff]  ;;  %v3527_v57 = vld [vmem:[%s11119_s16 + $0x60] sm:$0xff] }
 0xac1   :  { %v9081_v25 = vpop.eup %9080  ;;  %8439 = vmatmul.mubr.msk.f32.vlgmr.msra.gmra.mrb[38].mxu0 %vm2639_vm7, %v2727_v24 }
 0xac2   :  { %v2722_v28 = vmul.f32 %v9081_v25, %v9069_v0  ;;  %3613 = vmatprep.mubr.f32.mxu0 %v9319_v1  ;;  %v9083_v61 = vpop.eup %9082 }
 0xac3   :  { %v2724_v31 = vmul.f32 %v9083_v61, %v10051_v44  ;;  %v9085_v32 = vpop.eup %9084  ;;  %v8790_v44 = vpack.c.bf16 %v3376_v42, %v3375_v40  ;;  %v3520_v42 = vld [vmem:[%s11119_s16 + $0x28] sm:$0xff] }
 0xac4   :  { %8414 = vmatmul.mubr.msk.f32.vlgmr.msra.gmra.mrb[28].mxu1 %vm2639_vm7, %v2722_v28  ;;  %v2726_v35 = vmul.f32 %v9085_v32, %v10062_v58  ;;  %v3516_v32 = vld [vmem:[%s11119_s16 + $0x8] sm:$0xff] }
 0xac5   :  { %8422 = vmatpush3.msk.msra.mxu1 %vm2733_vm8, %v3038_v6  ;;  %8423 = vmatprep.mubr.msk.f32.mxu1 %vm9322_vm1, %v9319_v1 }
 0xac6   :  { %8431 = vmatprep.subr.mxu1 %v9319_v1 }
 0xac8   :  { %8424 = vmatmul.mubr.msk.f32.vlgmr.msra.gmra.mrb[30].mxu1 %vm2639_vm7, %v2724_v31 }
 0xac9   :  { %8432 = vmatpush3.msk.msra.mxu1 %vm2733_vm8, %v3192_v33  ;;  %8433 = vmatprep.mubr.msk.f32.mxu1 %vm9322_vm1, %v9319_v1  ;;  %v3518_v33 = vld [vmem:[%s11119_s16 + $0x18] sm:$0xff] }
 0xaca   :  { %8791 = vmatprep.subr.bf16.mxu1 %v8790_v44 }
 0xacc   :  { %8434 = vmatmul.mubr.msk.f32.vlgmr.msra.gmra.mrb[32].mxu1 %vm2639_vm7, %v2726_v35  ;;  %v8806_v35 = vpack.c.bf16 %v3518_v33, %v3516_v32  ;;  %v3664_v33 = vld [vmem:[%s11121_s18 + $0x10] sm:$0xff] }
 0xacd   :  { %8793 = vmatpush3.bf16.msra.mxu1 %v8790_v44  ;;  %v8810_v44 = vpack.c.bf16 %v3522_v43, %v3520_v42  ;;  %v3666_v43 = vld [vmem:[%s11121_s18 + $0x20] sm:$0xff] }
 0xace   :  { %8795 = vmatprep.subr.bf16.mxu1 %v8794_v46  ;;  %8807 = vmatprep.subr.bf16.mxu0 %v8806_v35  ;;  %v3665_v35 = vld [vmem:[%s11121_s18 + $0x18] sm:$0xff] }
 0xad1   :  { %8797 = vmatpush3.bf16.msra.mxu1 %v8794_v46  ;;  %v3521_v46 = vld [vmem:[%s11119_s16 + $0x30] sm:$0xff] }
 0xad2   :  { %8799 = vmatprep.subr.bf16.mxu1 %v8798_v53 }
 0xad5   :  { %8801 = vmatpush3.bf16.msra.mxu1 %v8798_v53  ;;  %v3525_v53 = vld [vmem:[%s11119_s16 + $0x50] sm:$0xff] }
 0xad6   :  { %8803 = vmatprep.subr.bf16.mxu1 %v8802_v59 }
 0xad9   :  { %8805 = vmatpush3.bf16.msra.mxu1 %v8802_v59  ;;  %v3529_v59 = vld [vmem:[%s11119_s16 + $0x70] sm:$0xff] }
 0xb83   :  { %v2879_v38 = vpop.f32.mrb[32].mxu0 }
 0xb84   :  { %3346 = vrot.lane.b32.xlu0 %v2879_v38, %s11194_s0  ;;  %v8410_v39 = vpop.f32.mrb[33].mxu0  ;;  %v3515_v38 = vld [vmem:[%s11119_s16] sm:$0xff] }
 0xb85   :  { %v3517_v39 = vld [vmem:[%s11119_s16 + $0x10] sm:$0xff] }
 0xb86   :  { %v8808_v40 = vpack.c.bf16 %v3517_v39, %v3515_v38  ;;  %v8828_v38 = vpack.c.bf16 %v3665_v35, %v3664_v33  ;;  %v3682_v39 = vld [vmem:[%s11121_s18 + $0xa0] sm:$0xff] }
 0xb88   :  { %8809 = vmatpush1.bf16.msra.mxu0 %v8808_v40  ;;  %v3683_v40 = vld [vmem:[%s11121_s18 + $0xa8] sm:$0xff] }
 0xb89   :  { %8811 = vmatprep.subr.bf16.mxu0 %v8810_v44  ;;  %v8830_v42 = vpack.c.bf16 %v3683_v40, %v3682_v39  ;;  %v3667_v44 = vld [vmem:[%s11121_s18 + $0x28] sm:$0xff] }
 0xb8b   :  { %v2802_v47 = vpop.f32.mrb[26].mxu1 }
 0xb8c   :  { %v3033_v51 = vpop.f32.mrb[34].mxu0  ;;  %v8405_v52 = vpop.f32.mrb[27].mxu1 }
 0xb8d   :  { %v8420_v54 = vpop.f32.mrb[35].mxu0  ;;  %v3523_v52 = vld [vmem:[%s11119_s16 + $0x40] sm:$0xff] }
 0xb8e   :  { %v8816_v54 = vpack.c.bf16 %v3525_v53, %v3523_v52  ;;  %v3686_v53 = vld [vmem:[%s11121_s18 + $0xc0] sm:$0xff] }
 0xb90   :  { %v3187_v55 = vpop.f32.mrb[36].mxu0 }
 0xb91   :  { %3361 = vrot.lane.b32.xlu0 %v3187_v55, %s11194_s0  ;;  %v8430_v58 = vpop.f32.mrb[37].mxu0  ;;  %v3528_v55 = vld [vmem:[%s11119_s16 + $0x68] sm:$0xff] }
 0xb92   :  { %v8818_v58 = vpack.c.bf16 %v3530_v56, %v3528_v55  ;;  %v3670_v56 = vld [vmem:[%s11121_s18 + $0x40] sm:$0xff] }
 0xb94   :  { %v3341_v60 = vpop.f32.mrb[38].mxu0 }
 0xb95   :  { %v8440_v0 = vpop.f32.mrb[39].mxu0 }
 0xb97   :  { %v2956_v2 = vpop.f32.mrb[28].mxu1 }
 0xb98   :  { %3350 = vrot.lane.b32.xlu1 %v2956_v2, %s11195_s10  ;;  %v8415_v3 = vpop.f32.mrb[29].mxu1 }
 0xb9b   :  { %v3110_v4 = vpop.f32.mrb[30].mxu1 }
 0xb9c   :  { %v8425_v5 = vpop.f32.mrb[31].mxu1  ;;  %3354 = vrot.lane.b32.xlu1 %v3033_v51, %s11196_s7  ;;  %v8814_v51 = vpack.c.bf16 %v3526_v50, %v3524_v48  ;;  %v3668_v50 = vld [vmem:[%s11121_s18 + $0x30] sm:$0xff] }
 0xb9f   :  { %v3264_v6 = vpop.f32.mrb[32].mxu1 }
 0xba0   :  { %v8435_v7 = vpop.f32.mrb[33].mxu1  ;;  %3365 = vrot.lane.b32.xlu0 %v3264_v6, %s11195_s10  ;;  %3369 = vrot.lane.b32.xlu1 %v3341_v60, %s11196_s7  ;;  %v8820_v60 = vpack.c.bf16 %v3529_v59, %v3527_v57  ;;  %v3671_v57 = vld [vmem:[%s11121_s18 + $0x48] sm:$0xff]  ;;  %v3688_v59 = vld [vmem:[%s11121_s18 + $0xd0] sm:$0xff] }
 0xbf6   :  { %v3347_v8 = vpop.permute.xlu0 %3346 }
 0xbf7   :  { %v3357_v41 = vsel %vm347_vm2, %v2802_v47, %v3347_v8  ;;  %v8812_v47 = vpack.c.bf16 %v3521_v46, %v3519_v45  ;;  %v8832_v45 = vpack.c.bf16 %v3667_v44, %v3666_v43  ;;  %v3684_v46 = vld [vmem:[%s11121_s18 + $0xb0] sm:$0xff] }
 0xbf9   :  { %8813 = vmatpush1.bf16.msra.mxu0 %v8812_v47  ;;  %v3685_v47 = vld [vmem:[%s11121_s18 + $0xb8] sm:$0xff] }
 0xbfa   :  { %8815 = vmatprep.subr.bf16.mxu0 %v8814_v51  ;;  %v8834_v48 = vpack.c.bf16 %v3685_v47, %v3684_v46  ;;  %v3669_v51 = vld [vmem:[%s11121_s18 + $0x38] sm:$0xff] }
 0xbfb   :  { %v8836_v52 = vpack.c.bf16 %v3669_v51, %v3668_v50 }
 0xbfd   :  { %8817 = vmatpush1.bf16.msra.mxu0 %v8816_v54  ;;  %v3687_v54 = vld [vmem:[%s11121_s18 + $0xc8] sm:$0xff] }
 0xbfe   :  { %8819 = vmatprep.subr.bf16.mxu0 %v8818_v58  ;;  %v8838_v55 = vpack.c.bf16 %v3687_v54, %v3686_v53  ;;  %v8840_v58 = vpack.c.bf16 %v3671_v57, %v3670_v56 }
 0xc01   :  { %8821 = vmatpush1.bf16.msra.mxu0 %v8820_v60  ;;  %v3689_v60 = vld [vmem:[%s11121_s18 + $0xd8] sm:$0xff] }
 0xc03   :  { %v3362_v9 = vpop.permute.xlu0 %3361 }
 0xc04   :  { %v3372_v36 = vsel %vm347_vm2, %v3110_v4, %v3362_v9 }
 0xc0a   :  { %v3351_v11 = vpop.permute.xlu1 %3350 }
 0xc0b   :  { %v3358_v13 = vsel %vm1656_vm4, %v3357_v41, %v3351_v11 }
 0xc0e   :  { %v3355_v27 = vpop.permute.xlu1 %3354 }
 0xc0f   :  { %v3359_v26 = vsel %vm1658_vm5, %v3358_v13, %v3355_v27 }
 0xc10   :  { %8457 = vmatprep.mubr.msk.f32.mxu1 %vm227_vm0, %v3359_v26 }
 0xc12   :  { %v3366_v37 = vpop.permute.xlu0 %3365  ;;  %v3370_v16 = vpop.permute.xlu1 %3369 }
 0xc13   :  { %v3373_v18 = vsel %vm1656_vm4, %v3372_v36, %v3366_v37  ;;  %v3506_v37 = vrot.slane %v9913_v62, %v9608_v34  ;;  %v3678_v62 = vld [vmem:[%s11121_s18 + $0x80] sm:$0xff] }
 0xc14   :  { %v3374_v19 = vsel %vm1658_vm5, %v3373_v18, %v3370_v16 }
 0xc15   :  { %8458 = vmatmul.mubr.msk.f32.vlgmr.msra.gmra.mrb[34].mxu1 %vm227_vm0, %v3374_v19  ;;  %v3512_v19 = vrot.slane %v9918_v63, %v9608_v34  ;;  %v3679_v63 = vld [vmem:[%s11121_s18 + $0x88] sm:$0xff] }
 0xce8   :  { %v8459_v20 = vpop.f32.mrb[34].mxu1 }
 0xce9   :  { %v3462_v21 = vpop.f32.mrb[35].mxu1  ;;  %v3468_v17 = vadd.f32 %v8459_v20, %v7744_v15 }
 0xcea   :  { %v3463_v22 = vadd.f32 %v7744_v15, %v3462_v21 }
 0xceb   :  { %v10126_v24 = vadd.f32 %v3468_v17, %v9930_v10 }
 0xcec   :  { %v10123_v23 = vadd.f32 %v3463_v22, %v9926_v12 }
 0xced   :  { %v3476_v31 = vsel %vm227_vm0, %v10126_v24, 0.0  ;;  %v3482_v12 = vmul.f32 %v10126_v24, %v10126_v24 }
 0xcee   :  { %v3473_v25 = vsel %vm227_vm0, %v10123_v23, 0.0  ;;  %v3481_v28 = vmul.f32 %v10123_v23, %v10123_v23 }
 0xcef   :  { %3474 = vadd.xlane.f32.xlu0 %v3473_v25  ;;  %v3486_v10 = vsel %vm227_vm0, %v3482_v12, 0.0  ;;  %v3680_v12 = vld [vmem:[%s11121_s18 + $0x90] sm:$0xff] }
 0xcf0   :  { %v3483_v61 = vsel %vm227_vm0, %v3481_v28, 0.0  ;;  %v3662_v28 = vld [vmem:[%s11121_s18] sm:$0xff] }
 0xcf1   :  { %3484 = vadd.xlane.f32.xlu1 %v3483_v61  ;;  %v3663_v61 = vld [vmem:[%s11121_s18 + $0x8] sm:$0xff] }
 0xcf3   :  { %3477 = vadd.xlane.f32.xlu0 %v3476_v31  ;;  %v8824_v31 = vpack.c.bf16 %v3663_v61, %v3662_v28 }
 0xcf7   :  { %3487 = vadd.xlane.f32.xlu0 %v3486_v10  ;;  %v3681_v10 = vld [vmem:[%s11121_s18 + $0x98] sm:$0xff] }
 0xcf8   :  { %v8826_v32 = vpack.c.bf16 %v3681_v10, %v3680_v12 }
 0xd7c   :  { %v3475_v0 = vpop.xlane.xlu0 %3474 }
 0xd7d   :  { %v3479_v2 = vmul.f32 0.015625, %v3475_v0  ;;  %v3672_v0 = vld [vmem:[%s11121_s18 + $0x50] sm:$0xff] }
 0xd7e   :  { %v3485_v3 = vpop.xlane.xlu1 %3484 }
 0xd7f   :  { %v3491_v4 = vmul.f32 %v3479_v2, %v3479_v2  ;;  %v3489_v5 = vmul.f32 0.015625, %v3485_v3  ;;  %v3495_v36 = vsub.f32 %v10123_v23, %v3479_v2  ;;  %v8842_v2 = vpack.c.bf16 %v3689_v60, %v3688_v59  ;;  %v3673_v3 = vld [vmem:[%s11121_s18 + $0x58] sm:$0xff] }
 0xd80   :  { %v3478_v6 = vpop.xlane.xlu0 %3477 }
 0xd81   :  { %v3493_v7 = vsub.f32 %v3489_v5, %v3491_v4  ;;  %v3480_v8 = vmul.f32 0.015625, %v3478_v6  ;;  %v3690_v4 = vld [vmem:[%s11121_s18 + $0xe0] sm:$0xff]  ;;  %v3691_v5 = vld [vmem:[%s11121_s18 + $0xe8] sm:$0xff]  ;;  %v8844_v6 = vpack.c.bf16 %v3673_v3, %v3672_v0 }
 0xd83   :  { %v3497_v11 = vadd.f32 1e-05, %v3493_v7  ;;  %v3492_v9 = vmul.f32 %v3480_v8, %v3480_v8  ;;  %v3496_v20 = vsub.f32 %v10126_v24, %v3480_v8  ;;  %v8822_v24 = vpack.c.bf16 %v3679_v63, %v3678_v62  ;;  %v3674_v8 = vld [vmem:[%s11121_s18 + $0x60] sm:$0xff] }
 0xd84   :  { %v3488_v41 = vpop.xlane.xlu0 %3487  ;;  %v8846_v7 = vpack.c.bf16 %v3691_v5, %v3690_v4 }
 0xd85   :  { %9086 = vrsqrt.f32 %v3497_v11  ;;  %v3490_v13 = vmul.f32 0.015625, %v3488_v41  ;;  %8823 = vmatprep.subr.bf16.mxu1 %v8822_v24  ;;  %v3675_v11 = vld [vmem:[%s11121_s18 + $0x68] sm:$0xff]  ;;  %v3692_v41 = vld [vmem:[%s11121_s18 + $0xf0] sm:$0xff] }
 0xd86   :  { %8825 = vmatpush3.bf16.msra.mxu1 %v8824_v31 }
 0xd87   :  { %v3494_v27 = vsub.f32 %v3490_v13, %v3492_v9  ;;  %8827 = vmatprep.subr.bf16.mxu1 %v8826_v32  ;;  %v3693_v9 = vld [vmem:[%s11121_s18 + $0xf8] sm:$0xff]  ;;  %v8848_v13 = vpack.c.bf16 %v3675_v11, %v3674_v8  ;;  %v7749_v11 = vld [vmem:[%s11122_s19] ss:$0 sm:$0xff] }
 0xd89   :  { %v3498_v26 = vadd.f32 1e-05, %v3494_v27  ;;  %v8850_v27 = vpack.c.bf16 %v3693_v9, %v3692_v41 }
 0xd8a   :  { %8829 = vmatpush3.bf16.msra.mxu1 %v8828_v38 }
 0xd8b   :  { %9088 = vrsqrt.f32 %v3498_v26  ;;  %8831 = vmatprep.subr.bf16.mxu1 %v8830_v42  ;;  %v3676_v26 = vld [vmem:[%s11121_s18 + $0x70] sm:$0xff] }
 0xd8e   :  { %8833 = vmatpush3.bf16.msra.mxu1 %v8832_v45 }
 0xd8f   :  { %v9087_v16 = vpop.eup %9086  ;;  %8835 = vmatprep.subr.bf16.mxu1 %v8834_v48 }
 0xd90   :  { %v3501_v18 = vmul.f32 %v9087_v16, %v3495_v36  ;;  %v3677_v36 = vld [vmem:[%s11121_s18 + $0x78] sm:$0xff]  ;;  %v3531_v16 = vld [vmem:[%s11120_s17] sm:$0x3] }
 0xd92   :  { %v3507_v15 = vmul.f32 %v3506_v37, %v3501_v18  ;;  %8837 = vmatpush3.bf16.msra.mxu1 %v8836_v52  ;;  %v3536_v18 = vrot.slane %v3531_v16, %v9601_v30 }
 0xd93   :  { %8839 = vmatprep.subr.bf16.mxu1 %v8838_v55 }
 0xd94   :  { %v10192_v21 = vadd.f32 %v3512_v19, %v3507_v15 }
 0xd95   :  { %v9089_v17 = vpop.eup %9088 }
 0xd96   :  { %7747 = vmatmul.mubr.msk.f32.vlgmr.msra.gmra.mrb[40].mxu0 %vm227_vm0, %v10192_v21  ;;  %v3502_v22 = vmul.f32 %v9089_v17, %v3496_v20  ;;  %8841 = vmatpush3.bf16.msra.mxu1 %v8840_v58 }
 0xd97   :  { %3619 = vmatprep.mubr.f32.mxu0 %v9319_v1  ;;  %8843 = vmatprep.subr.bf16.mxu1 %v8842_v2 }
 0xd98   :  { %v3508_v23 = vmul.f32 %v3506_v37, %v3502_v22  ;;  %v8852_v37 = vpack.c.bf16 %v3677_v36, %v3676_v26 }
 0xd9a   :  { %v10197_v25 = vadd.f32 %v3512_v19, %v3508_v23  ;;  %8845 = vmatpush3.bf16.msra.mxu1 %v8844_v6  ;;  %v3540_v19 = vrot.slane %v3531_v16, %v9608_v34 }
 0xd9b   :  { %8847 = vmatprep.subr.bf16.mxu1 %v8846_v7 }
 0xd9c   :  { %7748 = vmatmul.mubr.msk.f32.gmra.mrb[42].mxu0 %vm227_vm0, %v10197_v25 }
 0xd9d   :  { %3924 = vmatprep.mubr.f32.mxu0 %v9319_v1 }
 0xd9e   :  { %8849 = vmatpush3.bf16.msra.mxu1 %v8848_v13 }
 0xd9f   :  { %8851 = vmatprep.subr.bf16.mxu1 %v8850_v27 }
 0xda2   :  { %8853 = vmatpush3.bf16.msra.mxu1 %v8852_v37 }
 0xda3   :  { %8480 = vmatprep.subr.mxu1 %v9319_v1 }
 0xe69   :  { %v3615_v15 = vpop.f32.mrb[40].mxu0 }
 0xe6a   :  { %v3616_v20 = vadd.f32 %v3615_v15, %v3536_v18  ;;  %v3617_v17 = vpop.f32.mrb[41].mxu0 }
 0xe6b   :  { %v3618_v22 = vadd.f32 %v3617_v17, %v3540_v19 }
 0xe6c   :  { %v3626_v23 = vmul.f32 %v3616_v20, %v3616_v20 }
 0xe6d   :  { %v3627_v62 = vmul.f32 %v3618_v22, %v3618_v22 }
 0xe6e   :  { %v3630_v63 = vmul.f32 %v3626_v23, %v3616_v20  ;;  %v7753_v23 = vld [vmem:[%s11184_s9 + $0x88] sm:$0xff] }
 0xe6f   :  { %v3631_v24 = vmul.f32 %v3627_v62, %v3618_v22  ;;  %v3621_v28 = vpop.f32.mrb[42].mxu0  ;;  %v7755_v62 = vld [vmem:[%s11184_s9 + $0x98] sm:$0xff] }
 0xe70   :  { %v3634_v61 = vmul.f32 0.044715, %v3630_v63  ;;  %v3622_v31 = vadd.f32 %v3621_v28, %v3536_v18  ;;  %v3623_v12 = vpop.f32.mrb[43].mxu0  ;;  %v7752_v63 = vld [vmem:[%s11184_s9 + $0x80] sm:$0xff] }
 0xe71   :  { %v3635_v10 = vmul.f32 0.044715, %v3631_v24  ;;  %v3624_v32 = vadd.f32 %v3623_v12, %v3540_v19  ;;  %v7754_v24 = vld [vmem:[%s11184_s9 + $0x90] sm:$0xff] }
 0xe72   :  { %v3638_v33 = vadd.f32 %v3634_v61, %v3616_v20  ;;  %v3628_v35 = vmul.f32 %v3622_v31, %v3622_v31  ;;  %v8856_v28 = vpack.c.bf16 %v7754_v24, %v7752_v63  ;;  %v7757_v61 = vld [vmem:[%s11184_s9 + $0xa8] sm:$0xff] }
 0xe73   :  { %v3639_v38 = vadd.f32 %v3635_v10, %v3618_v22  ;;  %v3629_v39 = vmul.f32 %v3624_v32, %v3624_v32  ;;  %v7756_v10 = vld [vmem:[%s11184_s9 + $0xa0] sm:$0xff] }
 0xe74   :  { %v3642_v40 = vmul.f32 0.7978846, %v3638_v33  ;;  %v3632_v42 = vmul.f32 %v3628_v35, %v3622_v31  ;;  %v7761_v35 = vld [vmem:[%s11184_s9 + $0xc8] sm:$0xff] }
 0xe75   :  { %v3643_v43 = vmul.f32 0.7978846, %v3639_v38  ;;  %v3633_v44 = vmul.f32 %v3629_v39, %v3624_v32  ;;  %v7763_v38 = vld [vmem:[%s11184_s9 + $0xd8] sm:$0xff] }
 0xe76   :  { %9090 = vtanh.f32 %v3642_v40  ;;  %v3636_v45 = vmul.f32 0.044715, %v3632_v42  ;;  %v8862_v39 = vpack.c.bf16 %v7763_v38, %v7761_v35  ;;  %v7760_v40 = vld [vmem:[%s11184_s9 + $0xc0] sm:$0xff]  ;;  %v7762_v42 = vld [vmem:[%s11184_s9 + $0xd0] sm:$0xff] }
 0xe77   :  { %v3637_v46 = vmul.f32 0.044715, %v3633_v44  ;;  %9092 = vtanh.f32 %v3643_v43  ;;  %v8864_v43 = vpack.c.bf16 %v7762_v42, %v7760_v40  ;;  %v7765_v44 = vld [vmem:[%s11184_s9 + $0xe8] sm:$0xff] }
 0xe78   :  { %v3640_v47 = vadd.f32 %v3636_v45, %v3622_v31  ;;  %v7767_v45 = vld [vmem:[%s11184_s9 + $0xf8] sm:$0xff] }
 0xe79   :  { %v3641_v48 = vadd.f32 %v3637_v46, %v3624_v32  ;;  %v8866_v46 = vpack.c.bf16 %v7767_v45, %v7765_v44 }
 0xe7a   :  { %v3644_v50 = vmul.f32 0.7978846, %v3640_v47  ;;  %v7764_v47 = vld [vmem:[%s11184_s9 + $0xe0] sm:$0xff] }
 0xe7b   :  { %v3645_v51 = vmul.f32 0.7978846, %v3641_v48  ;;  %v7766_v48 = vld [vmem:[%s11184_s9 + $0xf0] sm:$0xff] }
 0xe7c   :  { %9094 = vtanh.f32 %v3644_v50  ;;  %v8868_v50 = vpack.c.bf16 %v7766_v48, %v7764_v47 }
 0xe7d   :  { %9096 = vtanh.f32 %v3645_v51 }
 0xe80   :  { %v9091_v52 = vpop.eup %9090 }
 0xe81   :  { %v9093_v53 = vpop.eup %9092  ;;  %v3650_v54 = vadd.f32 1.0, %v9091_v52 }
 0xe82   :  { %v3651_v55 = vadd.f32 1.0, %v9093_v53 }
 0xe83   :  { %v3654_v56 = vmul.f32 0.5, %v3650_v54 }
 0xe84   :  { %v3655_v57 = vmul.f32 0.5, %v3651_v55 }
 0xe85   :  { %v3658_v0 = vmul.f32 %v3654_v56, %v3616_v20 }
 0xe86   :  { %v9095_v58 = vpop.eup %9094  ;;  %v3659_v59 = vmul.f32 %v3655_v57, %v3618_v22 }
 0xe87   :  { %v9097_v60 = vpop.eup %9096  ;;  %v3652_v2 = vadd.f32 1.0, %v9095_v58 }
 0xe88   :  { %3765 = vmatprep.mubr.f32.mxu1 %v3659_v59  ;;  %v3653_v3 = vadd.f32 1.0, %v9097_v60 }
 0xe89   :  { %3766 = vmatmul.mubr.f32.vlgmr.msra.gmra.mrb[36].mxu1 %v3658_v0  ;;  %v3656_v4 = vmul.f32 0.5, %v3652_v2 }
 0xe8a   :  { %v3657_v5 = vmul.f32 0.5, %v3653_v3 }
 0xe8b   :  { %v3660_v7 = vmul.f32 %v3656_v4, %v3622_v31  ;;  %v7759_v31 = vld [vmem:[%s11184_s9 + $0xb8] sm:$0xff] }
 0xe8c   :  { %v3661_v6 = vmul.f32 %v3657_v5, %v3624_v32  ;;  %v8858_v12 = vpack.c.bf16 %v7759_v31, %v7757_v61  ;;  %v7758_v32 = vld [vmem:[%s11184_s9 + $0xb0] sm:$0xff]  ;;  %v10375_v5 = vsub.s32 2, %v9598_v29 }
 0xe8d   :  { %v8860_v33 = vpack.c.bf16 %v7758_v32, %v7756_v10 }
 0xe8e   :  { %3770 = vmatprep.mubr.f32.mxu1 %v3661_v6  ;;  %v9190_v6 = vld [vmem:[%s11117_s14] sm:$0x7] }
 0xe8f   :  { %3771 = vmatmul.mubr.f32.gmra.mrb[38].mxu1 %v3660_v7  ;;  %v3811_v7 = vrot.slane %v9190_v6, %v10375_v5 }
 0xe90   :  { %8482 = vmatprep.mubr.msk.f32.mxu1 %vm9322_vm1, %v9319_v1 }
 0xf5c   :  { %v8062_v8 = vpop.f32.mrb[36].mxu1 }
 0xf5d   :  { %v8063_v41 = vpop.f32.mrb[37].mxu1 }
 0xf5e   :  { %v8064_v9 = vadd.f32 %v8063_v41, %v8062_v8  ;;  %v9191_v41 = vld [vmem:[%s11118_s15] sm:$0x7] }
 0xf60   :  { %v3768_v13 = vadd.f32 %v8064_v9, %v7749_v11  ;;  %v3817_v9 = vrot.slane %v9191_v41, %v10375_v5 }
 0xf62   :  { %v10310_v27 = vadd.f32 %v3768_v13, %v10192_v21  ;;  %v8065_v26 = vpop.f32.mrb[38].mxu1 }
 0xf63   :  { %v8066_v36 = vpop.f32.mrb[39].mxu1 }
 0xf64   :  { %v8067_v37 = vadd.f32 %v8066_v36, %v8065_v26  ;;  %v3778_v16 = vsel %vm227_vm0, %v10310_v27, 0.0  ;;  %v3786_v18 = vmul.f32 %v10310_v27, %v10310_v27 }
 0xf65   :  { %3779 = vadd.xlane.f32.xlu1 %v3778_v16 }
 0xf66   :  { %v3773_v19 = vadd.f32 %v8067_v37, %v7749_v11  ;;  %v3788_v15 = vsel %vm227_vm0, %v3786_v18, 0.0 }
 0xf67   :  { %3789 = vadd.xlane.f32.xlu0 %v3788_v15 }
 0xf68   :  { %v10318_v20 = vadd.f32 %v3773_v19, %v10197_v25  ;;  %v8854_v25 = vpack.c.bf16 %v7755_v62, %v7753_v23  ;;  %v7768_v19 = vld [vmem:[%s11185_s1 + $0x2] sm:$0x3]  ;;  %s11200_s1 = sld [smem:[#allocation26_spill]] }
 0xf69   :  { %v3847_v15 = vrot.slane %v7768_v19, %v9601_v30 }
 0xf6a   :  { %v3781_v21 = vsel %vm227_vm0, %v10318_v20, 0.0  ;;  %v3787_v17 = vmul.f32 %v10318_v20, %v10318_v20  ;;  %8855 = vmatprep.subr.bf16.mxu0 %v8854_v25 }
 0xf6b   :  { %3782 = vadd.xlane.f32.xlu1 %v3781_v21  ;;  %8857 = vmatpush1.bf16.msra.mxu0 %v8856_v28 }
 0xf6c   :  { %v3791_v22 = vsel %vm227_vm0, %v3787_v17, 0.0  ;;  %8859 = vmatprep.subr.bf16.mxu0 %v8858_v12 }
 0xf6d   :  { %3792 = vadd.xlane.f32.xlu0 %v3791_v22  ;;  %v3851_v22 = vrot.slane %v7768_v19, %v9608_v34 }
 0xf6f   :  { %8861 = vmatpush1.bf16.msra.mxu0 %v8860_v33 }
 0xf70   :  { %8863 = vmatprep.subr.bf16.mxu0 %v8862_v39 }
 0xf73   :  { %8865 = vmatpush1.bf16.msra.mxu0 %v8864_v43 }
 0xf74   :  { %8867 = vmatprep.subr.bf16.mxu0 %v8866_v46 }
 0xf77   :  { %8869 = vmatpush1.bf16.msra.mxu0 %v8868_v50 }
 0xf78   :  { %8460 = vmatprep.subr.mxu0 %v9319_v1 }
 0xff2   :  { %v3780_v51 = vpop.xlane.xlu1 %3779 }
 0xff3   :  { %v3784_v52 = vmul.f32 0.015625, %v3780_v51 }
 0xff4   :  { %v3790_v53 = vpop.xlane.xlu0 %3789 }
 0xff5   :  { %v3796_v54 = vmul.f32 %v3784_v52, %v3784_v52  ;;  %v3794_v55 = vmul.f32 0.015625, %v3790_v53  ;;  %v3800_v8 = vsub.f32 %v10310_v27, %v3784_v52 }
 0xff7   :  { %v3798_v56 = vsub.f32 %v3794_v55, %v3796_v54 }
 0xff8   :  { %v3783_v57 = vpop.xlane.xlu1 %3782 }
 0xff9   :  { %v3802_v58 = vadd.f32 1e-05, %v3798_v56  ;;  %v3785_v59 = vmul.f32 0.015625, %v3783_v57 }
 0xffa   :  { %v3793_v60 = vpop.xlane.xlu0 %3792 }
 0xffb   :  { %9098 = vrsqrt.f32 %v3802_v58  ;;  %v3797_v0 = vmul.f32 %v3785_v59, %v3785_v59  ;;  %v3795_v2 = vmul.f32 0.015625, %v3793_v60  ;;  %v3801_v29 = vsub.f32 %v10318_v20, %v3785_v59 }
 0xffd   :  { %v3799_v3 = vsub.f32 %v3795_v2, %v3797_v0 }
 0xfff   :  { %v3803_v4 = vadd.f32 1e-05, %v3799_v3 }
0x1001   :  { %9100 = vrsqrt.f32 %v3803_v4 }
0x1005   :  { %v9099_v11 = vpop.eup %9098 }
0x1006   :  { %v3806_v13 = vmul.f32 %v9099_v11, %v3800_v8 }
0x1008   :  { %v3812_v26 = vmul.f32 %v3811_v7, %v3806_v13 }
0x100a   :  { %v10387_v36 = vadd.f32 %v3817_v9, %v3812_v26 }
0x100b   :  { %v9101_v37 = vpop.eup %9100 }
0x100c   :  { %7769 = vmatmul.mubr.msk.f32.vlgmr.msra.gmra.mrb[44].mxu0 %vm227_vm0, %v10387_v36  ;;  %v3807_v16 = vmul.f32 %v9101_v37, %v3801_v29 }
0x100d   :  { %3930 = vmatprep.mubr.f32.mxu0 %v9319_v1 }
0x100e   :  { %v3813_v27 = vmul.f32 %v3811_v7, %v3807_v16 }
0x1010   :  { %v10392_v18 = vadd.f32 %v3817_v9, %v3813_v27 }
0x1012   :  { %7770 = vmatmul.mubr.msk.f32.gmra.mrb[46].mxu0 %vm227_vm0, %v10392_v18 }
0x1013   :  { %8462 = vmatprep.mubr.msk.f32.mxu0 %vm9322_vm1, %v9319_v1 }
0x10df   :  { %v3926_v20 = vpop.f32.mrb[44].mxu0 }
0x10e0   :  { %v3927_v21 = vadd.f32 %v3926_v20, %v3847_v15  ;;  %v3928_v17 = vpop.f32.mrb[45].mxu0 }
0x10e1   :  { %v10441_v43 = vadd.f32 %v3928_v17, %v3851_v22 }
0x10e2   :  { %3940 = vrot.lane.b32.xlu0 %v3927_v21, %s11190_s6  ;;  %3938 = vrot.lane.b32.xlu1 %v3927_v21, %s11197_s24 }
0x10e5   :  { %v3932_v23 = vpop.f32.mrb[46].mxu0 }
0x10e6   :  { %v3933_v62 = vadd.f32 %v3932_v23, %v3847_v15  ;;  %3942 = vrot.lane.b32.xlu1 %v3927_v21, %s11192_s8  ;;  %v3934_v25 = vpop.f32.mrb[47].mxu0 }
0x10e7   :  { %v10406_v63 = vadd.f32 %v3934_v25, %v3851_v22 }
0x10e8   :  { %3947 = vrot.lane.b32.xlu0 %v3933_v62, %s11190_s6 }
0x10ea   :  { %3945 = vrot.lane.b32.xlu1 %v3933_v62, %s11197_s24 }
0x10ec   :  { %3971 = vrot.lane.b32.xlu0 %v3927_v21, %s11193_s28 }
0x10ee   :  { %3949 = vrot.lane.b32.xlu1 %v3933_v62, %s11192_s8 }
0x1154   :  { %v3941_v24 = vpop.permute.xlu0 %3940  ;;  %v3939_v28 = vpop.permute.xlu1 %3938 }
0x1155   :  { %4123 = vrot.lane.b32.xlu0 %v3941_v24, %s11193_s28  ;;  %4047 = vrot.lane.b32.xlu1 %v3939_v28, %s11193_s28 }
0x1158   :  { %v3943_v61 = vpop.permute.xlu1 %3942 }
0x1159   :  { %4275 = vrot.lane.b32.xlu0 %v3933_v62, %s11193_s28  ;;  %4199 = vrot.lane.b32.xlu1 %v3943_v61, %s11193_s28 }
0x115a   :  { %v3948_v31 = vpop.permute.xlu0 %3947 }
0x115c   :  { %v3946_v12 = vpop.permute.xlu1 %3945 }
0x115d   :  { %4427 = vrot.lane.b32.xlu0 %v3948_v31, %s11193_s28  ;;  %4351 = vrot.lane.b32.xlu1 %v3946_v12, %s11193_s28 }
0x115e   :  { %v3972_v10 = vpop.permute.xlu0 %3971 }
0x115f   :  { %8461 = vmatpush3.xpose.msk.msra.mxu0 %vm347_vm2, %v3972_v10 }
0x1160   :  { %v3950_v32 = vpop.permute.xlu1 %3949  ;;  %8465 = vmatprep.subr.mxu0 %v9319_v1 }
0x1161   :  { %4503 = vrot.lane.b32.xlu1 %v3950_v32, %s11193_s28 }
0x1162   :  { %8463 = vmatmul.mubr.msk.f32.vlgmr.msra.gmra.mrb[48].mxu0 %vm347_vm2, %v3927_v21 }
0x1163   :  { %8467 = vmatprep.mubr.msk.f32.mxu0 %vm9322_vm1, %v9319_v1 }
0x11c7   :  { %v4124_v33 = vpop.permute.xlu0 %4123  ;;  %v4048_v35 = vpop.permute.xlu1 %4047 }
0x11c8   :  { %8466 = vmatpush3.xpose.msk.msra.mxu0 %vm347_vm2, %v4048_v35 }
0x11c9   :  { %8470 = vmatprep.subr.mxu0 %v9319_v1 }
0x11cb   :  { %v4276_v38 = vpop.permute.xlu0 %4275  ;;  %8468 = vmatmul.mubr.msk.f32.vlgmr.msra.gmra.mrb[50].mxu0 %vm347_vm2, %v3939_v28  ;;  %v4200_v39 = vpop.permute.xlu1 %4199 }
0x11cc   :  { %8471 = vmatpush3.xpose.msk.msra.mxu0 %vm347_vm2, %v4124_v33  ;;  %8481 = vmatpush3.xpose.msk.msra.mxu1 %vm347_vm2, %v4276_v38 }
0x11cd   :  { %8472 = vmatprep.mubr.msk.f32.mxu0 %vm9322_vm1, %v9319_v1  ;;  %8490 = vmatprep.subr.mxu1 %v9319_v1 }
0x11ce   :  { %8475 = vmatprep.subr.mxu0 %v9319_v1 }
0x11cf   :  { %8483 = vmatmul.mubr.msk.f32.vlgmr.msra.gmra.mrb[40].mxu1 %vm347_vm2, %v3933_v62  ;;  %v4428_v40 = vpop.permute.xlu0 %4427  ;;  %8473 = vmatmul.mubr.msk.f32.vlgmr.msra.gmra.mrb[52].mxu0 %vm347_vm2, %v3941_v24  ;;  %v4352_v42 = vpop.permute.xlu1 %4351 }
0x11d0   :  { %8476 = vmatpush3.xpose.msk.msra.mxu0 %vm347_vm2, %v4200_v39  ;;  %8491 = vmatpush3.xpose.msk.msra.mxu1 %vm347_vm2, %v4428_v40 }
0x11d1   :  { %8477 = vmatprep.mubr.msk.f32.mxu0 %vm9322_vm1, %v9319_v1  ;;  %8492 = vmatprep.mubr.msk.f32.mxu1 %vm9322_vm1, %v9319_v1 }
0x11d2   :  { %8485 = vmatprep.subr.mxu0 %v9319_v1  ;;  %8500 = vmatprep.subr.mxu1 %v9319_v1 }
0x11d3   :  { %8478 = vmatmul.mubr.msk.f32.vlgmr.msra.gmra.mrb[54].mxu0 %vm347_vm2, %v3943_v61  ;;  %8493 = vmatmul.mubr.msk.f32.vlgmr.msra.gmra.mrb[42].mxu1 %vm347_vm2, %v3948_v31  ;;  %v4504_v44 = vpop.permute.xlu1 %4503 }
0x11d4   :  { %8486 = vmatpush3.xpose.msk.msra.mxu0 %vm347_vm2, %v4352_v42  ;;  %8501 = vmatpush3.msra.mxu1 %v10441_v43 }
0x11d5   :  { %8487 = vmatprep.mubr.msk.f32.mxu0 %vm9322_vm1, %v9319_v1  ;;  %8495 = vmatprep.subr.mxu0 %v9319_v1 }
0x11d6   :  { %8502 = vmatprep.mubr.msk.f32.mxu1 %vm9322_vm1, %v9319_v1  ;;  %8510 = vmatprep.subr.mxu1 %v9319_v1 }
0x11d7   :  { %8488 = vmatmul.mubr.msk.f32.vlgmr.msra.gmra.mrb[56].mxu0 %vm347_vm2, %v3946_v12 }
0x11d8   :  { %8496 = vmatpush3.xpose.msk.msra.mxu0 %vm347_vm2, %v4504_v44  ;;  %8497 = vmatprep.mubr.msk.f32.mxu0 %vm9322_vm1, %v9319_v1 }
0x11d9   :  { %8505 = vmatprep.subr.mxu0 %v9319_v1 }
0x11db   :  { %8498 = vmatmul.mubr.msk.f32.vlgmr.msra.gmra.mrb[58].mxu0 %vm347_vm2, %v3950_v32 }
0x11dc   :  { %8507 = vmatprep.mubr.msk.f32.mxu0 %vm9322_vm1, %v9319_v1 }
0x1235   :  { %v4043_v45 = vpop.f32.mrb[48].mxu0 }
0x1236   :  { %v4579_v46 = vmul.f32 0.25, %v4043_v45  ;;  %v8464_v47 = vpop.f32.mrb[49].mxu0 }
0x1238   :  { %v4587_v48 = vadd.f32 %v4579_v46, %v9715_v14 }
0x123a   :  { %v4595_v50 = vsel %vm970_vm14, %v4587_v48, -inf }
0x123b   :  { %4596 = vmax.xlane.f32.xlu0 %v4595_v50 }
0x129e   :  { %v4119_v51 = vpop.f32.mrb[50].mxu0 }
0x129f   :  { %v4580_v52 = vmul.f32 0.25, %v4119_v51  ;;  %v8469_v53 = vpop.f32.mrb[51].mxu0 }
0x12a1   :  { %v4588_v54 = vadd.f32 %v4580_v52, %v9715_v14 }
0x12a2   :  { %v4195_v55 = vpop.f32.mrb[52].mxu0  ;;  %v4347_v56 = vpop.f32.mrb[40].mxu1 }
0x12a3   :  { %v4581_v57 = vmul.f32 0.25, %v4195_v55  ;;  %v4583_v58 = vmul.f32 0.25, %v4347_v56  ;;  %v8474_v59 = vpop.f32.mrb[53].mxu0  ;;  %v8484_v60 = vpop.f32.mrb[41].mxu1  ;;  %v4598_v0 = vsel %vm970_vm14, %v4588_v54, -inf }
0x12a4   :  { %4599 = vmax.xlane.f32.xlu1 %v4598_v0 }
0x12a5   :  { %v4589_v2 = vadd.f32 %v4581_v57, %v9715_v14  ;;  %v4591_v3 = vadd.f32 %v4583_v58, %v9733_v49 }
0x12a6   :  { %v4271_v4 = vpop.f32.mrb[54].mxu0  ;;  %v4499_v6 = vpop.f32.mrb[42].mxu1 }
0x12a7   :  { %v4582_v7 = vmul.f32 0.25, %v4271_v4  ;;  %v4585_v8 = vmul.f32 0.25, %v4499_v6  ;;  %v8479_v11 = vpop.f32.mrb[55].mxu0  ;;  %v8494_v41 = vpop.f32.mrb[43].mxu1  ;;  %v4607_v9 = vsel %vm970_vm14, %v4591_v3, -inf  ;;  %v4601_v13 = vsel %vm970_vm14, %v4589_v2, -inf }
0x12a8   :  { %4608 = vmax.xlane.f32.xlu1 %v4607_v9  ;;  %4602 = vmax.xlane.f32.xlu0 %v4601_v13 }
0x12a9   :  { %v4590_v26 = vadd.f32 %v4582_v7, %v9715_v14  ;;  %v4593_v29 = vadd.f32 %v4585_v8, %v9733_v49 }
0x12aa   :  { %v4423_v37 = vpop.f32.mrb[56].mxu0 }
0x12ab   :  { %v4584_v16 = vmul.f32 0.25, %v4423_v37  ;;  %v8489_v27 = vpop.f32.mrb[57].mxu0  ;;  %v4613_v19 = vsel %vm970_vm14, %v4593_v29, -inf  ;;  %v4604_v15 = vsel %vm970_vm14, %v4590_v26, -inf }
0x12ac   :  { %4614 = vmax.xlane.f32.xlu1 %v4613_v19  ;;  %4605 = vmax.xlane.f32.xlu0 %v4604_v15 }
0x12ad   :  { %v4592_v20 = vadd.f32 %v4584_v16, %v9733_v49 }
0x12ae   :  { %v4575_v21 = vpop.f32.mrb[58].mxu0 }
0x12af   :  { %v4586_v17 = vmul.f32 0.25, %v4575_v21  ;;  %v8499_v22 = vpop.f32.mrb[59].mxu0  ;;  %v4610_v23 = vsel %vm970_vm14, %v4592_v20, -inf }
0x12b0   :  { %4611 = vmax.xlane.f32.xlu0 %v4610_v23 }
0x12b1   :  { %v4594_v14 = vadd.f32 %v4586_v17, %v9733_v49 }
0x12b3   :  { %v4616_v62 = vsel %vm970_vm14, %v4594_v14, -inf }
0x12b4   :  { %4617 = vmax.xlane.f32.xlu0 %v4616_v62 }
0x12bd   :  { %3952 = vrot.lane.b32.xlu1 %v10441_v43, %s11197_s24 }
0x12c1   :  { %3958 = vrot.lane.b32.xlu1 %v10441_v43, %s11192_s8 }
0x12c5   :  { %3962 = vrot.lane.b32.xlu1 %v10406_v63, %s11197_s24 }
0x12c8   :  { %v4597_v25 = vpop.xlane.xlu0 %4596 }
0x12c9   :  { %v4619_v24 = vsub.f32 %v4587_v48, %v4597_v25 }
0x12ca   :  { %3955 = vrot.lane.b32.xlu0 %v10441_v43, %s11190_s6 }
0x12cb   :  { %v4627_v28 = vmul.f32 1.442695, %v4619_v24 }
0x12cd   :  { %9102 = vpow2.f32 %v4627_v28 }
0x12d7   :  { %v9103_v49 = vpop.eup %9102 }
0x12d8   :  { %v4643_v61 = vsel %vm970_vm14, %v9103_v49, 0.0 }
0x12e9   :  { %4644 = vadd.xlane.f32.xlu1 %v4643_v61 }
0x1331   :  { %v4600_v31 = vpop.xlane.xlu1 %4599 }
0x1332   :  { %v4620_v12 = vsub.f32 %v4588_v54, %v4600_v31 }
0x1334   :  { %v4629_v10 = vmul.f32 1.442695, %v4620_v12 }
0x1335   :  { %v4603_v32 = vpop.xlane.xlu0 %4602  ;;  %v4609_v33 = vpop.xlane.xlu1 %4608 }
0x1336   :  { %9104 = vpow2.f32 %v4629_v10  ;;  %v4621_v35 = vsub.f32 %v4589_v2, %v4603_v32  ;;  %v4623_v38 = vsub.f32 %v4591_v3, %v4609_v33 }
0x1338   :  { %v4635_v39 = vmul.f32 1.442695, %v4623_v38  ;;  %v4631_v40 = vmul.f32 1.442695, %v4621_v35 }
0x1339   :  { %v4606_v42 = vpop.xlane.xlu0 %4605  ;;  %v4615_v43 = vpop.xlane.xlu1 %4614 }
0x133a   :  { %v4622_v44 = vsub.f32 %v4590_v26, %v4606_v42  ;;  %v4625_v45 = vsub.f32 %v4593_v29, %v4615_v43  ;;  %9106 = vpow2.f32 %v4635_v39  ;;  %v7795_v42 = vld [vmem:[%s11186_s2 + $0x40] sm:$0xff]  ;;  %v7796_v43 = vld [vmem:[%s11186_s2 + $0x48] sm:$0xff] }
0x133b   :  { %9108 = vpow2.f32 %v4631_v40 }
0x133c   :  { %v4633_v46 = vmul.f32 1.442695, %v4622_v44  ;;  %v4639_v47 = vmul.f32 1.442695, %v4625_v45  ;;  %v7797_v44 = vld [vmem:[%s11186_s2 + $0x50] sm:$0xff]  ;;  %v8870_v45 = vpack.c.bf16 %v7796_v43, %v7795_v42  ;;  %v7807_v43 = vld [vmem:[%s11189_s3 + $0x40] sm:$0xff] }
0x133d   :  { %v4612_v48 = vpop.xlane.xlu0 %4611  ;;  %v3953_v50 = vpop.permute.xlu1 %3952 }
0x133e   :  { %9110 = vpow2.f32 %v4633_v46  ;;  %v4624_v51 = vsub.f32 %v4592_v20, %v4612_v48  ;;  %8506 = vmatpush3.msra.mxu0 %v3953_v50  ;;  %v7798_v46 = vld [vmem:[%s11186_s2 + $0x58] sm:$0xff]  ;;  %v7799_v48 = vld [vmem:[%s11186_s2 + $0x60] sm:$0xff]  ;;  %v7800_v50 = vld [vmem:[%s11186_s2 + $0x68] sm:$0xff] }
0x133f   :  { %8515 = vmatprep.subr.mxu0 %v9319_v1  ;;  %9112 = vpow2.f32 %v4639_v47  ;;  %v8874_v47 = vpack.c.bf16 %v7798_v46, %v7797_v44  ;;  %v7808_v44 = vld [vmem:[%s11189_s3 + $0x48] sm:$0xff]  ;;  %v7825_v46 = vld [vmem:[%s11188_s29 + $0x70] sm:$0xff] }
0x1340   :  { %v9105_v52 = vpop.eup %9104  ;;  %v4637_v53 = vmul.f32 1.442695, %v4624_v51  ;;  %v8878_v51 = vpack.c.bf16 %v7800_v50, %v7799_v48  ;;  %v7809_v50 = vld [vmem:[%s11189_s3 + $0x50] sm:$0xff] }
0x1341   :  { %v4618_v54 = vpop.xlane.xlu0 %4617  ;;  %v4646_v55 = vsel %vm970_vm14, %v9105_v52, 0.0  ;;  %v3959_v9 = vpop.permute.xlu1 %3958 }
0x1342   :  { %9114 = vpow2.f32 %v4637_v53  ;;  %v4626_v56 = vsub.f32 %v4594_v14, %v4618_v54  ;;  %4647 = vadd.xlane.f32.xlu0 %v4646_v55  ;;  %v7801_v54 = vld [vmem:[%s11186_s2 + $0x70] sm:$0xff]  ;;  %v7802_v55 = vld [vmem:[%s11186_s2 + $0x78] sm:$0xff] }
0x1344   :  { %v4641_v57 = vmul.f32 1.442695, %v4626_v56  ;;  %v10490_v58 = vpop.eup %9106  ;;  %v8882_v56 = vpack.c.bf16 %v7802_v55, %v7801_v54  ;;  %v7812_v54 = vld [vmem:[%s11189_s3 + $0x68] sm:$0xff] }
0x1345   :  { %v4655_v59 = vsel %vm970_vm14, %v10490_v58, 0.0  ;;  %v9109_v60 = vpop.eup %9108  ;;  %v3963_v13 = vpop.permute.xlu1 %3962 }
0x1346   :  { %9116 = vpow2.f32 %v4641_v57  ;;  %4656 = vadd.xlane.f32.xlu1 %v4655_v59  ;;  %v4649_v3 = vsel %vm970_vm14, %v9109_v60, 0.0  ;;  %v3956_v16 = vpop.permute.xlu0 %3955 }
0x1348   :  { %v9111_v0 = vpop.eup %9110 }
0x1349   :  { %v4652_v2 = vsel %vm970_vm14, %v9111_v0, 0.0  ;;  %v10496_v4 = vpop.eup %9112 }
0x134a   :  { %4653 = vadd.xlane.f32.xlu0 %v4652_v2  ;;  %4650 = vadd.xlane.f32.xlu1 %v4649_v3  ;;  %v4661_v8 = vsel %vm970_vm14, %v10496_v4, 0.0 }
0x134c   :  { %v9115_v6 = vpop.eup %9114 }
0x134d   :  { %v4658_v7 = vsel %vm970_vm14, %v9115_v6, 0.0 }
0x134e   :  { %4659 = vadd.xlane.f32.xlu0 %v4658_v7  ;;  %4662 = vadd.xlane.f32.xlu1 %v4661_v8 }
0x1350   :  { %v9117_v11 = vpop.eup %9116 }
0x1351   :  { %v4664_v41 = vsel %vm970_vm14, %v9117_v11, 0.0 }
0x1352   :  { %4665 = vadd.xlane.f32.xlu0 %v4664_v41 }
0x135f   :  { %3968 = vrot.lane.b32.xlu1 %v10406_v63, %s11192_s8 }
0x1368   :  { %3965 = vrot.lane.b32.xlu0 %v10406_v63, %s11190_s6 }
0x1376   :  { %v4645_v26 = vpop.xlane.xlu1 %4644 }
0x1377   :  { %9118 = vrcp.f32 %v4645_v26 }
0x1381   :  { %v9119_v29 = vpop.eup %9118 }
0x1382   :  { %v4675_v37 = vmul.f32 %v9119_v29, %v9103_v49 }
0x1384   :  { %8503 = vmatmul.mubr.msk.f32.vlgmr.msra.gmra.mrb[44].mxu1 %vm970_vm14, %v4675_v37 }
0x1385   :  { %8511 = vmatpush3.msra.mxu1 %v3956_v16  ;;  %8512 = vmatprep.mubr.msk.f32.mxu1 %vm9322_vm1, %v9319_v1 }
0x1386   :  { %8520 = vmatprep.subr.mxu1 %v9319_v1 }
0x13cf   :  { %v4648_v27 = vpop.xlane.xlu0 %4647 }
0x13d0   :  { %9120 = vrcp.f32 %v4648_v27 }
0x13d3   :  { %v4657_v19 = vpop.xlane.xlu1 %4656 }
0x13d7   :  { %v4654_v15 = vpop.xlane.xlu0 %4653  ;;  %v4651_v20 = vpop.xlane.xlu1 %4650 }
0x13d8   :  { %9122 = vrcp.f32 %v4654_v15 }
0x13d9   :  { %9124 = vrcp.f32 %v4651_v20 }
0x13da   :  { %v9121_v21 = vpop.eup %9120  ;;  %9126 = vrcp.f32 %v4657_v19 }
0x13db   :  { %v4676_v17 = vmul.f32 %v9121_v21, %v9105_v52  ;;  %v4660_v22 = vpop.xlane.xlu0 %4659  ;;  %v4663_v23 = vpop.xlane.xlu1 %4662 }
0x13dc   :  { %9128 = vrcp.f32 %v4660_v22  ;;  %v7804_v22 = vld [vmem:[%s11187_s25 + $0x1] ss:$0 sm:$0xff] }
0x13dd   :  { %8508 = vmatmul.mubr.msk.f32.vlgmr.msra.gmra.mrb[60].mxu0 %vm970_vm14, %v4676_v17  ;;  %9130 = vrcp.f32 %v4663_v23  ;;  %v9192_v17 = vld [vmem:[#allocation5] sm:$0xff] }
0x13de   :  { %8516 = vmatpush3.msra.mxu0 %v3959_v9  ;;  %8517 = vmatprep.mubr.msk.f32.mxu0 %vm9322_vm1, %v9319_v1 }
0x13df   :  { %v4666_v14 = vpop.xlane.xlu0 %4665  ;;  %8525 = vmatprep.subr.mxu0 %v9319_v1  ;;  %v3969_v32 = vpop.permute.xlu1 %3968 }
0x13e0   :  { %9132 = vrcp.f32 %v4666_v14 }
0x13e2   :  { %v9123_v62 = vpop.eup %9122 }
0x13e3   :  { %v9125_v25 = vpop.eup %9124  ;;  %v4678_v24 = vmul.f32 %v9123_v62, %v9111_v0  ;;  %v3966_v35 = vpop.permute.xlu0 %3965 }
0x13e4   :  { %v4677_v28 = vmul.f32 %v9125_v25, %v9109_v60  ;;  %v9127_v49 = vpop.eup %9126 }
0x13e5   :  { %8518 = vmatmul.mubr.msk.f32.vlgmr.msra.gmra.mrb[62].mxu0 %vm970_vm14, %v4678_v24  ;;  %v4679_v12 = vmul.f32 %v9127_v49, %v10490_v58 }
0x13e6   :  { %v9129_v61 = vpop.eup %9128  ;;  %8513 = vmatmul.mubr.msk.f32.vlgmr.msra.gmra.mrb[46].mxu1 %vm970_vm14, %v4677_v28  ;;  %8526 = vmatpush3.msra.mxu0 %v3963_v13 }
0x13e7   :  { %v4680_v31 = vmul.f32 %v9129_v61, %v9115_v6  ;;  %8521 = vmatpush3.msra.mxu1 %v10406_v63  ;;  %8522 = vmatprep.mubr.msk.f32.mxu1 %vm9322_vm1, %v9319_v1  ;;  %v9131_v10 = vpop.eup %9130 }
0x13e8   :  { %8527 = vmatprep.mubr.msk.f32.mxu0 %vm9322_vm1, %v9319_v1  ;;  %8530 = vmatprep.subr.mxu1 %v9319_v1  ;;  %v4681_v38 = vmul.f32 %v9131_v10, %v10496_v4  ;;  %v7819_v10 = vld [vmem:[%s11188_s29 + $0x40] sm:$0xff] }
0x13e9   :  { %8535 = vmatprep.subr.mxu0 %v9319_v1  ;;  %8528 = vmatmul.mubr.msk.f32.vlgmr.msra.gmra.mrb[64].mxu0 %vm970_vm14, %v4680_v31 }
0x13ea   :  { %v9133_v33 = vpop.eup %9132  ;;  %8523 = vmatmul.mubr.msk.f32.vlgmr.msra.gmra.mrb[48].mxu1 %vm970_vm14, %v4679_v12  ;;  %8536 = vmatpush3.msra.mxu0 %v3969_v32  ;;  %v7820_v32 = vld [vmem:[%s11188_s29 + $0x48] sm:$0xff] }
0x13eb   :  { %v4682_v63 = vmul.f32 %v9133_v33, %v9117_v11  ;;  %8531 = vmatpush3.msra.mxu1 %v3966_v35  ;;  %8532 = vmatprep.mubr.msk.f32.mxu1 %vm9322_vm1, %v9319_v1  ;;  %v8902_v33 = vpack.c.bf16 %v7820_v32, %v7819_v10  ;;  %v7821_v35 = vld [vmem:[%s11188_s29 + $0x50] sm:$0xff]  ;;  %v7816_v32 = vld [vmem:[%s11191_s30 + $0x1] ss:$0 sm:$0xff]  ;;  %s11202_s30 = sld [smem:[#allocation28_spill]] }
0x13ec   :  { %8537 = vmatprep.mubr.msk.f32.mxu0 %vm9322_vm1, %v9319_v1  ;;  %8871 = vmatprep.subr.bf16.mxu1 %v8870_v45 }
0x13ed   :  { %8538 = vmatmul.mubr.msk.f32.vlgmr.msra.gmra.mrb[66].mxu0 %vm970_vm14, %v4682_v63  ;;  %v7822_v63 = vld [vmem:[%s11188_s29 + $0x58] sm:$0xff] }
0x13ee   :  { %8533 = vmatmul.mubr.msk.f32.vlgmr.msra.gmra.mrb[50].mxu1 %vm970_vm14, %v4681_v38  ;;  %v8906_v38 = vpack.c.bf16 %v7822_v63, %v7821_v35 }
0x13ef   :  { %8873 = vmatpush3.bf16.msra.mxu1 %v8870_v45  ;;  %v8886_v45 = vpack.c.bf16 %v7808_v44, %v7807_v43 }
0x13f0   :  { %8875 = vmatprep.subr.bf16.mxu1 %v8874_v47 }
0x13f1   :  { %8887 = vmatprep.subr.bf16.mxu0 %v8886_v45 }
0x13f2   :  { %8889 = vmatpush3.bf16.msra.mxu0 %v8886_v45 }
0x13f3   :  { %8877 = vmatpush3.bf16.msra.mxu1 %v8874_v47  ;;  %v7826_v47 = vld [vmem:[%s11188_s29 + $0x78] sm:$0xff] }
0x13f4   :  { %8879 = vmatprep.subr.bf16.mxu1 %v8878_v51  ;;  %v8914_v48 = vpack.c.bf16 %v7826_v47, %v7825_v46 }
0x13f7   :  { %8881 = vmatpush3.bf16.msra.mxu1 %v8878_v51  ;;  %v7810_v51 = vld [vmem:[%s11189_s3 + $0x58] sm:$0xff] }
0x13f8   :  { %8883 = vmatprep.subr.bf16.mxu1 %v8882_v56 }
0x13fb   :  { %8885 = vmatpush3.bf16.msra.mxu1 %v8882_v56  ;;  %v9193_v56 = vld [vmem:[#allocation5 + $0x8] sm:$0xf] }
0x13fc   :  { %8903 = vmatprep.subr.bf16.mxu1 %v8902_v33 }
0x1457   :  { %v4752_v39 = vpop.f32.mrb[44].mxu1 }
0x1458   :  { %v8504_v40 = vpop.f32.mrb[45].mxu1 }
0x1459   :  { %v7824_v40 = vld [vmem:[%s11188_s29 + $0x68] sm:$0xff] }
0x14b0   :  { %v4825_v52 = vpop.f32.mrb[60].mxu0 }
0x14b1   :  { %5268 = vrot.lane.b32.xlu0 %v4825_v52, %s11194_s0  ;;  %v8509_v53 = vpop.f32.mrb[61].mxu0  ;;  %v8890_v52 = vpack.c.bf16 %v7810_v51, %v7809_v50 }
0x14b2   :  { %v7811_v53 = vld [vmem:[%s11189_s3 + $0x60] sm:$0xff] }
0x14b3   :  { %8891 = vmatprep.subr.bf16.mxu0 %v8890_v52  ;;  %v8894_v55 = vpack.c.bf16 %v7812_v54, %v7811_v53 }
0x14b4   :  { %8893 = vmatpush3.bf16.msra.mxu0 %v8890_v52 }
0x14b5   :  { %8895 = vmatprep.subr.bf16.mxu0 %v8894_v55 }
0x14b8   :  { %v4971_v57 = vpop.f32.mrb[62].mxu0  ;;  %8897 = vmatpush3.bf16.msra.mxu0 %v8894_v55 }
0x14b9   :  { %v4898_v58 = vpop.f32.mrb[46].mxu1  ;;  %v8519_v59 = vpop.f32.mrb[63].mxu0 }
0x14ba   :  { %5272 = vrot.lane.b32.xlu1 %v4898_v58, %s11195_s10  ;;  %v8514_v60 = vpop.f32.mrb[47].mxu1  ;;  %v7814_v58 = vld [vmem:[%s11189_s3 + $0x78] sm:$0xff] }
0x14bc   :  { %v5117_v0 = vpop.f32.mrb[64].mxu0 }
0x14bd   :  { %v5044_v2 = vpop.f32.mrb[48].mxu1  ;;  %5283 = vrot.lane.b32.xlu0 %v5117_v0, %s11194_s0  ;;  %v8529_v3 = vpop.f32.mrb[65].mxu0 }
0x14be   :  { %5276 = vrot.lane.b32.xlu1 %v4971_v57, %s11196_s7  ;;  %v8524_v4 = vpop.f32.mrb[49].mxu1  ;;  %v7813_v57 = vld [vmem:[%s11189_s3 + $0x70] sm:$0xff] }
0x14bf   :  { %v8898_v59 = vpack.c.bf16 %v7814_v58, %v7813_v57 }
0x14c0   :  { %v5263_v6 = vpop.f32.mrb[66].mxu0 }
0x14c1   :  { %v5190_v7 = vpop.f32.mrb[50].mxu1  ;;  %v8539_v8 = vpop.f32.mrb[67].mxu0  ;;  %8899 = vmatprep.subr.bf16.mxu0 %v8898_v59 }
0x14c2   :  { %5287 = vrot.lane.b32.xlu0 %v5190_v7, %s11195_s10  ;;  %v8534_v11 = vpop.f32.mrb[51].mxu1  ;;  %5291 = vrot.lane.b32.xlu1 %v5263_v6, %s11196_s7 }
0x14c3   :  { %8901 = vmatpush3.bf16.msra.mxu0 %v8898_v59 }
0x14c4   :  { %8597 = vmatprep.subr.mxu0 %v9319_v1 }
0x1523   :  { %v5269_v41 = vpop.permute.xlu0 %5268 }
0x1524   :  { %v5279_v13 = vsel %vm347_vm2, %v4752_v39, %v5269_v41  ;;  %v7823_v39 = vld [vmem:[%s11188_s29 + $0x60] sm:$0xff] }
0x1525   :  { %v8910_v42 = vpack.c.bf16 %v7824_v40, %v7823_v39 }
0x152c   :  { %v5273_v9 = vpop.permute.xlu1 %5272 }
0x152d   :  { %v5280_v29 = vsel %vm1656_vm4, %v5279_v13, %v5273_v9 }
0x152f   :  { %v5284_v26 = vpop.permute.xlu0 %5283 }
0x1530   :  { %v5277_v37 = vpop.permute.xlu1 %5276  ;;  %v5294_v27 = vsel %vm347_vm2, %v5044_v2, %v5284_v26 }
0x1531   :  { %v5281_v16 = vsel %vm1658_vm5, %v5280_v29, %v5277_v37  ;;  %v10647_v37 = vld [vmem:[%s11117_s14 + $0x4] sm:$0x7] }
0x1532   :  { %8556 = vmatprep.mubr.msk.f32.mxu1 %vm227_vm0, %v5281_v16  ;;  %v10652_v16 = vld [vmem:[%s11118_s15 + $0x4] sm:$0x7] }
0x1534   :  { %v5288_v19 = vpop.permute.xlu0 %5287  ;;  %v5292_v15 = vpop.permute.xlu1 %5291 }
0x1535   :  { %v5295_v20 = vsel %vm1656_vm4, %v5294_v27, %v5288_v19  ;;  %v5430_v19 = vrot.slane %v10647_v37, %v9601_v30 }
0x1536   :  { %v5296_v21 = vsel %vm1658_vm5, %v5295_v20, %v5292_v15 }
0x1537   :  { %8557 = vmatmul.mubr.msk.f32.vlgmr.msra.gmra.mrb[52].mxu1 %vm227_vm0, %v5296_v21  ;;  %v5436_v21 = vrot.slane %v10652_v16, %v9601_v30 }
0x1538   :  { %8594 = vmatprep.mubr.msk.f32.mxu1 %vm227_vm0, %v9192_v17  ;;  %8905 = vmatpush3.bf16.msra.mxu1 %v8902_v33 }
0x1539   :  { %8907 = vmatprep.subr.bf16.mxu1 %v8906_v38 }
0x153c   :  { %8909 = vmatpush3.bf16.msra.mxu1 %v8906_v38 }
0x153d   :  { %8911 = vmatprep.subr.bf16.mxu1 %v8910_v42 }
0x1540   :  { %8913 = vmatpush3.bf16.msra.mxu1 %v8910_v42 }
0x1541   :  { %8915 = vmatprep.subr.bf16.mxu1 %v8914_v48 }
0x1544   :  { %8917 = vmatpush3.bf16.msra.mxu1 %v8914_v48 }
0x1545   :  { %8617 = vmatprep.subr.mxu1 %v9319_v1 }
0x1547   :  { %8595 = vmatmul.mubr.msk.f32.vlgmr.msra.gmra.mrb[54].mxu1 %vm227_vm0, %v9193_v56 }
0x1548   :  { %8619 = vmatprep.mubr.msk.f32.mxu1 %vm9322_vm1, %v9319_v1 }
0x160a   :  { %v8558_v23 = vpop.f32.mrb[52].mxu1 }
0x160b   :  { %v5392_v14 = vadd.f32 %v8558_v23, %v7804_v22  ;;  %v5386_v62 = vpop.f32.mrb[53].mxu1 }
0x160c   :  { %v5387_v25 = vadd.f32 %v7804_v22, %v5386_v62 }
0x160d   :  { %v10576_v24 = vadd.f32 %v5392_v14, %v10392_v18 }
0x160e   :  { %v10579_v28 = vadd.f32 %v5387_v25, %v10387_v36 }
0x160f   :  { %v5400_v49 = vsel %vm227_vm0, %v10576_v24, 0.0  ;;  %v5406_v18 = vmul.f32 %v10576_v24, %v10576_v24 }
0x1610   :  { %5401 = vadd.xlane.f32.xlu1 %v5400_v49  ;;  %v5397_v61 = vsel %vm227_vm0, %v10579_v28, 0.0  ;;  %v5405_v31 = vmul.f32 %v10579_v28, %v10579_v28 }
0x1611   :  { %5398 = vadd.xlane.f32.xlu0 %v5397_v61  ;;  %v5410_v36 = vsel %vm227_vm0, %v5406_v18, 0.0 }
0x1612   :  { %v5407_v12 = vsel %vm227_vm0, %v5405_v31, 0.0 }
0x1615   :  { %5408 = vadd.xlane.f32.xlu0 %v5407_v12 }
0x1619   :  { %5411 = vadd.xlane.f32.xlu0 %v5410_v36 }
0x161a   :  { %v8596_v49 = vpop.f32.mrb[54].mxu1 }
0x161b   :  { %v5620_v31 = vpop.f32.mrb[55].mxu1 }
0x169d   :  { %v5402_v2 = vpop.xlane.xlu1 %5401 }
0x169e   :  { %v5399_v60 = vpop.xlane.xlu0 %5398  ;;  %v5404_v4 = vmul.f32 0.015625, %v5402_v2 }
0x169f   :  { %v5403_v0 = vmul.f32 0.015625, %v5399_v60 }
0x16a0   :  { %v5416_v41 = vmul.f32 %v5404_v4, %v5404_v4  ;;  %v5420_v17 = vsub.f32 %v10576_v24, %v5404_v4  ;;  %v7828_v24 = vld [vmem:[%s11114_s11 + $0x1] ss:$0 sm:$0xff] }
0x16a1   :  { %v5415_v6 = vmul.f32 %v5403_v0, %v5403_v0  ;;  %v5419_v27 = vsub.f32 %v10579_v28, %v5403_v0  ;;  %v5626_v61 = vadd.f32 %v8596_v49, %v7828_v24  ;;  %v10673_v12 = vadd.f32 %v7828_v24, %v5620_v31 }
0x16a2   :  { %v5409_v3 = vpop.xlane.xlu0 %5408 }
0x16a3   :  { %v5413_v7 = vmul.f32 0.015625, %v5409_v3  ;;  %v5652_v18 = vrot.slane %v5626_v61, 6  ;;  %5644 = vrot.lane.b32.xlu1 %v10673_v12, %s11197_s24  ;;  %v5651_v36 = vrot.slane %v10673_v12, 6 }
0x16a5   :  { %v5417_v8 = vsub.f32 %v5413_v7, %v5415_v6  ;;  %v10684_v10 = vsel %vm2029_vm6, %v5651_v36, %v5652_v18 }
0x16a6   :  { %v5412_v11 = vpop.xlane.xlu0 %5411  ;;  %8618 = vmatpush3.xpose.msk.msra.mxu1 %vm347_vm2, %v10684_v10 }
0x16a7   :  { %v5421_v9 = vadd.f32 1e-05, %v5417_v8  ;;  %v5414_v13 = vmul.f32 0.015625, %v5412_v11  ;;  %5646 = vrot.lane.b32.xlu1 %v10673_v12, %s11190_s6  ;;  %8627 = vmatprep.subr.mxu1 %v9319_v1 }
0x16a9   :  { %9134 = vrsqrt.f32 %v5421_v9  ;;  %v5418_v26 = vsub.f32 %v5414_v13, %v5416_v41 }
0x16ab   :  { %v5422_v29 = vadd.f32 1e-05, %v5418_v26 }
0x16ad   :  { %9136 = vrsqrt.f32 %v5422_v29 }
0x16b3   :  { %v9135_v15 = vpop.eup %9134 }
0x16b4   :  { %v5425_v20 = vmul.f32 %v9135_v15, %v5419_v27 }
0x16b6   :  { %v5431_v22 = vmul.f32 %v5430_v19, %v5425_v20 }
0x16b7   :  { %v9137_v23 = vpop.eup %9136 }
0x16b8   :  { %v5426_v14 = vmul.f32 %v9137_v23, %v5420_v17  ;;  %v10660_v62 = vadd.f32 %v5436_v21, %v5431_v22 }
0x16ba   :  { %v5432_v25 = vmul.f32 %v5430_v19, %v5426_v14  ;;  %8575 = vmatprep.mubr.msk.f32.mxu0 %vm227_vm0, %v10660_v62 }
0x16bc   :  { %v10664_v28 = vadd.f32 %v5436_v21, %v5432_v25 }
0x16be   :  { %8576 = vmatmul.mubr.msk.f32.vlgmr.msra.gmra.mrb[68].mxu0 %vm227_vm0, %v10664_v28 }
0x16bf   :  { %8599 = vmatprep.mubr.msk.f32.mxu0 %vm9322_vm1, %v9319_v1  ;;  %8598 = vmatpush3.xpose.msk.msra.mxu0 %vm347_vm2, %v10673_v12 }
0x16c0   :  { %8602 = vmatprep.subr.mxu0 %v9319_v1 }
0x1715   :  { %v10696_v39 = vpop.permute.xlu1 %5644 }
0x1719   :  { %v10717_v40 = vpop.permute.xlu1 %5646 }
0x1791   :  { %v8577_v33 = vpop.f32.mrb[68].mxu0 }
0x1792   :  { %v5534_v35 = vadd.f32 %v8577_v33, %v7816_v32  ;;  %v5528_v63 = vpop.f32.mrb[69].mxu0 }
0x1793   :  { %v5529_v38 = vadd.f32 %v7816_v32, %v5528_v63 }
0x1794   :  { %5637 = vrot.lane.b32.xlu1 %v5534_v35, %s11197_s24  ;;  %8620 = vmatmul.mubr.msk.f32.vlgmr.msra.gmra.mrb[56].mxu1 %vm347_vm2, %v5534_v35 }
0x1795   :  { %5630 = vrot.lane.b32.xlu0 %v5529_v38, %s11197_s24  ;;  %8600 = vmatmul.mubr.msk.f32.vlgmr.msra.gmra.mrb[70].mxu0 %vm347_vm2, %v5529_v38 }
0x1796   :  { %8603 = vmatpush3.xpose.msk.msra.mxu0 %vm347_vm2, %v10696_v39  ;;  %8604 = vmatprep.mubr.msk.f32.mxu0 %vm9322_vm1, %v9319_v1 }
0x1797   :  { %8607 = vmatprep.subr.mxu0 %v9319_v1  ;;  %8629 = vmatprep.mubr.msk.f32.mxu1 %vm9322_vm1, %v9319_v1 }
0x1798   :  { %5632 = vrot.lane.b32.xlu1 %v5529_v38, %s11190_s6 }
0x1799   :  { %5648 = vrot.lane.b32.xlu0 %v10673_v12, %s11192_s8 }
0x179c   :  { %5634 = vrot.lane.b32.xlu1 %v5529_v38, %s11192_s8 }
0x179d   :  { %5654 = vrot.lane.b32.xlu0 %v10684_v10, %s11197_s24 }
0x17a0   :  { %5658 = vrot.lane.b32.xlu1 %v10684_v10, %s11192_s8 }
0x17a1   :  { %5656 = vrot.lane.b32.xlu0 %v10684_v10, %s11190_s6 }
0x17a4   :  { %5641 = vrot.lane.b32.xlu1 %v5534_v35, %s11192_s8 }
0x17a5   :  { %5639 = vrot.lane.b32.xlu0 %v5534_v35, %s11190_s6  ;;  %s11198_s6 = sld [smem:[#allocation27_spill]] }
0x1806   :  { %v5638_v42 = vpop.permute.xlu1 %5637 }
0x1807   :  { %v5631_v43 = vpop.permute.xlu0 %5630 }
0x1808   :  { %8605 = vmatmul.mubr.msk.f32.vlgmr.msra.gmra.mrb[72].mxu0 %vm347_vm2, %v5631_v43 }
0x1809   :  { %8608 = vmatpush3.xpose.msk.msra.mxu0 %vm347_vm2, %v10717_v40  ;;  %8609 = vmatprep.mubr.msk.f32.mxu0 %vm9322_vm1, %v9319_v1 }
0x180a   :  { %v5633_v44 = vpop.permute.xlu1 %5632  ;;  %8612 = vmatprep.subr.mxu0 %v9319_v1 }
0x180b   :  { %v10725_v45 = vpop.permute.xlu0 %5648 }
0x180c   :  { %8610 = vmatmul.mubr.msk.f32.vlgmr.msra.gmra.mrb[74].mxu0 %vm347_vm2, %v5633_v44 }
0x180d   :  { %8613 = vmatpush3.xpose.msk.msra.mxu0 %vm347_vm2, %v10725_v45  ;;  %8614 = vmatprep.mubr.msk.f32.mxu0 %vm9322_vm1, %v9319_v1 }
0x180e   :  { %v5635_v46 = vpop.permute.xlu1 %5634  ;;  %8622 = vmatprep.subr.mxu0 %v9319_v1 }
0x180f   :  { %v10733_v47 = vpop.permute.xlu0 %5654 }
0x1810   :  { %8615 = vmatmul.mubr.msk.f32.vlgmr.msra.gmra.mrb[76].mxu0 %vm347_vm2, %v5635_v46 }
0x1811   :  { %8623 = vmatpush3.xpose.msk.msra.mxu0 %vm347_vm2, %v10733_v47  ;;  %8624 = vmatprep.mubr.msk.f32.mxu0 %vm9322_vm1, %v9319_v1 }
0x1812   :  { %v10740_v48 = vpop.permute.xlu1 %5658  ;;  %8632 = vmatprep.subr.mxu0 %v9319_v1 }
0x1813   :  { %v10743_v50 = vpop.permute.xlu0 %5656 }
0x1814   :  { %8625 = vmatmul.mubr.msk.f32.vlgmr.msra.gmra.mrb[78].mxu0 %vm347_vm2, %v5638_v42  ;;  %8628 = vmatpush3.xpose.msk.msra.mxu1 %vm347_vm2, %v10743_v50 }
0x1815   :  { %8633 = vmatpush3.xpose.msk.msra.mxu0 %vm347_vm2, %v10740_v48  ;;  %8634 = vmatprep.mubr.msk.f32.mxu0 %vm9322_vm1, %v9319_v1 }
0x1816   :  { %v5642_v51 = vpop.permute.xlu1 %5641  ;;  %8637 = vmatprep.subr.mxu1 %v9319_v1  ;;  %8642 = vmatprep.subr.mxu0 %v9319_v1 }
0x1817   :  { %v5640_v52 = vpop.permute.xlu0 %5639 }
0x1818   :  { %8630 = vmatmul.mubr.msk.f32.vlgmr.msra.gmra.mrb[58].mxu1 %vm347_vm2, %v5640_v52  ;;  %8635 = vmatmul.mubr.msk.f32.vlgmr.msra.gmra.mrb[80].mxu0 %vm347_vm2, %v5642_v51 }
0x1819   :  { %8644 = vmatprep.mubr.msk.f32.mxu0 %vm9322_vm1, %v9319_v1  ;;  %8639 = vmatprep.mubr.msk.f32.mxu1 %vm9322_vm1, %v9319_v1 }
0x1867   :  { %v6026_v53 = vpop.f32.mrb[56].mxu1 }
0x1868   :  { %v5730_v54 = vpop.f32.mrb[70].mxu0  ;;  %v8621_v55 = vpop.f32.mrb[57].mxu1  ;;  %v6256_v2 = vmul.f32 0.25, %v6026_v53 }
0x1869   :  { %v6252_v56 = vmul.f32 0.25, %v5730_v54  ;;  %v8601_v57 = vpop.f32.mrb[71].mxu0 }
0x186a   :  { %v6272_v8 = vsel %vm2639_vm7, %v6256_v2, -inf }
0x186b   :  { %v6260_v58 = vsel %vm2639_vm7, %v6252_v56, -inf }
0x186c   :  { %6261 = vmax.xlane.f32.xlu0 %v6260_v58 }
0x18db   :  { %v5804_v59 = vpop.f32.mrb[72].mxu0 }
0x18dc   :  { %v6253_v60 = vmul.f32 0.25, %v5804_v59  ;;  %v8606_v0 = vpop.f32.mrb[73].mxu0 }
0x18de   :  { %v6263_v3 = vsel %vm2639_vm7, %v6253_v60, -inf }
0x18df   :  { %6264 = vmax.xlane.f32.xlu1 %v6263_v3  ;;  %v5878_v4 = vpop.f32.mrb[74].mxu0 }
0x18e0   :  { %v6254_v6 = vmul.f32 0.25, %v5878_v4  ;;  %v8611_v7 = vpop.f32.mrb[75].mxu0 }
0x18e2   :  { %v6266_v11 = vsel %vm2639_vm7, %v6254_v6, -inf }
0x18e3   :  { %6273 = vmax.xlane.f32.xlu1 %v6272_v8  ;;  %6267 = vmax.xlane.f32.xlu0 %v6266_v11  ;;  %v5952_v41 = vpop.f32.mrb[76].mxu0 }
0x18e4   :  { %v6255_v9 = vmul.f32 0.25, %v5952_v41  ;;  %v8616_v13 = vpop.f32.mrb[77].mxu0 }
0x18e6   :  { %v6269_v26 = vsel %vm2639_vm7, %v6255_v9, -inf }
0x18e7   :  { %6270 = vmax.xlane.f32.xlu0 %v6269_v26  ;;  %v6100_v29 = vpop.f32.mrb[78].mxu0 }
0x18e8   :  { %v6257_v27 = vmul.f32 0.25, %v6100_v29  ;;  %v8626_v19 = vpop.f32.mrb[79].mxu0 }
0x18ea   :  { %v6275_v15 = vsel %vm2639_vm7, %v6257_v27, -inf }
0x18eb   :  { %v6174_v20 = vpop.f32.mrb[58].mxu1  ;;  %6276 = vmax.xlane.f32.xlu0 %v6275_v15  ;;  %v6248_v21 = vpop.f32.mrb[80].mxu0 }
0x18ec   :  { %v6258_v17 = vmul.f32 0.25, %v6174_v20  ;;  %v6259_v22 = vmul.f32 0.25, %v6248_v21  ;;  %v8631_v23 = vpop.f32.mrb[59].mxu1  ;;  %v8636_v14 = vpop.f32.mrb[81].mxu0 }
0x18ee   :  { %v6278_v25 = vsel %vm2639_vm7, %v6258_v17, -inf  ;;  %v6281_v24 = vsel %vm2639_vm7, %v6259_v22, -inf }
0x18ef   :  { %6279 = vmax.xlane.f32.xlu1 %v6278_v25  ;;  %6282 = vmax.xlane.f32.xlu0 %v6281_v24 }
0x18f9   :  { %v6262_v49 = vpop.xlane.xlu0 %6261 }
0x18fa   :  { %v6284_v18 = vsub.f32 %v6252_v56, %v6262_v49 }
0x18fc   :  { %v6292_v35 = vmul.f32 1.442695, %v6284_v18 }
0x1900   :  { %6348 = vrot.lane.b32.xlu1 %v10673_v12, %s11193_s28 }
0x1904   :  { %6502 = vrot.lane.b32.xlu1 %v10717_v40, %s11193_s28 }
0x1905   :  { %6425 = vrot.lane.b32.xlu0 %v10696_v39, %s11193_s28 }
0x1908   :  { %6579 = vrot.lane.b32.xlu1 %v10725_v45, %s11193_s28 }
0x1909   :  { %6656 = vrot.lane.b32.xlu0 %v10684_v10, %s11193_s28 }
0x190c   :  { %6733 = vrot.lane.b32.xlu1 %v10733_v47, %s11193_s28 }
0x196c   :  { %v6265_v61 = vpop.xlane.xlu1 %6264 }
0x196d   :  { %v6285_v31 = vsub.f32 %v6253_v60, %v6265_v61 }
0x196f   :  { %v6294_v12 = vmul.f32 1.442695, %v6285_v31 }
0x1970   :  { %v6274_v36 = vpop.xlane.xlu1 %6273  ;;  %v6268_v32 = vpop.xlane.xlu0 %6267 }
0x1971   :  { %9138 = vpow2.f32 %v6294_v12  ;;  %v6288_v33 = vsub.f32 %v6256_v2, %v6274_v36  ;;  %v6286_v44 = vsub.f32 %v6254_v6, %v6268_v32 }
0x1973   :  { %v6300_v63 = vmul.f32 1.442695, %v6288_v33  ;;  %v6296_v55 = vmul.f32 1.442695, %v6286_v44 }
0x1974   :  { %v6271_v38 = vpop.xlane.xlu0 %6270 }
0x1975   :  { %9140 = vpow2.f32 %v6300_v63  ;;  %v6287_v39 = vsub.f32 %v6255_v9, %v6271_v38 }
0x1976   :  { %9142 = vpow2.f32 %v6292_v35 }
0x1977   :  { %v6298_v40 = vmul.f32 1.442695, %v6287_v39 }
0x1978   :  { %v6277_v10 = vpop.xlane.xlu0 %6276 }
0x1979   :  { %9144 = vpow2.f32 %v6298_v40  ;;  %v6289_v42 = vsub.f32 %v6257_v27, %v6277_v10 }
0x197b   :  { %v9139_v43 = vpop.eup %9138  ;;  %v6302_v45 = vmul.f32 1.442695, %v6289_v42 }
0x197c   :  { %v6280_v46 = vpop.xlane.xlu1 %6279  ;;  %v6283_v47 = vpop.xlane.xlu0 %6282  ;;  %v6311_v51 = vsel %vm2639_vm7, %v9139_v43, 0.0 }
0x197d   :  { %9146 = vpow2.f32 %v6302_v45  ;;  %v6290_v52 = vsub.f32 %v6258_v17, %v6280_v46  ;;  %v6291_v53 = vsub.f32 %v6259_v22, %v6283_v47  ;;  %6312 = vadd.xlane.f32.xlu0 %v6311_v51  ;;  %v6995_v46 = vld [vmem:[#allocation10 + $0x40] sm:$0xff]  ;;  %v6996_v47 = vld [vmem:[#allocation10 + $0x48] sm:$0xff]  ;;  %v6997_v51 = vld [vmem:[#allocation10 + $0x50] sm:$0xff] }
0x197f   :  { %v10781_v54 = vpop.eup %9140  ;;  %v6304_v56 = vmul.f32 1.442695, %v6290_v52  ;;  %v6306_v57 = vmul.f32 1.442695, %v6291_v53  ;;  %v8918_v52 = vpack.c.bf16 %v6996_v47, %v6995_v46  ;;  %v6998_v53 = vld [vmem:[#allocation10 + $0x58] sm:$0xff] }
0x1980   :  { %v6349_v58 = vpop.permute.xlu1 %6348  ;;  %v6426_v59 = vpop.permute.xlu0 %6425  ;;  %v6320_v60 = vsel %vm2639_vm7, %v10781_v54, 0.0  ;;  %v7874_v46 = vld [vmem:[%s11119_s16 + $0xb8] sm:$0xff] }
0x1981   :  { %v9143_v0 = vpop.eup %9142  ;;  %9148 = vpow2.f32 %v6304_v56  ;;  %6321 = vadd.xlane.f32.xlu1 %v6320_v60  ;;  %8638 = vmatpush3.msk.msra.mxu1 %vm2733_vm8, %v6349_v58  ;;  %v6999_v56 = vld [vmem:[#allocation10 + $0x60] sm:$0xff] }
0x1982   :  { %9150 = vpow2.f32 %v6306_v57  ;;  %8643 = vmatpush3.msk.msra.mxu0 %vm2733_vm8, %v6426_v59  ;;  %8647 = vmatprep.subr.mxu1 %v9319_v1  ;;  %v6308_v3 = vsel %vm2639_vm7, %v9143_v0, 0.0  ;;  %v7000_v57 = vld [vmem:[#allocation10 + $0x68] sm:$0xff] }
0x1983   :  { %v9145_v2 = vpop.eup %9144  ;;  %9152 = vpow2.f32 %v6296_v55  ;;  %8652 = vmatprep.subr.mxu0 %v9319_v1  ;;  %v8926_v60 = vpack.c.bf16 %v7000_v57, %v6999_v56  ;;  %v7875_v57 = vld [vmem:[%s11119_s16 + $0xc0] sm:$0xff] }
0x1984   :  { %v6317_v4 = vsel %vm2639_vm7, %v9145_v2, 0.0  ;;  %v6503_v29 = vpop.permute.xlu1 %6502  ;;  %v6657_v19 = vpop.permute.xlu0 %6656 }
0x1985   :  { %6309 = vadd.xlane.f32.xlu1 %v6308_v3  ;;  %6318 = vadd.xlane.f32.xlu0 %v6317_v4  ;;  %v7001_v3 = vld [vmem:[#allocation10 + $0x70] sm:$0xff]  ;;  %v7002_v4 = vld [vmem:[#allocation10 + $0x78] sm:$0xff] }
0x1987   :  { %v9147_v6 = vpop.eup %9146 }
0x1988   :  { %v6323_v7 = vsel %vm2639_vm7, %v9147_v6, 0.0  ;;  %v6580_v27 = vpop.permute.xlu1 %6579 }
0x1989   :  { %6324 = vadd.xlane.f32.xlu0 %v6323_v7  ;;  %v8930_v7 = vpack.c.bf16 %v7002_v4, %v7001_v3  ;;  %v7881_v4 = vld [vmem:[%s11119_s16 + $0xf0] sm:$0xff] }
0x198b   :  { %v10792_v8 = vpop.eup %9148 }
0x198c   :  { %v9151_v11 = vpop.eup %9150  ;;  %v6326_v41 = vsel %vm2639_vm7, %v10792_v8, 0.0  ;;  %v6734_v15 = vpop.permute.xlu1 %6733 }
0x198d   :  { %v9153_v9 = vpop.eup %9152  ;;  %6327 = vadd.xlane.f32.xlu1 %v6326_v41  ;;  %v6329_v13 = vsel %vm2639_vm7, %v9151_v11, 0.0 }
0x198e   :  { %6330 = vadd.xlane.f32.xlu0 %v6329_v13  ;;  %v6314_v26 = vsel %vm2639_vm7, %v9153_v9, 0.0 }
0x1991   :  { %6315 = vadd.xlane.f32.xlu1 %v6314_v26 }
0x19a2   :  { %6887 = vrot.lane.b32.xlu1 %v10740_v48, %s11193_s28 }
0x19a4   :  { %6810 = vrot.lane.b32.xlu0 %v10743_v50, %s11193_s28  ;;  %s11203_s28 = sld [smem:[#allocation30_spill]] }
0x1a0a   :  { %v6313_v20 = vpop.xlane.xlu0 %6312 }
0x1a0b   :  { %9154 = vrcp.f32 %v6313_v20 }
0x1a0e   :  { %v6322_v21 = vpop.xlane.xlu1 %6321 }
0x1a12   :  { %v6310_v17 = vpop.xlane.xlu1 %6309  ;;  %v6319_v22 = vpop.xlane.xlu0 %6318 }
0x1a13   :  { %9156 = vrcp.f32 %v6310_v17 }
0x1a14   :  { %9158 = vrcp.f32 %v6319_v22 }
0x1a15   :  { %v9155_v23 = vpop.eup %9154 }
0x1a16   :  { %v6341_v14 = vmul.f32 %v9155_v23, %v9139_v43  ;;  %v6325_v25 = vpop.xlane.xlu0 %6324 }
0x1a17   :  { %9160 = vrcp.f32 %v6325_v25 }
0x1a18   :  { %8645 = vmatmul.mubr.msk.f32.vlgmr.msra.gmra.mrb[82].mxu0 %vm2639_vm7, %v6341_v14 }
0x1a19   :  { %8653 = vmatpush3.msk.msra.mxu0 %vm2733_vm8, %v6580_v27  ;;  %8654 = vmatprep.mubr.msk.f32.mxu0 %vm9322_vm1, %v9319_v1 }
0x1a1a   :  { %v6328_v48 = vpop.xlane.xlu1 %6327  ;;  %8662 = vmatprep.subr.mxu0 %v9319_v1 }
0x1a1b   :  { %v6331_v50 = vpop.xlane.xlu0 %6330 }
0x1a1c   :  { %9162 = vrcp.f32 %v6331_v50 }
0x1a1d   :  { %v9157_v24 = vpop.eup %9156 }
0x1a1e   :  { %v9159_v49 = vpop.eup %9158  ;;  %v6340_v61 = vmul.f32 %v9157_v24, %v9143_v0  ;;  %v6316_v31 = vpop.xlane.xlu1 %6315 }
0x1a1f   :  { %v6343_v18 = vmul.f32 %v9159_v49, %v9145_v2  ;;  %9164 = vrcp.f32 %v6316_v31  ;;  %v6811_v42 = vpop.permute.xlu0 %6810  ;;  %v7864_v49 = vld [vmem:[%s11116_s13 + $0x1] ss:$0 sm:$0xff] }
0x1a20   :  { %8640 = vmatmul.mubr.msk.f32.vlgmr.msra.gmra.mrb[60].mxu1 %vm2639_vm7, %v6340_v61  ;;  %9166 = vrcp.f32 %v6322_v21 }
0x1a21   :  { %v9161_v12 = vpop.eup %9160  ;;  %8648 = vmatpush3.msk.msra.mxu1 %vm2733_vm8, %v6503_v29  ;;  %8655 = vmatmul.mubr.msk.f32.vlgmr.msra.gmra.mrb[84].mxu0 %vm2639_vm7, %v6343_v18  ;;  %9168 = vrcp.f32 %v6328_v48 }
0x1a22   :  { %v6345_v36 = vmul.f32 %v9161_v12, %v9147_v6  ;;  %8663 = vmatpush3.msk.msra.mxu0 %vm2733_vm8, %v6734_v15  ;;  %8664 = vmatprep.mubr.msk.f32.mxu0 %vm9322_vm1, %v9319_v1  ;;  %v6888_v32 = vpop.permute.xlu1 %6887 }
0x1a23   :  { %8672 = vmatprep.subr.mxu0 %v9319_v1  ;;  %8649 = vmatprep.mubr.msk.f32.mxu1 %vm9322_vm1, %v9319_v1 }
0x1a24   :  { %8657 = vmatprep.subr.mxu1 %v9319_v1 }
0x1a25   :  { %8665 = vmatmul.mubr.msk.f32.vlgmr.msra.gmra.mrb[86].mxu0 %vm2639_vm7, %v6345_v36 }
0x1a26   :  { %v9163_v33 = vpop.eup %9162  ;;  %8673 = vmatpush3.msk.msra.mxu0 %vm2733_vm8, %v6888_v32  ;;  %8674 = vmatprep.mubr.msk.f32.mxu0 %vm9322_vm1, %v9319_v1 }
0x1a27   :  { %v6347_v35 = vmul.f32 %v9163_v33, %v9151_v11 }
0x1a29   :  { %v9165_v63 = vpop.eup %9164  ;;  %8675 = vmatmul.mubr.msk.f32.vlgmr.msra.gmra.mrb[88].mxu0 %vm2639_vm7, %v6347_v35 }
0x1a2a   :  { %v6342_v38 = vmul.f32 %v9165_v63, %v9153_v9  ;;  %7236 = vmatprep.mubr.f32.mxu0 %v9319_v1  ;;  %v9167_v39 = vpop.eup %9166 }
0x1a2b   :  { %v6344_v40 = vmul.f32 %v9167_v39, %v10781_v54  ;;  %v9169_v10 = vpop.eup %9168  ;;  %v8922_v54 = vpack.c.bf16 %v6998_v53, %v6997_v51  ;;  %v7868_v39 = vld [vmem:[%s11119_s16 + $0x88] sm:$0xff]  ;;  %v7871_v51 = vld [vmem:[%s11119_s16 + $0xa0] sm:$0xff] }
0x1a2c   :  { %8650 = vmatmul.mubr.msk.f32.vlgmr.msra.gmra.mrb[62].mxu1 %vm2639_vm7, %v6342_v38  ;;  %v6346_v43 = vmul.f32 %v9169_v10, %v10792_v8 }
0x1a2d   :  { %8658 = vmatpush3.msk.msra.mxu1 %vm2733_vm8, %v6657_v19  ;;  %8659 = vmatprep.mubr.msk.f32.mxu1 %vm9322_vm1, %v9319_v1 }
0x1a2e   :  { %8667 = vmatprep.subr.mxu1 %v9319_v1 }
0x1a30   :  { %8660 = vmatmul.mubr.msk.f32.vlgmr.msra.gmra.mrb[64].mxu1 %vm2639_vm7, %v6344_v40  ;;  %v7870_v40 = vld [vmem:[%s11119_s16 + $0x98] sm:$0xff] }
0x1a31   :  { %8668 = vmatpush3.msk.msra.mxu1 %vm2733_vm8, %v6811_v42  ;;  %8669 = vmatprep.mubr.msk.f32.mxu1 %vm9322_vm1, %v9319_v1  ;;  %v8934_v10 = vpack.c.bf16 %v7870_v40, %v7868_v39  ;;  %v7867_v42 = vld [vmem:[%s11119_s16 + $0x80] sm:$0xff]  ;;  %v7889_v39 = vld [vmem:[%s11121_s18 + $0x118] sm:$0xff] }
0x1a32   :  { %8919 = vmatprep.subr.bf16.mxu1 %v8918_v52 }
0x1a33   :  { %8935 = vmatprep.subr.bf16.mxu0 %v8934_v10  ;;  %v7906_v10 = vld [vmem:[%s11121_s18 + $0x1a0] sm:$0xff] }
0x1a34   :  { %8670 = vmatmul.mubr.msk.f32.vlgmr.msra.gmra.mrb[66].mxu1 %vm2639_vm7, %v6346_v43  ;;  %v7869_v43 = vld [vmem:[%s11119_s16 + $0x90] sm:$0xff] }
0x1a35   :  { %8921 = vmatpush3.bf16.msra.mxu1 %v8918_v52  ;;  %v7873_v52 = vld [vmem:[%s11119_s16 + $0xb0] sm:$0xff] }
0x1a36   :  { %8923 = vmatprep.subr.bf16.mxu1 %v8922_v54  ;;  %v8940_v53 = vpack.c.bf16 %v7873_v52, %v7871_v51  ;;  %v7909_v51 = vld [vmem:[%s11121_s18 + $0x1b8] sm:$0xff] }
0x1a39   :  { %8925 = vmatpush3.bf16.msra.mxu1 %v8922_v54  ;;  %v7876_v54 = vld [vmem:[%s11119_s16 + $0xc8] sm:$0xff] }
0x1a3a   :  { %8927 = vmatprep.subr.bf16.mxu1 %v8926_v60 }
0x1a3d   :  { %8929 = vmatpush3.bf16.msra.mxu1 %v8926_v60  ;;  %v7880_v60 = vld [vmem:[%s11119_s16 + $0xe8] sm:$0xff] }
0x1a3e   :  { %8931 = vmatprep.subr.bf16.mxu1 %v8930_v7 }
0x1a41   :  { %8933 = vmatpush3.bf16.msra.mxu1 %v8930_v7 }
0x1aeb   :  { %v6498_v44 = vpop.f32.mrb[82].mxu0 }
0x1aec   :  { %6965 = vrot.lane.b32.xlu0 %v6498_v44, %s11194_s0  ;;  %v8646_v45 = vpop.f32.mrb[83].mxu0  ;;  %v8936_v44 = vpack.c.bf16 %v7869_v43, %v7867_v42  ;;  %v7907_v42 = vld [vmem:[%s11121_s18 + $0x1a8] sm:$0xff] }
0x1aed   :  { %v7872_v45 = vld [vmem:[%s11119_s16 + $0xa8] sm:$0xff]  ;;  %v8958_v43 = vpack.c.bf16 %v7907_v42, %v7906_v10 }
0x1aee   :  { %8937 = vmatpush1.bf16.msra.mxu0 %v8936_v44  ;;  %v8938_v47 = vpack.c.bf16 %v7874_v46, %v7872_v45  ;;  %v7890_v44 = vld [vmem:[%s11121_s18 + $0x120] sm:$0xff]  ;;  %v7891_v45 = vld [vmem:[%s11121_s18 + $0x128] sm:$0xff] }
0x1aef   :  { %v8960_v46 = vpack.c.bf16 %v7891_v45, %v7890_v44 }
0x1af0   :  { %8939 = vmatprep.subr.bf16.mxu0 %v8938_v47  ;;  %v7908_v47 = vld [vmem:[%s11121_s18 + $0x1b0] sm:$0xff] }
0x1af1   :  { %v8962_v52 = vpack.c.bf16 %v7909_v51, %v7908_v47 }
0x1af2   :  { %8941 = vmatpush1.bf16.msra.mxu0 %v8940_v53  ;;  %v7892_v53 = vld [vmem:[%s11121_s18 + $0x130] sm:$0xff] }
0x1af3   :  { %v6421_v55 = vpop.f32.mrb[60].mxu1 }
0x1af4   :  { %v6652_v58 = vpop.f32.mrb[84].mxu0  ;;  %v8641_v59 = vpop.f32.mrb[61].mxu1 }
0x1af5   :  { %v8656_v0 = vpop.f32.mrb[85].mxu0 }
0x1af6   :  { %v7882_v0 = vld [vmem:[%s11119_s16 + $0xf8] sm:$0xff] }
0x1af7   :  { %v8946_v3 = vpack.c.bf16 %v7882_v0, %v7880_v60  ;;  %v7895_v60 = vld [vmem:[%s11121_s18 + $0x148] sm:$0xff] }
0x1af8   :  { %v6806_v2 = vpop.f32.mrb[86].mxu0 }
0x1af9   :  { %6980 = vrot.lane.b32.xlu0 %v6806_v2, %s11194_s0  ;;  %v8666_v6 = vpop.f32.mrb[87].mxu0  ;;  %v7879_v2 = vld [vmem:[%s11119_s16 + $0xe0] sm:$0xff] }
0x1afa   :  { %v8948_v6 = vpack.c.bf16 %v7881_v4, %v7879_v2  ;;  %v7912_v2 = vld [vmem:[%s11121_s18 + $0x1d0] sm:$0xff] }
0x1afb   :  { %v7896_v4 = vld [vmem:[%s11121_s18 + $0x150] sm:$0xff] }
0x1afc   :  { %v6960_v8 = vpop.f32.mrb[88].mxu0 }
0x1afd   :  { %v8676_v11 = vpop.f32.mrb[89].mxu0 }
0x1aff   :  { %v6575_v41 = vpop.f32.mrb[62].mxu1 }
0x1b00   :  { %6969 = vrot.lane.b32.xlu1 %v6575_v41, %s11195_s10  ;;  %v8651_v9 = vpop.f32.mrb[63].mxu1 }
0x1b03   :  { %v6729_v13 = vpop.f32.mrb[64].mxu1 }
0x1b04   :  { %v8661_v26 = vpop.f32.mrb[65].mxu1  ;;  %6973 = vrot.lane.b32.xlu1 %v6652_v58, %s11196_s7  ;;  %v7877_v58 = vld [vmem:[%s11119_s16 + $0xd0] sm:$0xff] }
0x1b05   :  { %v8944_v59 = vpack.c.bf16 %v7877_v58, %v7875_v57  ;;  %v7911_v57 = vld [vmem:[%s11121_s18 + $0x1c8] sm:$0xff] }
0x1b07   :  { %v6883_v29 = vpop.f32.mrb[66].mxu1 }
0x1b08   :  { %v8671_v27 = vpop.f32.mrb[67].mxu1  ;;  %6984 = vrot.lane.b32.xlu0 %v6883_v29, %s11195_s10  ;;  %6988 = vrot.lane.b32.xlu1 %v6960_v8, %s11196_s7 }
0x1b5e   :  { %v6966_v19 = vpop.permute.xlu0 %6965 }
0x1b5f   :  { %v6976_v20 = vsel %vm347_vm2, %v6421_v55, %v6966_v19  ;;  %v7878_v55 = vld [vmem:[%s11119_s16 + $0xd8] sm:$0xff] }
0x1b60   :  { %v8942_v56 = vpack.c.bf16 %v7878_v55, %v7876_v54  ;;  %v7893_v54 = vld [vmem:[%s11121_s18 + $0x138] sm:$0xff] }
0x1b61   :  { %v8964_v55 = vpack.c.bf16 %v7893_v54, %v7892_v53 }
0x1b62   :  { %8943 = vmatprep.subr.bf16.mxu0 %v8942_v56  ;;  %v7910_v56 = vld [vmem:[%s11121_s18 + $0x1c0] sm:$0xff] }
0x1b63   :  { %8945 = vmatpush1.bf16.msra.mxu0 %v8944_v59  ;;  %v8966_v58 = vpack.c.bf16 %v7911_v57, %v7910_v56  ;;  %v7894_v59 = vld [vmem:[%s11121_s18 + $0x140] sm:$0xff] }
0x1b64   :  { %8947 = vmatprep.subr.bf16.mxu0 %v8946_v3  ;;  %v8968_v0 = vpack.c.bf16 %v7895_v60, %v7894_v59  ;;  %v7913_v3 = vld [vmem:[%s11121_s18 + $0x1d8] sm:$0xff] }
0x1b67   :  { %8949 = vmatpush1.bf16.msra.mxu0 %v8948_v6  ;;  %v8970_v6 = vpack.c.bf16 %v7913_v3, %v7912_v2 }
0x1b6b   :  { %v6981_v21 = vpop.permute.xlu0 %6980 }
0x1b6c   :  { %v6991_v14 = vsel %vm347_vm2, %v6729_v13, %v6981_v21  ;;  %vm7451_vm2 = vcmask 1040384  }
0x1b72   :  { %v6970_v15 = vpop.permute.xlu1 %6969 }
0x1b73   :  { %v6977_v17 = vsel %vm1656_vm4, %v6976_v20, %v6970_v15 }
0x1b76   :  { %v6974_v22 = vpop.permute.xlu1 %6973 }
0x1b77   :  { %v6978_v23 = vsel %vm1658_vm5, %v6977_v17, %v6974_v22 }
0x1b78   :  { %8693 = vmatprep.mubr.msk.f32.mxu1 %vm227_vm0, %v6978_v23  ;;  %v7127_v23 = vrot.slane %v10647_v37, %v9608_v34  ;;  %v7902_v37 = vld [vmem:[%s11121_s18 + $0x180] sm:$0xff] }
0x1b7a   :  { %v6985_v25 = vpop.permute.xlu0 %6984  ;;  %v6989_v48 = vpop.permute.xlu1 %6988 }
0x1b7b   :  { %v6992_v50 = vsel %vm1656_vm4, %v6991_v14, %v6985_v25 }
0x1b7c   :  { %v6993_v24 = vsel %vm1658_vm5, %v6992_v50, %v6989_v48  ;;  %v7133_v48 = vrot.slane %v10652_v16, %v9608_v34  ;;  %v7903_v16 = vld [vmem:[%s11121_s18 + $0x188] sm:$0xff] }
0x1b7d   :  { %8694 = vmatmul.mubr.msk.f32.vlgmr.msra.gmra.mrb[68].mxu1 %vm227_vm0, %v6993_v24 }
0x1c50   :  { %v8695_v61 = vpop.f32.mrb[68].mxu1 }
0x1c51   :  { %v7083_v31 = vpop.f32.mrb[69].mxu1  ;;  %v7089_v18 = vadd.f32 %v8695_v61, %v7864_v49 }
0x1c52   :  { %v7084_v12 = vadd.f32 %v7864_v49, %v7083_v31 }
0x1c53   :  { %v10856_v32 = vadd.f32 %v7089_v18, %v10664_v28 }
0x1c54   :  { %v10853_v36 = vadd.f32 %v7084_v12, %v10660_v62 }
0x1c55   :  { %v7097_v38 = vsel %vm227_vm0, %v10856_v32, 0.0  ;;  %v7103_v62 = vmul.f32 %v10856_v32, %v10856_v32 }
0x1c56   :  { %v7094_v33 = vsel %vm227_vm0, %v10853_v36, 0.0  ;;  %v7102_v35 = vmul.f32 %v10853_v36, %v10853_v36 }
0x1c57   :  { %7095 = vadd.xlane.f32.xlu0 %v7094_v33  ;;  %v7107_v28 = vsel %vm227_vm0, %v7103_v62, 0.0  ;;  %v7887_v33 = vld [vmem:[%s11121_s18 + $0x108] sm:$0xff] }
0x1c58   :  { %v7104_v63 = vsel %vm227_vm0, %v7102_v35, 0.0 }
0x1c59   :  { %7105 = vadd.xlane.f32.xlu1 %v7104_v63  ;;  %v7904_v63 = vld [vmem:[%s11121_s18 + $0x190] sm:$0xff] }
0x1c5b   :  { %7098 = vadd.xlane.f32.xlu0 %v7097_v38  ;;  %v7905_v38 = vld [vmem:[%s11121_s18 + $0x198] sm:$0xff] }
0x1c5c   :  { %v8954_v62 = vpack.c.bf16 %v7905_v38, %v7904_v63 }
0x1c5f   :  { %7108 = vadd.xlane.f32.xlu0 %v7107_v28  ;;  %v7888_v28 = vld [vmem:[%s11121_s18 + $0x110] sm:$0xff] }
0x1c60   :  { %v8956_v40 = vpack.c.bf16 %v7889_v39, %v7888_v28 }
0x1ce4   :  { %v7096_v7 = vpop.xlane.xlu0 %7095 }
0x1ce5   :  { %v7100_v8 = vmul.f32 0.015625, %v7096_v7  ;;  %v7897_v7 = vld [vmem:[%s11121_s18 + $0x158] sm:$0xff] }
0x1ce6   :  { %v7106_v11 = vpop.xlane.xlu1 %7105 }
0x1ce7   :  { %v7112_v41 = vmul.f32 %v7100_v8, %v7100_v8  ;;  %v7110_v9 = vmul.f32 0.015625, %v7106_v11  ;;  %v7116_v22 = vsub.f32 %v10853_v36, %v7100_v8  ;;  %v8950_v36 = vpack.c.bf16 %v7903_v16, %v7902_v37  ;;  %v7914_v8 = vld [vmem:[%s11121_s18 + $0x1e0] sm:$0xff]  ;;  %v7915_v11 = vld [vmem:[%s11121_s18 + $0x1e8] sm:$0xff] }
0x1ce8   :  { %v7099_v13 = vpop.xlane.xlu0 %7098 }
0x1ce9   :  { %v7114_v26 = vsub.f32 %v7110_v9, %v7112_v41  ;;  %v7101_v29 = vmul.f32 0.015625, %v7099_v13  ;;  %8951 = vmatprep.subr.bf16.mxu1 %v8950_v36  ;;  %v8972_v41 = vpack.c.bf16 %v7897_v7, %v7896_v4  ;;  %v8974_v9 = vpack.c.bf16 %v7915_v11, %v7914_v8  ;;  %v7898_v13 = vld [vmem:[%s11121_s18 + $0x160] sm:$0xff] }
0x1cea   :  { %v7919_v11 = vld [vmem:[%s11122_s19 + $0x1] ss:$0 sm:$0xff] }
0x1ceb   :  { %v7118_v27 = vadd.f32 1e-05, %v7114_v26  ;;  %v7113_v15 = vmul.f32 %v7101_v29, %v7101_v29  ;;  %v7117_v24 = vsub.f32 %v10856_v32, %v7101_v29  ;;  %v7886_v32 = vld [vmem:[%s11121_s18 + $0x100] sm:$0xff]  ;;  %v7899_v26 = vld [vmem:[%s11121_s18 + $0x168] sm:$0xff]  ;;  %v7916_v29 = vld [vmem:[%s11121_s18 + $0x1f0] sm:$0xff] }
0x1cec   :  { %v7109_v19 = vpop.xlane.xlu0 %7108  ;;  %v8952_v35 = vpack.c.bf16 %v7887_v33, %v7886_v32 }
0x1ced   :  { %9170 = vrsqrt.f32 %v7118_v27  ;;  %v7111_v20 = vmul.f32 0.015625, %v7109_v19  ;;  %v7917_v27 = vld [vmem:[%s11121_s18 + $0x1f8] sm:$0xff]  ;;  %v8976_v19 = vpack.c.bf16 %v7899_v26, %v7898_v13 }
0x1cee   :  { %8953 = vmatpush3.bf16.msra.mxu1 %v8952_v35 }
0x1cef   :  { %v7115_v21 = vsub.f32 %v7111_v20, %v7113_v15  ;;  %8955 = vmatprep.subr.bf16.mxu1 %v8954_v62  ;;  %v8978_v15 = vpack.c.bf16 %v7917_v27, %v7916_v29  ;;  %v7900_v20 = vld [vmem:[%s11121_s18 + $0x170] sm:$0xff] }
0x1cf1   :  { %v7119_v17 = vadd.f32 1e-05, %v7115_v21  ;;  %v7901_v21 = vld [vmem:[%s11121_s18 + $0x178] sm:$0xff] }
0x1cf2   :  { %8957 = vmatpush3.bf16.msra.mxu1 %v8956_v40 }
0x1cf3   :  { %9172 = vrsqrt.f32 %v7119_v17  ;;  %8959 = vmatprep.subr.bf16.mxu1 %v8958_v43  ;;  %v8980_v17 = vpack.c.bf16 %v7901_v21, %v7900_v20 }
0x1cf6   :  { %8961 = vmatpush3.bf16.msra.mxu1 %v8960_v46 }
0x1cf7   :  { %v9171_v14 = vpop.eup %9170  ;;  %8963 = vmatprep.subr.bf16.mxu1 %v8962_v52 }
0x1cf8   :  { %v7122_v25 = vmul.f32 %v9171_v14, %v7116_v22  ;;  %v7883_v22 = vld [vmem:[%s11120_s17 + $0x2] sm:$0x3]  ;;  %s11201_s17 = sld [smem:[#allocation29_spill]] }
0x1cf9   :  { %v7163_v14 = vrot.slane %v7883_v22, %v9608_v34 }
0x1cfa   :  { %v7128_v50 = vmul.f32 %v7127_v23, %v7122_v25  ;;  %8965 = vmatpush3.bf16.msra.mxu1 %v8964_v55 }
0x1cfb   :  { %8967 = vmatprep.subr.bf16.mxu1 %v8966_v58 }
0x1cfc   :  { %v10922_v49 = vadd.f32 %v7133_v48, %v7128_v50 }
0x1cfd   :  { %v9173_v61 = vpop.eup %9172 }
0x1cfe   :  { %7884 = vmatmul.mubr.msk.f32.vlgmr.msra.gmra.mrb[90].mxu0 %vm227_vm0, %v10922_v49  ;;  %v7123_v31 = vmul.f32 %v9173_v61, %v7117_v24  ;;  %8969 = vmatpush3.bf16.msra.mxu1 %v8968_v0 }
0x1cff   :  { %7242 = vmatprep.mubr.f32.mxu0 %v9319_v1  ;;  %8971 = vmatprep.subr.bf16.mxu1 %v8970_v6 }
0x1d00   :  { %v7129_v18 = vmul.f32 %v7127_v23, %v7123_v31  ;;  %v7159_v23 = vrot.slane %v7883_v22, %v9601_v30 }
0x1d02   :  { %v10927_v12 = vadd.f32 %v7133_v48, %v7129_v18  ;;  %8973 = vmatpush3.bf16.msra.mxu1 %v8972_v41 }
0x1d03   :  { %8975 = vmatprep.subr.bf16.mxu1 %v8974_v9 }
0x1d04   :  { %7885 = vmatmul.mubr.msk.f32.gmra.mrb[92].mxu0 %vm227_vm0, %v10927_v12 }
0x1d05   :  { %8712 = vmatprep.mubr.msk.f32.mxu0 %vm9322_vm1, %v9319_v1 }
0x1d06   :  { %8977 = vmatpush3.bf16.msra.mxu1 %v8976_v19 }
0x1d07   :  { %8979 = vmatprep.subr.bf16.mxu1 %v8978_v15 }
0x1d0a   :  { %8981 = vmatpush3.bf16.msra.mxu1 %v8980_v17 }
0x1dd1   :  { %v7238_v25 = vpop.f32.mrb[90].mxu0 }
0x1dd2   :  { %v7239_v48 = vadd.f32 %v7238_v25, %v7159_v23  ;;  %v7240_v50 = vpop.f32.mrb[91].mxu0 }
0x1dd3   :  { %v7241_v24 = vadd.f32 %v7240_v50, %v7163_v14 }
0x1dd4   :  { %v7249_v61 = vmul.f32 %v7239_v48, %v7239_v48 }
0x1dd5   :  { %v7250_v31 = vmul.f32 %v7241_v24, %v7241_v24 }
0x1dd6   :  { %v7253_v18 = vmul.f32 %v7249_v61, %v7239_v48 }
0x1dd7   :  { %v7254_v37 = vmul.f32 %v7250_v31, %v7241_v24  ;;  %v7244_v16 = vpop.f32.mrb[92].mxu0 }
0x1dd8   :  { %v7257_v36 = vmul.f32 0.044715, %v7253_v18  ;;  %v7245_v32 = vadd.f32 %v7244_v16, %v7159_v23  ;;  %v7246_v33 = vpop.f32.mrb[93].mxu0 }
0x1dd9   :  { %v7258_v35 = vmul.f32 0.044715, %v7254_v37  ;;  %v7247_v63 = vadd.f32 %v7246_v33, %v7163_v14 }
0x1dda   :  { %v7261_v38 = vadd.f32 %v7257_v36, %v7239_v48  ;;  %v7251_v62 = vmul.f32 %v7245_v32, %v7245_v32 }
0x1ddb   :  { %v7262_v28 = vadd.f32 %v7258_v35, %v7241_v24  ;;  %v7252_v30 = vmul.f32 %v7247_v63, %v7247_v63 }
0x1ddc   :  { %v7265_v39 = vmul.f32 0.7978846, %v7261_v38  ;;  %v7255_v34 = vmul.f32 %v7251_v62, %v7245_v32  ;;  %v9194_v62 = vld [vmem:[%s11117_s14 + $0x4] sm:$0x7] }
0x1ddd   :  { %v7266_v40 = vmul.f32 0.7978846, %v7262_v28  ;;  %v7256_v10 = vmul.f32 %v7252_v30, %v7247_v63  ;;  %v7436_v28 = vrot.slane %v9194_v62, %v10375_v5 }
0x1dde   :  { %9174 = vtanh.f32 %v7265_v39  ;;  %v7259_v42 = vmul.f32 0.044715, %v7255_v34  ;;  %v9195_v39 = vld [vmem:[%s11118_s15 + $0x4] sm:$0x7] }
0x1ddf   :  { %v7260_v43 = vmul.f32 0.044715, %v7256_v10  ;;  %9176 = vtanh.f32 %v7266_v40  ;;  %v7442_v34 = vrot.slane %v9195_v39, %v10375_v5  ;;  %v7487_v5 = vld [vmem:[%s11198_s6] sm:$0xff] }
0x1de0   :  { %v7263_v44 = vadd.f32 %v7259_v42, %v7245_v32 }
0x1de1   :  { %v7264_v45 = vadd.f32 %v7260_v43, %v7247_v63 }
0x1de2   :  { %v7267_v46 = vmul.f32 0.7978846, %v7263_v44 }
0x1de3   :  { %v7268_v47 = vmul.f32 0.7978846, %v7264_v45 }
0x1de4   :  { %9178 = vtanh.f32 %v7267_v46 }
0x1de5   :  { %9180 = vtanh.f32 %v7268_v47 }
0x1de8   :  { %v9175_v51 = vpop.eup %9174 }
0x1de9   :  { %v9177_v52 = vpop.eup %9176  ;;  %v7273_v53 = vadd.f32 1.0, %v9175_v51 }
0x1dea   :  { %v7274_v54 = vadd.f32 1.0, %v9177_v52  ;;  %v7453_v52 = vld [vmem:[#allocation8] sm:$0x3] }
0x1deb   :  { %v7277_v55 = vmul.f32 0.5, %v7273_v53 }
0x1dec   :  { %v7278_v56 = vmul.f32 0.5, %v7274_v54 }
0x1ded   :  { %v7281_v60 = vmul.f32 %v7277_v55, %v7239_v48 }
0x1dee   :  { %v9179_v57 = vpop.eup %9178  ;;  %v7282_v58 = vmul.f32 %v7278_v56, %v7241_v24 }
0x1def   :  { %v9181_v59 = vpop.eup %9180  ;;  %v7275_v0 = vadd.f32 1.0, %v9179_v57 }
0x1df0   :  { %7390 = vmatprep.mubr.f32.mxu1 %v7282_v58  ;;  %v7276_v2 = vadd.f32 1.0, %v9181_v59  ;;  %v7488_v58 = vld [vmem:[%s11198_s6 + $0x8] sm:$0xff] }
0x1df1   :  { %7391 = vmatmul.mubr.f32.vlgmr.msra.gmra.mrb[70].mxu1 %v7281_v60  ;;  %v7279_v3 = vmul.f32 0.5, %v7275_v0  ;;  %v8983_v59 = vpack.c.bf16 %v7488_v58, %v7487_v5  ;;  %v9329_v60 = vmov 0.0|0.0   ;;  %v7489_v0 = vld [vmem:[%s11198_s6 + $0x10] sm:$0xff] }
0x1df2   :  { %v7280_v4 = vmul.f32 0.5, %v7276_v2  ;;  %8982 = vmatprep.subr.bf16.mxu0 %v9329_v60  ;;  %v7490_v2 = vld [vmem:[%s11198_s6 + $0x18] sm:$0xff] }
0x1df3   :  { %v7283_v7 = vmul.f32 %v7279_v3, %v7245_v32  ;;  %8984 = vmatpush3.bf16.msra.mxu0 %v8983_v59  ;;  %v8986_v3 = vpack.c.bf16 %v7490_v2, %v7489_v0 }
0x1df4   :  { %v7284_v6 = vmul.f32 %v7280_v4, %v7247_v63  ;;  %8985 = vmatprep.subr.bf16.mxu0 %v9329_v60  ;;  %v7491_v4 = vld [vmem:[%s11198_s6 + $0x20] sm:$0xff] }
0x1df6   :  { %7395 = vmatprep.mubr.f32.mxu1 %v7284_v6  ;;  %v7492_v6 = vld [vmem:[%s11198_s6 + $0x28] sm:$0xff] }
0x1df7   :  { %7396 = vmatmul.mubr.f32.gmra.mrb[72].mxu1 %v7283_v7  ;;  %8987 = vmatpush3.bf16.msra.mxu0 %v8986_v3  ;;  %v8989_v7 = vpack.c.bf16 %v7492_v6, %v7491_v4 }
0x1df8   :  { %8988 = vmatprep.subr.bf16.mxu0 %v9329_v60 }
0x1dfb   :  { %8990 = vmatpush3.bf16.msra.mxu0 %v8989_v7 }
0x1dfc   :  { %8991 = vmatprep.subr.bf16.mxu0 %v9329_v60 }
0x1ec4   :  { %v8204_v8 = vpop.f32.mrb[70].mxu1 }
0x1ec5   :  { %v8205_v41 = vpop.f32.mrb[71].mxu1 }
0x1ec6   :  { %v8206_v9 = vadd.f32 %v8205_v41, %v8204_v8  ;;  %v7493_v8 = vld [vmem:[%s11198_s6 + $0x30] sm:$0xff] }
0x1ec8   :  { %v7393_v13 = vadd.f32 %v8206_v9, %v7919_v11 }
0x1eca   :  { %v7401_v26 = vadd.f32 %v7393_v13, %v10922_v49  ;;  %v8207_v29 = vpop.f32.mrb[72].mxu1 }
0x1ecb   :  { %v8208_v27 = vpop.f32.mrb[73].mxu1 }
0x1ecc   :  { %v8209_v19 = vadd.f32 %v8208_v27, %v8207_v29  ;;  %v7403_v15 = vsel %vm227_vm0, %v7401_v26, 0.0  ;;  %v7411_v20 = vmul.f32 %v7401_v26, %v7401_v26 }
0x1ecd   :  { %7404 = vadd.xlane.f32.xlu1 %v7403_v15 }
0x1ece   :  { %v7398_v21 = vadd.f32 %v8209_v19, %v7919_v11  ;;  %v7413_v22 = vsel %vm227_vm0, %v7411_v20, 0.0  ;;  %v7494_v11 = vld [vmem:[%s11198_s6 + $0x38] sm:$0xff] }
0x1ecf   :  { %v8992_v41 = vpack.c.bf16 %v7494_v11, %v7493_v8 }
0x1ed0   :  { %v7402_v17 = vadd.f32 %v7398_v21, %v10927_v12 }
0x1ed1   :  { %7414 = vadd.xlane.f32.xlu1 %v7413_v22  ;;  %8993 = vmatpush3.bf16.msra.mxu0 %v8992_v41 }
0x1ed2   :  { %v7406_v23 = vsel %vm227_vm0, %v7402_v17, 0.0  ;;  %v7412_v14 = vmul.f32 %v7402_v17, %v7402_v17  ;;  %8994 = vmatprep.subr.bf16.mxu0 %v9329_v60 }
0x1ed3   :  { %7407 = vadd.xlane.f32.xlu0 %v7406_v23  ;;  %v7921_v23 = vld [vmem:[%s11200_s1] ss:$0 sm:$0xff] }
0x1ed4   :  { %v7416_v25 = vsel %vm227_vm0, %v7412_v14, 0.0 }
0x1ed7   :  { %7417 = vadd.xlane.f32.xlu0 %v7416_v25 }
0x1f5a   :  { %v7405_v49 = vpop.xlane.xlu1 %7404 }
0x1f5b   :  { %v7409_v48 = vmul.f32 0.015625, %v7405_v49  ;;  %v7584_v49 = vld [vmem:[%s11201_s17] sm:$0xff] }
0x1f5d   :  { %v7421_v24 = vmul.f32 %v7409_v48, %v7409_v48  ;;  %v7425_v63 = vsub.f32 %v7401_v26, %v7409_v48  ;;  %v7585_v48 = vld [vmem:[%s11201_s17 + $0x8] sm:$0xff] }
0x1f5e   :  { %v7415_v50 = vpop.xlane.xlu1 %7414 }
0x1f5f   :  { %v7419_v61 = vmul.f32 0.015625, %v7415_v50  ;;  %v8995_v50 = vpack.c.bf16 %v7585_v48, %v7584_v49 }
0x1f60   :  { %v7408_v31 = vpop.xlane.xlu0 %7407 }
0x1f61   :  { %v7423_v18 = vsub.f32 %v7419_v61, %v7421_v24  ;;  %v7410_v37 = vmul.f32 0.015625, %v7408_v31  ;;  %v7586_v24 = vld [vmem:[%s11201_s17 + $0x10] sm:$0xff]  ;;  %v7587_v61 = vld [vmem:[%s11201_s17 + $0x18] sm:$0xff]  ;;  %v7922_v31 = vld [vmem:[%s11202_s30] ss:$0 sm:$0xff] }
0x1f63   :  { %v7427_v16 = vadd.f32 1e-05, %v7423_v18  ;;  %v7422_v36 = vmul.f32 %v7410_v37, %v7410_v37  ;;  %v7426_v40 = vsub.f32 %v7402_v17, %v7410_v37  ;;  %v7920_v17 = vld [vmem:[%s11199_s26] ss:$0 sm:$0xff] }
0x1f64   :  { %v7418_v12 = vpop.xlane.xlu0 %7417 }
0x1f65   :  { %9182 = vrsqrt.f32 %v7427_v16  ;;  %v7420_v32 = vmul.f32 0.015625, %v7418_v12 }
0x1f67   :  { %v7424_v33 = vsub.f32 %v7420_v32, %v7422_v36 }
0x1f69   :  { %v7428_v35 = vadd.f32 1e-05, %v7424_v33 }
0x1f6b   :  { %9184 = vrsqrt.f32 %v7428_v35 }
0x1f6f   :  { %v9183_v38 = vpop.eup %9182 }
0x1f70   :  { %v7431_v30 = vmul.f32 %v9183_v38, %v7425_v63 }
0x1f72   :  { %v7437_v10 = vmul.f32 %v7436_v28, %v7431_v30  ;;  %v7924_v30 = vld [vmem:[#allocation2] ss:$0 sm:$0xff] }
0x1f74   :  { %v7443_v45 = vadd.f32 %v7442_v34, %v7437_v10 }
0x1f75   :  { %v9185_v42 = vpop.eup %9184 }
0x1f76   :  { %v7432_v43 = vmul.f32 %v9185_v42, %v7426_v40  ;;  %v7446_v47 = vrot.slane %v7443_v45, 7 }
0x1f78   :  { %v7438_v44 = vmul.f32 %v7436_v28, %v7432_v43 }
0x1f7a   :  { %v7444_v46 = vadd.f32 %v7442_v34, %v7438_v44 }
0x1f7c   :  { %v7449_v51 = vrot.slane %v7444_v46, 6 }
0x1f7e   :  { %v7452_v53 = vsel %vm7451_vm2, %v7446_v47, %v7449_v51 }
0x1f7f   :  { %v7454_v54 = vadd.f32 %v7453_v52, %v7452_v53 }
0x1f81   :  { %v7458_v55 = vsel %vm7457_vm9, %v7454_v54, 0.0  ;;  %v7462_v56 = vmul.f32 %v7454_v54, %v7454_v54 }
0x1f82   :  { %7459 = vadd.xlane.f32.xlu1 %v7458_v55 }
0x1f83   :  { %v7463_v57 = vsel %vm7457_vm9, %v7462_v56, 0.0 }
0x1f84   :  { %7464 = vadd.xlane.f32.xlu0 %v7463_v57 }
0x200f   :  { %v7460_v9 = vpop.xlane.xlu1 %7459 }
0x2010   :  { %v7461_v13 = vmul.f32 0.015625, %v7460_v9 }
0x2011   :  { %v7465_v26 = vpop.xlane.xlu0 %7464 }
0x2012   :  { %v7467_v29 = vmul.f32 %v7461_v13, %v7461_v13  ;;  %v7466_v27 = vmul.f32 0.015625, %v7465_v26  ;;  %v7469_v20 = vsub.f32 %v7454_v54, %v7461_v13 }
0x2014   :  { %v7468_v19 = vsub.f32 %v7466_v27, %v7467_v29 }
0x2016   :  { %v7470_v15 = vadd.f32 1e-05, %v7468_v19 }
0x2018   :  { %9186 = vrsqrt.f32 %v7470_v15 }
0x2022   :  { %v9187_v21 = vpop.eup %9186 }
0x2023   :  { %v7472_v22 = vmul.f32 %v9187_v21, %v7469_v20 }
0x2025   :  { %v7479_v14 = vmul.f32 %v7920_v17, %v7472_v22 }
0x2027   :  { %v7486_v25 = vadd.f32 %v7921_v23, %v7479_v14 }
0x2029   :  { %8713 = vmatmul.mubr.msk.f32.vlgmr.msra.gmra.mrb[94].mxu0 %vm227_vm0, %v7486_v25  ;;  %vm7668_vm0 = vcmask 1024  }
0x202a   :  { %8723 = vmatprep.mubr.msk.f32.mxu0 %vm9322_vm1, %v9319_v1  ;;  %8996 = vmatpush3.bf16.msra.mxu0 %v8995_v50  ;;  %v8998_v1 = vpack.c.bf16 %v7587_v61, %v7586_v24 }
0x202b   :  { %8997 = vmatprep.subr.bf16.mxu0 %v9329_v60 }
0x202e   :  { %8999 = vmatpush3.bf16.msra.mxu0 %v8998_v1 }
0x20fc   :  { %v7571_v18 = vpop.f32.mrb[94].mxu0 }
0x20fd   :  { %v7572_v37 = vadd.f32 %v7922_v31, %v7571_v18  ;;  %v8714_v16 = vpop.f32.mrb[95].mxu0 }
0x20ff   :  { %v7575_v12 = vmul.f32 %v7572_v37, %v7572_v37 }
0x2101   :  { %v7576_v36 = vmul.f32 %v7575_v12, %v7572_v37 }
0x2103   :  { %v7577_v32 = vmul.f32 0.044715, %v7576_v36 }
0x2105   :  { %v7578_v33 = vadd.f32 %v7577_v32, %v7572_v37 }
0x2107   :  { %v7579_v35 = vmul.f32 0.7978846, %v7578_v33 }
0x2109   :  { %9188 = vtanh.f32 %v7579_v35 }
0x2113   :  { %v9189_v63 = vpop.eup %9188 }
0x2114   :  { %v7581_v38 = vadd.f32 1.0, %v9189_v63 }
0x2116   :  { %v7582_v62 = vmul.f32 0.5, %v7581_v38 }
0x2118   :  { %v7583_v28 = vmul.f32 %v7582_v62, %v7572_v37 }
0x211a   :  { %8724 = vmatmul.mubr.msk.f32.vlgmr.msra.gmra.mrb[96].mxu0 %vm1656_vm4, %v7583_v28 }
0x21ed   :  { %v7664_v39 = vpop.f32.mrb[96].mxu0 }
0x21ee   :  { %v7665_v34 = vadd.f32 %v7924_v30, %v7664_v39  ;;  %v8725_v40 = vpop.f32.mrb[97].mxu0 }
0x21f0   :  { %7669 = vst.msk [vmem:[%s11203_s28] sm:$0x3] %vm7668_vm0, %v7665_v34 }
0x21f1   :  { %7674 = vsyncpa [#allocation4], 1 }
0x21f2   :  { %7675 = vsyncpa [#allocation6], 1 }
0x21f3   :  { %7676 = vsyncpa [#allocation9], 1 }

</bundles_post_ra>
